<compile_context>
chip_gen: v7x
topology: tpu7x:2x2x1
jax: 0.10.0
libtpu: 0.0.40
codegen_flags: <defaults>
</compile_context>

<pallas_src>
import functools

import jax
import jax.numpy as jnp
from jax.experimental import pallas as pl
from jax.experimental.pallas import tpu as pltpu


def _round_up(x, m):
    return ((x + m - 1) // m) * m


def _pick_band_rows(H, W, CIN, COUT_pad, budget_bytes=4 << 20):
    """Largest divisor of H whose bf16 im2col slab + f32 band fit the budget."""
    per_row = W * (9 * CIN * 2 + COUT_pad * 4)
    best = 1
    for th in range(1, H + 1):
        if H % th == 0 and th * per_row <= budget_bytes:
            best = th
    return best


def _vmem_limit_bytes():
    """Generation-aware scoped-VMEM limit: 3/4 of physical, capped at 96 MiB."""
    try:
        cap = pltpu.get_tpu_info().vmem_capacity_bytes
    except Exception:
        cap = 64 << 20  # conservative fallback (v7x-sized)
    return int(min(cap * 3 // 4, 96 << 20))


def _conv_band(xp_ref, w_ref, r0, TH, W, CIN):
    """3x3 'same' conv of output rows [r0, r0+TH) of one zero-padded image.

    xp_ref : (1, H+2, W+2, CIN)  padded NHWC image block (bf16)
    w_ref  : (9*CIN, COUT_pad)   folded per-tap weights  (bf16)
    returns: (TH*W, COUT_pad)    f32 — single MXU contraction, K = 9*CIN.
    """
    cols = []
    for kh in range(3):
        for kw in range(3):
            # Static window slices straight off the ref (no whole-image value).
            cols.append(xp_ref[0, r0 + kh:r0 + kh + TH, kw:kw + W, :])
    patch = jnp.concatenate(cols, axis=-1).reshape(TH * W, 9 * CIN)  # bf16
    return jnp.dot(patch, w_ref[...], preferred_element_type=jnp.float32)


def _conv_stats_kernel(xp_ref, w_ref, sum_ref, sq_ref, *, H, W, CIN, TH):
    """Pass 1: per-image per-channel sum / sum-of-squares of the conv output."""
    s_acc = None
    q_acc = None
    for b in range(H // TH):
        conv = _conv_band(xp_ref, w_ref, b * TH, TH, W, CIN)      # f32
        s = jnp.sum(conv, axis=0, keepdims=True)
        q = jnp.sum(conv * conv, axis=0, keepdims=True)
        s_acc = s if s_acc is None else s_acc + s
        q_acc = q if q_acc is None else q_acc + q
    sum_ref[...] = s_acc[None]
    sq_ref[...] = q_acc[None]


def _conv_affine_relu_kernel(xp_ref, w_ref, s_ref, t_ref, o_ref, *, H, W, CIN, TH):
    """Pass 2: conv + fused per-channel scale/shift + ReLU (f32 epilogue)."""
    s = s_ref[...]                                                # (1, COUT_pad)
    t = t_ref[...]
    for b in range(H // TH):
        conv = _conv_band(xp_ref, w_ref, b * TH, TH, W, CIN)      # f32
        y = jnp.maximum(conv * s + t, 0.0)
        o_ref[0, b * TH * W:(b + 1) * TH * W, :] = y.astype(o_ref.dtype)


@functools.partial(jax.jit, static_argnames=("batch_norm",))
def vgg_block_forward(x_nchw, weight, bias, gamma, beta,
                      eps=1e-5, *, batch_norm=True):
    """x_nchw: (N, CIN, H, W); weight: (COUT, CIN, 3, 3); bias/gamma/beta: (COUT,)."""
    N, CIN, H, W = x_nchw.shape
    COUT = weight.shape[0]
    COUT_pad = _round_up(COUT, 128)          # lane-dense outputs / stats
    TH = _pick_band_rows(H, W, CIN, COUT_pad)

    # Layout glue (plain JAX; XLA fuses into the one copy NCHW forces anyway):
    # NCHW->NHWC, 1px zero pad, bf16 cast; weights folded to (9*CIN, COUT_pad).
    xp = jnp.pad(jnp.transpose(x_nchw, (0, 2, 3, 1)),
                 ((0, 0), (1, 1), (1, 1), (0, 0))).astype(jnp.bfloat16)
    w = jnp.transpose(weight, (2, 3, 1, 0)).reshape(9 * CIN, COUT)
    w = jnp.pad(w, ((0, 0), (0, COUT_pad - COUT))).astype(jnp.bfloat16)

    grid = (N,)
    xp_spec = pl.BlockSpec((1, H + 2, W + 2, CIN), lambda n: (n, 0, 0, 0))
    w_spec = pl.BlockSpec((9 * CIN, COUT_pad), lambda n: (0, 0))
    cparams = pltpu.CompilerParams(
        dimension_semantics=("parallel",),            # split batch across TCs
        vmem_limit_bytes=_vmem_limit_bytes())

    if batch_norm:
        # Pass 1: conv + per-image per-channel partial sums (lane-dense COUT_pad).
        stat_spec = pl.BlockSpec((1, 1, COUT_pad), lambda n: (n, 0, 0))
        sums, sqs = pl.pallas_call(
            functools.partial(_conv_stats_kernel, H=H, W=W, CIN=CIN, TH=TH),
            grid=grid,
            in_specs=[xp_spec, w_spec],
            out_specs=[stat_spec, stat_spec],
            out_shape=[jax.ShapeDtypeStruct((N, 1, COUT_pad), jnp.float32),
                       jax.ShapeDtypeStruct((N, 1, COUT_pad), jnp.float32)],
            compiler_params=cparams,
        )(xp, w)

        # Tiny per-channel reduction + fold BN into one scale/shift (plain JAX).
        count = N * H * W
        mean = jnp.sum(sums, axis=(0, 1)) / count
        var = jnp.maximum(jnp.sum(sqs, axis=(0, 1)) / count - mean * mean, 0.0)
        gamma_p = jnp.pad(gamma.astype(jnp.float32), (0, COUT_pad - COUT))
        beta_p = jnp.pad(beta.astype(jnp.float32), (0, COUT_pad - COUT))
        s = gamma_p * jax.lax.rsqrt(var + eps)
        # Conv bias cancels exactly under training-mode (batch-stat) BN.
        t = beta_p - mean * s
    else:
        s = jnp.ones((COUT_pad,), jnp.float32)
        t = jnp.pad(bias.astype(jnp.float32), (0, COUT_pad - COUT))

    s2 = s.reshape(1, COUT_pad)
    t2 = t.reshape(1, COUT_pad)
    ch_spec = pl.BlockSpec((1, COUT_pad), lambda n: (0, 0))
    out_spec = pl.BlockSpec((1, H * W, COUT_pad), lambda n: (n, 0, 0))

    # Pass 2: conv + fused affine + ReLU, streamed per image, lane-dense stores.
    out = pl.pallas_call(
        functools.partial(_conv_affine_relu_kernel, H=H, W=W, CIN=CIN, TH=TH),
        grid=grid,
        in_specs=[xp_spec, w_spec, ch_spec, ch_spec],
        out_specs=out_spec,
        out_shape=jax.ShapeDtypeStruct((N, H * W, COUT_pad), jnp.float32),
        compiler_params=cparams,
    )(xp, w, s2, t2)

    out = out.reshape(N, H, W, COUT_pad)[..., :COUT]
    return jnp.transpose(out, (0, 3, 1, 2))                       # back to NCHW


def _reference(x_nchw, weight, bias, gamma, beta, eps=1e-5, batch_norm=True):
    """Pure-JAX f32 reference of the same forward pass (correctness check)."""
    y = jax.lax.conv_general_dilated(
        x_nchw, weight, window_strides=(1, 1), padding="SAME",
        dimension_numbers=("NCHW", "OIHW", "NCHW"),
        precision=jax.lax.Precision.HIGHEST)
    y = y + bias.reshape(1, -1, 1, 1)
    if batch_norm:
        mean = jnp.mean(y, axis=(0, 2, 3), keepdims=True)
        var = jnp.mean(jnp.square(y - mean), axis=(0, 2, 3), keepdims=True)
        y = (y - mean) * jax.lax.rsqrt(var + eps)
        y = y * gamma.reshape(1, -1, 1, 1) + beta.reshape(1, -1, 1, 1)
    return jnp.maximum(y, 0.0)


if __name__ == "__main__":
    N, CIN, COUT, H, W = 2, 4, 8, 16, 16

    key = jax.random.PRNGKey(0)
    k_w, k_b, k_x = jax.random.split(key, 3)

    # PyTorch-shaped parameters (Conv2d kaiming-uniform-like bound; BN init
    # gamma=1, beta=0).
    fan_in = CIN * 3 * 3
    bound = 1.0 / (fan_in ** 0.5)
    weight = jax.random.uniform(k_w, (COUT, CIN, 3, 3), jnp.float32, -bound, bound)
    bias = jax.random.uniform(k_b, (COUT,), jnp.float32, -bound, bound)
    gamma = jnp.ones((COUT,), jnp.float32)
    beta = jnp.zeros((COUT,), jnp.float32)

    x = jax.random.normal(k_x, (N, CIN, H, W), jnp.float32)

    # Tolerance is relaxed vs. the f32 HIGHEST reference because the conv now
    # runs on the MXU in bf16 (native dtype) with f32 accumulation.
    TOL = 5e-2

    # batch_norm=True path (Conv -> BN(train stats) -> ReLU).
    out_bn = jax.block_until_ready(
        vgg_block_forward(x, weight, bias, gamma, beta, batch_norm=True))
    ref_bn = _reference(x, weight, bias, gamma, beta, batch_norm=True)
    assert out_bn.shape == (N, COUT, H, W), out_bn.shape
    assert jnp.allclose(out_bn, ref_bn, atol=TOL, rtol=TOL), \
        float(jnp.max(jnp.abs(out_bn - ref_bn)))

    # batch_norm=False path (Conv -> ReLU).
    out_nb = jax.block_until_ready(
        vgg_block_forward(x, weight, bias, gamma, beta, batch_norm=False))
    ref_nb = _reference(x, weight, bias, gamma, beta, batch_norm=False)
    assert jnp.allclose(out_nb, ref_nb, atol=TOL, rtol=TOL), \
        float(jnp.max(jnp.abs(out_nb - ref_nb)))

    print("KERNEL_OK")
</pallas_src>

<mosaic_0001>
module attributes {stable_mosaic.version = 11 : i64} {
  func.func @_conv_affine_relu_kernel(%arg0: i32, %arg1: memref<1x18x18x4xbf16, #tpu.memory_space<vmem>>, %arg2: memref<36x128xbf16, #tpu.memory_space<vmem>>, %arg3: memref<1x128xf32, #tpu.memory_space<vmem>>, %arg4: memref<1x128xf32, #tpu.memory_space<vmem>>, %arg5: memref<1x256x128xf32, #tpu.memory_space<vmem>>) attributes {dimension_semantics = [#tpu.dimension_semantics<parallel>], iteration_bounds = array<i64: 2>, scalar_prefetch = 0 : i64, scratch_operands = 0 : i64, tpu.core_type = #tpu.core_type<tc>, window_params = [{transform_indices = @transform_0, window_bounds = array<i64: 1, 18, 18, 4>}, {pipeline_mode = #tpu.pipeline_mode<synchronous>, transform_indices = @transform_1, window_bounds = array<i64: 36, 128>}, {pipeline_mode = #tpu.pipeline_mode<synchronous>, transform_indices = @transform_2, window_bounds = array<i64: 1, 128>}, {pipeline_mode = #tpu.pipeline_mode<synchronous>, transform_indices = @transform_3, window_bounds = array<i64: 1, 128>}, {transform_indices = @transform_4, window_bounds = array<i64: 1, 256, 128>}]} {
    %c0 = arith.constant 0 : index
    %c0_0 = arith.constant 0 : index
    %0 = vector.load %arg3[%c0, %c0_0] : memref<1x128xf32, #tpu.memory_space<vmem>>, vector<1x128xf32>
    %c0_1 = arith.constant 0 : index
    %c0_2 = arith.constant 0 : index
    %1 = vector.load %arg4[%c0_1, %c0_2] : memref<1x128xf32, #tpu.memory_space<vmem>>, vector<1x128xf32>
    %c0_3 = arith.constant 0 : index
    %c0_4 = arith.constant 0 : index
    %c0_5 = arith.constant 0 : index
    %c0_6 = arith.constant 0 : index
    %2 = vector.load %arg1[%c0_3, %c0_4, %c0_5, %c0_6] : memref<1x18x18x4xbf16, #tpu.memory_space<vmem>>, vector<1x16x16x4xbf16>
    %3 = vector.shape_cast %2 : vector<1x16x16x4xbf16> to vector<16x16x4xbf16>
    %c0_7 = arith.constant 0 : index
    %c0_8 = arith.constant 0 : index
    %c1 = arith.constant 1 : index
    %c0_9 = arith.constant 0 : index
    %4 = vector.load %arg1[%c0_7, %c0_8, %c1, %c0_9] : memref<1x18x18x4xbf16, #tpu.memory_space<vmem>>, vector<1x16x16x4xbf16>
    %5 = vector.shape_cast %4 : vector<1x16x16x4xbf16> to vector<16x16x4xbf16>
    %c0_10 = arith.constant 0 : index
    %c0_11 = arith.constant 0 : index
    %c2 = arith.constant 2 : index
    %c0_12 = arith.constant 0 : index
    %6 = vector.load %arg1[%c0_10, %c0_11, %c2, %c0_12] : memref<1x18x18x4xbf16, #tpu.memory_space<vmem>>, vector<1x16x16x4xbf16>
    %7 = vector.shape_cast %6 : vector<1x16x16x4xbf16> to vector<16x16x4xbf16>
    %c0_13 = arith.constant 0 : index
    %c1_14 = arith.constant 1 : index
    %c0_15 = arith.constant 0 : index
    %c0_16 = arith.constant 0 : index
    %8 = vector.load %arg1[%c0_13, %c1_14, %c0_15, %c0_16] : memref<1x18x18x4xbf16, #tpu.memory_space<vmem>>, vector<1x16x16x4xbf16>
    %9 = vector.shape_cast %8 : vector<1x16x16x4xbf16> to vector<16x16x4xbf16>
    %c0_17 = arith.constant 0 : index
    %c1_18 = arith.constant 1 : index
    %c1_19 = arith.constant 1 : index
    %c0_20 = arith.constant 0 : index
    %10 = vector.load %arg1[%c0_17, %c1_18, %c1_19, %c0_20] : memref<1x18x18x4xbf16, #tpu.memory_space<vmem>>, vector<1x16x16x4xbf16>
    %11 = vector.shape_cast %10 : vector<1x16x16x4xbf16> to vector<16x16x4xbf16>
    %c0_21 = arith.constant 0 : index
    %c1_22 = arith.constant 1 : index
    %c2_23 = arith.constant 2 : index
    %c0_24 = arith.constant 0 : index
    %12 = vector.load %arg1[%c0_21, %c1_22, %c2_23, %c0_24] : memref<1x18x18x4xbf16, #tpu.memory_space<vmem>>, vector<1x16x16x4xbf16>
    %13 = vector.shape_cast %12 : vector<1x16x16x4xbf16> to vector<16x16x4xbf16>
    %c0_25 = arith.constant 0 : index
    %c2_26 = arith.constant 2 : index
    %c0_27 = arith.constant 0 : index
    %c0_28 = arith.constant 0 : index
    %14 = vector.load %arg1[%c0_25, %c2_26, %c0_27, %c0_28] : memref<1x18x18x4xbf16, #tpu.memory_space<vmem>>, vector<1x16x16x4xbf16>
    %15 = vector.shape_cast %14 : vector<1x16x16x4xbf16> to vector<16x16x4xbf16>
    %c0_29 = arith.constant 0 : index
    %c2_30 = arith.constant 2 : index
    %c1_31 = arith.constant 1 : index
    %c0_32 = arith.constant 0 : index
    %16 = vector.load %arg1[%c0_29, %c2_30, %c1_31, %c0_32] : memref<1x18x18x4xbf16, #tpu.memory_space<vmem>>, vector<1x16x16x4xbf16>
    %17 = vector.shape_cast %16 : vector<1x16x16x4xbf16> to vector<16x16x4xbf16>
    %c0_33 = arith.constant 0 : index
    %c2_34 = arith.constant 2 : index
    %c2_35 = arith.constant 2 : index
    %c0_36 = arith.constant 0 : index
    %18 = vector.load %arg1[%c0_33, %c2_34, %c2_35, %c0_36] : memref<1x18x18x4xbf16, #tpu.memory_space<vmem>>, vector<1x16x16x4xbf16>
    %19 = vector.shape_cast %18 : vector<1x16x16x4xbf16> to vector<16x16x4xbf16>
    %20 = tpu.concatenate %3, %5, %7, %9, %11, %13, %15, %17, %19 in 2 : vector<16x16x4xbf16>, vector<16x16x4xbf16>, vector<16x16x4xbf16>, vector<16x16x4xbf16>, vector<16x16x4xbf16>, vector<16x16x4xbf16>, vector<16x16x4xbf16>, vector<16x16x4xbf16>, vector<16x16x4xbf16> -> vector<16x16x36xbf16>
    %21 = vector.shape_cast %20 : vector<16x16x36xbf16> to vector<256x36xbf16>
    %c0_37 = arith.constant 0 : index
    %c0_38 = arith.constant 0 : index
    %22 = vector.load %arg2[%c0_37, %c0_38] : memref<36x128xbf16, #tpu.memory_space<vmem>>, vector<36x128xbf16>
    %cst = arith.constant dense<0.000000e+00> : vector<256x128xf32>
    %23 = tpu.matmul %21, %22, %cst {dimension_numbers = #tpu.dot_dimension_numbers<[1], [0], [0], [1], [0, 0, 1, 1], [], []>} : vector<256x36xbf16>, vector<36x128xbf16>, vector<256x128xf32> -> vector<256x128xf32>
    %24 = vector.broadcast %0 : vector<1x128xf32> to vector<256x128xf32>
    %25 = arith.mulf %23, %24 : vector<256x128xf32>
    %26 = vector.broadcast %1 : vector<1x128xf32> to vector<256x128xf32>
    %27 = arith.addf %25, %26 : vector<256x128xf32>
    %cst_39 = arith.constant 0.000000e+00 : f32
    %28 = vector.broadcast %cst_39 : f32 to vector<256x128xf32>
    %29 = arith.maximumf %27, %28 : vector<256x128xf32>
    %c0_40 = arith.constant 0 : index
    %c0_41 = arith.constant 0 : index
    %c0_42 = arith.constant 0 : index
    %30 = vector.load %arg5[%c0_40, %c0_41, %c0_42] : memref<1x256x128xf32, #tpu.memory_space<vmem>>, vector<1x256x128xf32>
    %31 = vector.shape_cast %30 : vector<1x256x128xf32> to vector<256x128xf32>
    %32 = vector.shape_cast %29 : vector<256x128xf32> to vector<1x256x128xf32>
    tpu.vector_store %arg5[%c0_40, %c0_41, %c0_42], %32 {strides = array<i32>} : memref<1x256x128xf32, #tpu.memory_space<vmem>>, vector<1x256x128xf32>,
    return
  }
  func.func @transform_0(%arg0: i32) -> (i32, i32, i32, i32) {
    %c0_i32 = arith.constant 0 : i32
    %c0_i32_0 = arith.constant 0 : i32
    %c0_i32_1 = arith.constant 0 : i32
    %c0_i32_2 = arith.constant 0 : i32
    return %arg0, %c0_i32, %c0_i32_0, %c0_i32_1 : i32, i32, i32, i32
  }
  func.func @transform_1(%arg0: i32) -> (i32, i32) {
    %c0_i32 = arith.constant 0 : i32
    %c0_i32_0 = arith.constant 0 : i32
    %c0_i32_1 = arith.constant 0 : i32
    return %c0_i32, %c0_i32_0 : i32, i32
  }
  func.func @transform_2(%arg0: i32) -> (i32, i32) {
    %c0_i32 = arith.constant 0 : i32
    %c0_i32_0 = arith.constant 0 : i32
    %c0_i32_1 = arith.constant 0 : i32
    return %c0_i32, %c0_i32_0 : i32, i32
  }
  func.func @transform_3(%arg0: i32) -> (i32, i32) {
    %c0_i32 = arith.constant 0 : i32
    %c0_i32_0 = arith.constant 0 : i32
    %c0_i32_1 = arith.constant 0 : i32
    return %c0_i32, %c0_i32_0 : i32, i32
  }
  func.func @transform_4(%arg0: i32) -> (i32, i32, i32) {
    %c0_i32 = arith.constant 0 : i32
    %c0_i32_0 = arith.constant 0 : i32
    %c0_i32_1 = arith.constant 0 : i32
    return %arg0, %c0_i32, %c0_i32_0 : i32, i32, i32
  }
}

module attributes {stable_mosaic.version = 11 : i64} {
  func.func @_conv_stats_kernel(%arg0: i32, %arg1: memref<1x18x18x4xbf16, #tpu.memory_space<vmem>>, %arg2: memref<36x128xbf16, #tpu.memory_space<vmem>>, %arg3: memref<1x1x128xf32, #tpu.memory_space<vmem>>, %arg4: memref<1x1x128xf32, #tpu.memory_space<vmem>>) attributes {dimension_semantics = [#tpu.dimension_semantics<parallel>], iteration_bounds = array<i64: 2>, scalar_prefetch = 0 : i64, scratch_operands = 0 : i64, tpu.core_type = #tpu.core_type<tc>, window_params = [{transform_indices = @transform_0, window_bounds = array<i64: 1, 18, 18, 4>}, {pipeline_mode = #tpu.pipeline_mode<synchronous>, transform_indices = @transform_1, window_bounds = array<i64: 36, 128>}, {transform_indices = @transform_2, window_bounds = array<i64: 1, 1, 128>}, {transform_indices = @transform_3, window_bounds = array<i64: 1, 1, 128>}]} {
    %c0 = arith.constant 0 : index
    %c0_0 = arith.constant 0 : index
    %c0_1 = arith.constant 0 : index
    %c0_2 = arith.constant 0 : index
    %0 = vector.load %arg1[%c0, %c0_0, %c0_1, %c0_2] : memref<1x18x18x4xbf16, #tpu.memory_space<vmem>>, vector<1x16x16x4xbf16>
    %1 = vector.shape_cast %0 : vector<1x16x16x4xbf16> to vector<16x16x4xbf16>
    %c0_3 = arith.constant 0 : index
    %c0_4 = arith.constant 0 : index
    %c1 = arith.constant 1 : index
    %c0_5 = arith.constant 0 : index
    %2 = vector.load %arg1[%c0_3, %c0_4, %c1, %c0_5] : memref<1x18x18x4xbf16, #tpu.memory_space<vmem>>, vector<1x16x16x4xbf16>
    %3 = vector.shape_cast %2 : vector<1x16x16x4xbf16> to vector<16x16x4xbf16>
    %c0_6 = arith.constant 0 : index
    %c0_7 = arith.constant 0 : index
    %c2 = arith.constant 2 : index
    %c0_8 = arith.constant 0 : index
    %4 = vector.load %arg1[%c0_6, %c0_7, %c2, %c0_8] : memref<1x18x18x4xbf16, #tpu.memory_space<vmem>>, vector<1x16x16x4xbf16>
    %5 = vector.shape_cast %4 : vector<1x16x16x4xbf16> to vector<16x16x4xbf16>
    %c0_9 = arith.constant 0 : index
    %c1_10 = arith.constant 1 : index
    %c0_11 = arith.constant 0 : index
    %c0_12 = arith.constant 0 : index
    %6 = vector.load %arg1[%c0_9, %c1_10, %c0_11, %c0_12] : memref<1x18x18x4xbf16, #tpu.memory_space<vmem>>, vector<1x16x16x4xbf16>
    %7 = vector.shape_cast %6 : vector<1x16x16x4xbf16> to vector<16x16x4xbf16>
    %c0_13 = arith.constant 0 : index
    %c1_14 = arith.constant 1 : index
    %c1_15 = arith.constant 1 : index
    %c0_16 = arith.constant 0 : index
    %8 = vector.load %arg1[%c0_13, %c1_14, %c1_15, %c0_16] : memref<1x18x18x4xbf16, #tpu.memory_space<vmem>>, vector<1x16x16x4xbf16>
    %9 = vector.shape_cast %8 : vector<1x16x16x4xbf16> to vector<16x16x4xbf16>
    %c0_17 = arith.constant 0 : index
    %c1_18 = arith.constant 1 : index
    %c2_19 = arith.constant 2 : index
    %c0_20 = arith.constant 0 : index
    %10 = vector.load %arg1[%c0_17, %c1_18, %c2_19, %c0_20] : memref<1x18x18x4xbf16, #tpu.memory_space<vmem>>, vector<1x16x16x4xbf16>
    %11 = vector.shape_cast %10 : vector<1x16x16x4xbf16> to vector<16x16x4xbf16>
    %c0_21 = arith.constant 0 : index
    %c2_22 = arith.constant 2 : index
    %c0_23 = arith.constant 0 : index
    %c0_24 = arith.constant 0 : index
    %12 = vector.load %arg1[%c0_21, %c2_22, %c0_23, %c0_24] : memref<1x18x18x4xbf16, #tpu.memory_space<vmem>>, vector<1x16x16x4xbf16>
    %13 = vector.shape_cast %12 : vector<1x16x16x4xbf16> to vector<16x16x4xbf16>
    %c0_25 = arith.constant 0 : index
    %c2_26 = arith.constant 2 : index
    %c1_27 = arith.constant 1 : index
    %c0_28 = arith.constant 0 : index
    %14 = vector.load %arg1[%c0_25, %c2_26, %c1_27, %c0_28] : memref<1x18x18x4xbf16, #tpu.memory_space<vmem>>, vector<1x16x16x4xbf16>
    %15 = vector.shape_cast %14 : vector<1x16x16x4xbf16> to vector<16x16x4xbf16>
    %c0_29 = arith.constant 0 : index
    %c2_30 = arith.constant 2 : index
    %c2_31 = arith.constant 2 : index
    %c0_32 = arith.constant 0 : index
    %16 = vector.load %arg1[%c0_29, %c2_30, %c2_31, %c0_32] : memref<1x18x18x4xbf16, #tpu.memory_space<vmem>>, vector<1x16x16x4xbf16>
    %17 = vector.shape_cast %16 : vector<1x16x16x4xbf16> to vector<16x16x4xbf16>
    %18 = tpu.concatenate %1, %3, %5, %7, %9, %11, %13, %15, %17 in 2 : vector<16x16x4xbf16>, vector<16x16x4xbf16>, vector<16x16x4xbf16>, vector<16x16x4xbf16>, vector<16x16x4xbf16>, vector<16x16x4xbf16>, vector<16x16x4xbf16>, vector<16x16x4xbf16>, vector<16x16x4xbf16> -> vector<16x16x36xbf16>
    %19 = vector.shape_cast %18 : vector<16x16x36xbf16> to vector<256x36xbf16>
    %c0_33 = arith.constant 0 : index
    %c0_34 = arith.constant 0 : index
    %20 = vector.load %arg2[%c0_33, %c0_34] : memref<36x128xbf16, #tpu.memory_space<vmem>>, vector<36x128xbf16>
    %cst = arith.constant dense<0.000000e+00> : vector<256x128xf32>
    %21 = tpu.matmul %19, %20, %cst {dimension_numbers = #tpu.dot_dimension_numbers<[1], [0], [0], [1], [0, 0, 1, 1], [], []>} : vector<256x36xbf16>, vector<36x128xbf16>, vector<256x128xf32> -> vector<256x128xf32>
    %cst_35 = arith.constant dense<0.000000e+00> : vector<128xf32>
    %22 = vector.multi_reduction <add>, %21, %cst_35 [0] : vector<256x128xf32> to vector<128xf32>
    %23 = vector.shape_cast %22 : vector<128xf32> to vector<1x128xf32>
    %24 = arith.mulf %21, %21 : vector<256x128xf32>
    %cst_36 = arith.constant dense<0.000000e+00> : vector<128xf32>
    %25 = vector.multi_reduction <add>, %24, %cst_36 [0] : vector<256x128xf32> to vector<128xf32>
    %26 = vector.shape_cast %25 : vector<128xf32> to vector<1x128xf32>
    %27 = vector.shape_cast %23 : vector<1x128xf32> to vector<1x1x128xf32>
    %c0_37 = arith.constant 0 : index
    %c0_38 = arith.constant 0 : index
    %c0_39 = arith.constant 0 : index
    %28 = vector.load %arg3[%c0_37, %c0_38, %c0_39] : memref<1x1x128xf32, #tpu.memory_space<vmem>>, vector<1x1x128xf32>
    tpu.vector_store %arg3[%c0_37, %c0_38, %c0_39], %27 {strides = array<i32>} : memref<1x1x128xf32, #tpu.memory_space<vmem>>, vector<1x1x128xf32>,
    %29 = vector.shape_cast %26 : vector<1x128xf32> to vector<1x1x128xf32>
    %c0_40 = arith.constant 0 : index
    %c0_41 = arith.constant 0 : index
    %c0_42 = arith.constant 0 : index
    %30 = vector.load %arg4[%c0_40, %c0_41, %c0_42] : memref<1x1x128xf32, #tpu.memory_space<vmem>>, vector<1x1x128xf32>
    tpu.vector_store %arg4[%c0_40, %c0_41, %c0_42], %29 {strides = array<i32>} : memref<1x1x128xf32, #tpu.memory_space<vmem>>, vector<1x1x128xf32>,
    return
  }
  func.func @transform_0(%arg0: i32) -> (i32, i32, i32, i32) {
    %c0_i32 = arith.constant 0 : i32
    %c0_i32_0 = arith.constant 0 : i32
    %c0_i32_1 = arith.constant 0 : i32
    %c0_i32_2 = arith.constant 0 : i32
    return %arg0, %c0_i32, %c0_i32_0, %c0_i32_1 : i32, i32, i32, i32
  }
  func.func @transform_1(%arg0: i32) -> (i32, i32) {
    %c0_i32 = arith.constant 0 : i32
    %c0_i32_0 = arith.constant 0 : i32
    %c0_i32_1 = arith.constant 0 : i32
    return %c0_i32, %c0_i32_0 : i32, i32
  }
  func.func @transform_2(%arg0: i32) -> (i32, i32, i32) {
    %c0_i32 = arith.constant 0 : i32
    %c0_i32_0 = arith.constant 0 : i32
    %c0_i32_1 = arith.constant 0 : i32
    return %arg0, %c0_i32, %c0_i32_0 : i32, i32, i32
  }
  func.func @transform_3(%arg0: i32) -> (i32, i32, i32) {
    %c0_i32 = arith.constant 0 : i32
    %c0_i32_0 = arith.constant 0 : i32
    %c0_i32_1 = arith.constant 0 : i32
    return %arg0, %c0_i32, %c0_i32_0 : i32, i32, i32
  }
}

</mosaic_0001>

<bundles_post_ra>
// kernel: vgg_block_forward.3
= control target key start
LH: loop header
LB: loop body
LE: loop exit
PB: predicated region body
PF: predicated region fallthrough
CT: control target
= control target key end

     0   :  { %s3152_s15 = smov 0   ;;  %s4490_s0 = inlined_call_operand.vmem [shape: bf16[2,18,18,4], index: 0, kind: input, shape index: {}]   ;;  %s4491_s1 = inlined_call_operand.vmem [shape: bf16[36,128], index: 1, kind: input, shape index: {}]   ;;  %s4492_s2 = inlined_call_operand.vmem [shape: f32[1,128], index: 2, kind: input, shape index: {}]   ;;  %s4493_s3 = inlined_call_operand.vmem [shape: f32[1,128], index: 3, kind: input, shape index: {}]   ;;  %s4494_s4 = inlined_call_operand.vmem [shape: f32[2,256,128], index: 4, kind: output, shape index: {}]  }
   0x1 LB: > { %s2578_s16 = sadd.s32 4294967295, %s3117_s15   ;;  %p2582_p0 = scmp.ge.s32.totalorder %s3117_s15, 1  ;;  %s3117_s15 = sphi %s3152_s15, %s14_s15  }
   0x2   : > { %p162_p1 = scmp.lt.s32.totalorder %s3117_s15, 3 }
   0x4   : > { %p163_p2 = pnand %p2582_p0, %p162_p1 }
   0x6   : > { %166 = sbr.rel (%p163_p2) target bundleno = 615 (0x267), region = 36 }
   0xd   : > { %p188_p3 = scmp.lt.s32.totalorder %s2578_s16, 1  ;;  %s3119_s21 = smov 12   ;;  %vm796_vm0 = vcmask 1046528   ;;  %vm523_vm1 = vsmask.f32 7424  ;;  %vm2218_vm2 = vcmask 1041408  }
   0xe   : > { %s3120_s22 = smov 8   ;;  %s3121_s23 = smov 4   ;;  %vm1901_vm3 = vcmask 31744   ;;  %vm1934_vm4 = vcmask 64512   ;;  %vm1967_vm5 = vcmask 97280   ;;  %vm2000_vm6 = vcmask 130048  }
   0xf   : > { %s4508_s16 = smov (!%p188_p3, %s2578_s16), 1  ;;  %s3122_s24 = smov 16   ;;  %vm2033_vm7 = vcmask 162816   ;;  %vm2066_vm8 = vcmask 195584   ;;  %vm2099_vm9 = vcmask 228352   ;;  %vm2132_vm10 = vcmask 261120  }
  0x10   : > { %s2947_s17 = smul.u32 216, %s4508_s16  ;;  %s3123_s25 = smov 20   ;;  %vm2185_vm11 = vcmask 293888  }
  0x11   : > { %s3124_s28 = smov 24   ;;  %s3125_s5 = smov 28  }
  0x12   : > { %s3166_s20 = scalar_lea.vmem %s4490_s0, %s2947_s17  ;;  %s3126_s6 = smov 32  }
  0x13   : > { %v2602_v0 = vld [vmem:[%s3166_s20 + $0x6c] sm:$0xf]  ;;  %v3170_v1 = vld [vmem:[%s3166_s20 + $0x70] sm:$0xf]  ;;  %v218_v6 = vld [vmem:[%s3166_s20 + $0x64] sm:$0xf] }
  0x14   : > { %v3173_v2 = vcombine.low %v2602_v0, %v3170_v1  ;;  %v2586_v3 = vld [vmem:[%s3166_s20 + $0xc] sm:$0xf]  ;;  %v3177_v4 = vld [vmem:[%s3166_s20 + $0x10] sm:$0xf]  ;;  %v257_v7 = vld [vmem:[%s3166_s20 + $0x60] sm:$0xe] }
  0x15   : > { %v3180_v5 = vcombine.low %v2586_v3, %v3177_v4  ;;  %v3187_v8 = vld [vmem:[%s3166_s20 + $0x68] ss:$0 sps:$4 sm:$0x11]   ;;  %v2754_v9 = vcombine.low %v257_v7, %v218_v6  ;;  %v217_v10 = vld [vmem:[%s3166_s20 + $0x60] sm:$0xf]  ;;  %s2881_s13 = sshll.u32 %s4508_s16, 8 }
  0x16   : > { %973 = vrot.lane.b32.xlu1 %v3173_v2, %s3119_s21  ;;  %v1136_v11 = vshll.u32 %v3173_v2, 16  ;;  %v202_v12 = vld [vmem:[%s3166_s20 + $0x4] sm:$0xf]  ;;  %v822_v14 = vrot.slane %v3187_v8, 1  ;;  %v249_v15 = vld [vmem:[%s3166_s20] sm:$0xe]  ;;  %v3198_v18 = vcombine.low %v217_v10, %v218_v6  ;;  %s4395_s17 = scalar_lea.vmem %s4494_s4, %s2881_s13 }
  0x17   : > { %957 = vrot.lane.b32.xlu0 %v3180_v5, %s3119_s21  ;;  %v821_v13 = vrot.slane %v2754_v9, 1  ;;  %v201_v16 = vld [vmem:[%s3166_s20] sm:$0xf]  ;;  %v1040_v17 = vshll.u32 %v3180_v5, 16  ;;  %v2746_v20 = vcombine.low %v249_v15, %v202_v12  ;;  %v219_v21 = vld [vmem:[%s3166_s20 + $0x6c] sm:$0xf] }
  0x18   : > { %v2971_v19 = vld [vmem:[%s3166_s20 + $0x8] ss:$0 sps:$4 sm:$0x11]   ;;  %v3203_v23 = vcombine.low %v201_v16, %v202_v12  ;;  %v220_v24 = vld [vmem:[%s3166_s20 + $0x70] sm:$0xf]  ;;  %v621_v30 = vshrl.u32 %v3198_v18, 16 }
  0x19   : > { %v823_v22 = vsel %vm796_vm0, %v821_v13, %v822_v14  ;;  %v258_v25 = vld [vmem:[%s3166_s20 + $0x6c] sm:$0xe]  ;;  %v797_v26 = vrot.slane %v2746_v20, 1  ;;  %v798_v27 = vrot.slane %v2971_v19, 1  ;;  %v3210_v31 = vcombine.low %v219_v21, %v220_v24  ;;  %v204_v33 = vld [vmem:[%s3166_s20 + $0x10] sm:$0xf] }
  0x1a   : > { %861 = vrot.lane.b32.xlu1 %v823_v22, %s3120_s22  ;;  %v2975_v28 = vld [vmem:[%s3166_s20 + $0x74] ss:$0 sps:$4 sm:$0x11]   ;;  %v2755_v29 = vcombine.low %v258_v25, %v220_v24  ;;  %v203_v32 = vld [vmem:[%s3166_s20 + $0xc] sm:$0xf]  ;;  %v525_v41 = vshrl.u32 %v3203_v23, 16 }
  0x1b   : > { %v799_v34 = vsel %vm796_vm0, %v797_v26, %v798_v27  ;;  %v825_v36 = vrot.slane %v2975_v28, 1  ;;  %v250_v37 = vld [vmem:[%s3166_s20 + $0xc] sm:$0xe]  ;;  %v3216_v38 = vcombine.low %v203_v32, %v204_v33  ;;  %v2978_v39 = vld [vmem:[%s3166_s20 + $0x14] ss:$0 sps:$4 sm:$0x11]  }
  0x1c   : > { %v824_v35 = vrot.slane %v2755_v29, 1  ;;  %845 = vrot.lane.b32.xlu0 %v799_v34, %s3120_s22  ;;  %v2747_v40 = vcombine.low %v250_v37, %v204_v33  ;;  %v527_v42 = vshll.u32 %v3203_v23, 16  ;;  %v532_v43 = vshll.u32 %v2971_v19, 16  ;;  %v2604_v52 = vld [vmem:[%s3166_s20 + $0x78] sm:$0xf] }
  0x1d   : > { %v537_v45 = vshrl.u32 %v3216_v38, 16  ;;  %v539_v46 = vshll.u32 %v3216_v38, 16  ;;  %v633_v47 = vshrl.u32 %v3210_v31, 16  ;;  %v801_v49 = vrot.slane %v2978_v39, 1  ;;  %v3230_v57 = vld [vmem:[%s3166_s20 + $0x7c] sm:$0xf] }
  0x1e   : > { %v826_v44 = vsel %vm796_vm0, %v824_v35, %v825_v36  ;;  %v800_v48 = vrot.slane %v2747_v40, 1  ;;  %v544_v50 = vshll.u32 %v2978_v39, 16  ;;  %v529_v51 = vrot.slane %v527_v42, 1  ;;  %v2588_v62 = vld [vmem:[%s3166_s20 + $0x18] sm:$0xf] }
  0x1f   : > { %863 = vrot.lane.b32.xlu1 %v826_v44, %s3120_s22  ;;  %v541_v53 = vrot.slane %v539_v46, 1  ;;  %v534_v54 = vrot.slane %v532_v43, 1  ;;  %v635_v55 = vshll.u32 %v3210_v31, 16  ;;  %v640_v56 = vshll.u32 %v2975_v28, 16  ;;  %v3236_v63 = vld [vmem:[%s3166_s20 + $0x1c] sm:$0xf] }
  0x20   : > { %v802_v58 = vsel %vm796_vm0, %v800_v48, %v801_v49  ;;  %v546_v59 = vrot.slane %v544_v50, 1  ;;  %v530_v60 = vor.u32 %v529_v51, %v525_v41  ;;  %v623_v61 = vshll.u32 %v3198_v18, 16  ;;  %v3243_v13 = vld [vmem:[%s3166_s20 + $0x74] ss:$0 sps:$4 sm:$0x11]  }
  0x21   : > { %847 = vrot.lane.b32.xlu0 %v802_v58, %s3120_s22  ;;  %v542_v0 = vor.u32 %v541_v53, %v537_v45  ;;  %v637_v3 = vrot.slane %v635_v55, 1  ;;  %v642_v6 = vrot.slane %v640_v56, 1  ;;  %v628_v7 = vshll.u32 %v3187_v8, 16  ;;  %v3248_v20 = vld [vmem:[%s3166_s20 + $0x14] ss:$0 sps:$4 sm:$0x11]  }
  0x22   : > { %v535_v9 = vsel %vm523_vm1, %v530_v60, %v534_v54  ;;  %v625_v10 = vrot.slane %v623_v61, 1  ;;  %v2771_v12 = vcombine.low %v2604_v52, %v3230_v57  ;;  %v2763_v19 = vcombine.low %v2588_v62, %v3236_v63  ;;  %v3255_v24 = vld [vmem:[%s3166_s20 + $0x80] ss:$0 sps:$4 sm:$0x11]   ;;  %v2642_v40 = vld [vmem:[%s3166_s20 + $0x6c] sm:$0xe] }
  0x23   : > { %v547_v14 = vsel %vm523_vm1, %v542_v0, %v546_v59  ;;  %v638_v15 = vor.u32 %v637_v3, %v633_v47  ;;  %v630_v16 = vrot.slane %v628_v7, 1  ;;  %v1134_v21 = vshrl.u32 %v3173_v2, 16  ;;  %v2634_v43 = vld [vmem:[%s3166_s20 + $0xc] sm:$0xe]  ;;  %v2643_v49 = vld [vmem:[%s3166_s20 + $0x78] sm:$0xe] }
  0x24   : > { %718 = vrot.lane.b32.xlu1 %v547_v14, %s3121_s23  ;;  %v626_v8 = vor.u32 %v625_v10, %v621_v30  ;;  %v1138_v22 = vrot.slane %v1136_v11, 1  ;;  %v1148_v26 = vshll.u32 %v2771_v12, 16  ;;  %v1141_v27 = vshll.u32 %v3243_v13, 16  ;;  %v3266_v11 = vld [vmem:[%s3166_s20 + $0x20] ss:$0 sps:$4 sm:$0x11]  }
  0x25   : > { %716 = vrot.lane.b32.xlu0 %v535_v9, %s3121_s23  ;;  %v643_v25 = vsel %vm523_vm1, %v638_v15, %v642_v6  ;;  %v1038_v28 = vshrl.u32 %v3180_v5, 16  ;;  %v1052_v30 = vshll.u32 %v2763_v19, 16  ;;  %v1042_v32 = vrot.slane %v1040_v17, 1  ;;  %v2635_v53 = vld [vmem:[%s3166_s20 + $0x18] sm:$0xe] }
  0x26   : > { %v631_v29 = vsel %vm523_vm1, %v626_v8, %v630_v16  ;;  %v1045_v2 = vshll.u32 %v3248_v20, 16  ;;  %v1139_v33 = vor.u32 %v1138_v22, %v1134_v21  ;;  %v1143_v34 = vrot.slane %v1141_v27, 1  ;;  %v2666_v54 = vld [vmem:[%s3166_s20 + $0x78] sm:$0xf]  ;;  %v3293_v60 = vld [vmem:[%s3166_s20 + $0x1c] sm:$0xf] }
  0x27   : > { %v1043_v35 = vor.u32 %v1042_v32, %v1038_v28  ;;  %v1146_v36 = vshrl.u32 %v2771_v12, 16  ;;  %v1150_v37 = vrot.slane %v1148_v26, 1  ;;  %v1153_v39 = vshll.u32 %v3255_v24, 16  ;;  %v2650_v55 = vld [vmem:[%s3166_s20 + $0x18] sm:$0xf] }
  0x28   : > { %734 = vrot.lane.b32.xlu1 %v643_v25, %s3121_s23  ;;  %v1047_v5 = vrot.slane %v1045_v2, 1  ;;  %v1050_v17 = vshrl.u32 %v2763_v19, 16  ;;  %v1054_v41 = vrot.slane %v1052_v30, 1  ;;  %v1057_v42 = vshll.u32 %v3266_v11, 16  ;;  %v2668_v7 = vld [vmem:[%s3166_s20 + $0x84] sm:$0xf] }
  0x29   : > { %732 = vrot.lane.b32.xlu0 %v631_v29, %s3121_s23  ;;  %v2802_v44 = vcombine.low %v2642_v40, %v3170_v1  ;;  %v1144_v45 = vsel %vm523_vm1, %v1139_v33, %v1143_v34  ;;  %v1151_v46 = vor.u32 %v1150_v37, %v1146_v36  ;;  %v1155_v47 = vrot.slane %v1153_v39, 1  ;;  %v3285_v1 = vld [vmem:[%s3166_s20 + $0x7c] sm:$0xf]  ;;  %v3303_v9 = vld [vmem:[%s3166_s20 + $0x88] sm:$0xf] }
  0x2a   : > { %v2794_v48 = vcombine.low %v2634_v43, %v3177_v4  ;;  %v1048_v50 = vsel %vm523_vm1, %v1043_v35, %v1047_v5  ;;  %v1055_v51 = vor.u32 %v1054_v41, %v1050_v17  ;;  %v1059_v52 = vrot.slane %v1057_v42, 1  ;;  %v3310_v14 = vld [vmem:[%s3166_s20 + $0x28] sm:$0xf]  ;;  %v3316_v21 = vld [vmem:[%s3166_s20 + $0x80] ss:$0 sps:$4 sm:$0x11]  }
  0x2b   : > { %v2803_v56 = vcombine.low %v2643_v49, %v3230_v57  ;;  %v1156_v4 = vsel %vm523_vm1, %v1151_v46, %v1155_v47  ;;  %v1333_v58 = vrot.slane %v2802_v44, 1  ;;  %v1334_v59 = vrot.slane %v3243_v13, 1  ;;  %v2652_v13 = vld [vmem:[%s3166_s20 + $0x24] sm:$0xf]  ;;  %v221_v37 = vld [vmem:[%s3166_s20 + $0x78] sm:$0xf] }
  0x2c   : > { %975 = vrot.lane.b32.xlu1 %v2771_v12, %s3119_s21  ;;  %v2795_v61 = vcombine.low %v2635_v53, %v3236_v63  ;;  %v1060_v62 = vsel %vm523_vm1, %v1055_v51, %v1059_v52  ;;  %v1309_v0 = vrot.slane %v2794_v48, 1  ;;  %v1310_v3 = vrot.slane %v3248_v20, 1  ;;  %v3323_v26 = vld [vmem:[%s3166_s20 + $0x20] ss:$0 sps:$4 sm:$0x11]  }
  0x2d   : > { %959 = vrot.lane.b32.xlu0 %v2763_v19, %s3119_s21  ;;  %v2818_v57 = vcombine.low %v2666_v54, %v3285_v1  ;;  %v2810_v6 = vcombine.low %v2650_v55, %v3293_v60  ;;  %v1335_v10 = vsel %vm796_vm0, %v1333_v58, %v1334_v59  ;;  %v1336_v63 = vrot.slane %v2803_v56, 1  ;;  %v3329_v34 = vld [vmem:[%s3166_s20 + $0x8c] ss:$0 sps:$4 sm:$0x11]   ;;  %v3338_v39 = vld [vmem:[%s3166_s20 + $0x7c] sm:$0xf] }
  0x2e   : > { %v1337_v12 = vrot.slane %v3255_v24, 1  ;;  %v1311_v15 = vsel %vm796_vm0, %v1309_v0, %v1310_v3  ;;  %v1312_v16 = vrot.slane %v2795_v61, 1  ;;  %v1313_v19 = vrot.slane %v3266_v11, 1  ;;  %v3334_v36 = vld [vmem:[%s3166_s20 + $0x2c] ss:$0 sps:$4 sm:$0x11]  }
  0x2f   : > { %v1648_v20 = vshll.u32 %v2818_v57, 16  ;;  %v2819_v8 = vcombine.low %v2668_v7, %v3303_v9  ;;  %v1552_v22 = vshll.u32 %v2810_v6, 16  ;;  %v2811_v24 = vcombine.low %v2652_v13, %v3310_v14  ;;  %v205_v40 = vld [vmem:[%s3166_s20 + $0x18] sm:$0xf]  ;;  %v3342_v17 = vld [vmem:[%s3166_s20 + $0x1c] sm:$0xf] }
  0x30   : > { %1245 = vrot.lane.b32.xlu1 %v1144_v45, %s3122_s24  ;;  %v1338_v25 = vsel %vm796_vm0, %v1336_v63, %v1337_v12  ;;  %v1314_v27 = vsel %vm796_vm0, %v1312_v16, %v1313_v19  ;;  %v1646_v29 = vshrl.u32 %v2818_v57, 16  ;;  %v1653_v32 = vshll.u32 %v3316_v21, 16  ;;  %v3060_v41 = vld [vmem:[%s4491_s1] sm:$0xff]   ;;  %v2706_v42 = vld [vmem:[%s3166_s20 + $0x78] sm:$0xe]  ;;  %v3065_v56 = vld [vmem:[%s4491_s1 + $0x8] sm:$0xff]  }
  0x31   : > { %1229 = vrot.lane.b32.xlu0 %v1048_v50, %s3122_s24  ;;  %v1660_v28 = vshll.u32 %v2819_v8, 16  ;;  %v1650_v30 = vrot.slane %v1648_v20, 1  ;;  %v1564_v2 = vshll.u32 %v2811_v24, 16  ;;  %v1550_v11 = vshrl.u32 %v2810_v6, 16  ;;  %v2698_v47 = vld [vmem:[%s3166_s20 + $0x18] sm:$0xe]  ;;  %2901 = vmatprep.subr.bf16.mxu0 %v3060_v41 }
  0x32   : > { %v1554_v33 = vrot.slane %v1552_v22, 1  ;;  %v1557_v35 = vshll.u32 %v3323_v26, 16  ;;  %v1655_v43 = vrot.slane %v1653_v32, 1  ;;  %v1658_v44 = vshrl.u32 %v2819_v8, 16  ;;  %2939 = vmatprep.subr.bf16.mxu1 %v3060_v41  ;;  %2902 = vmatpush3.bf16.msra.mxu0 %v3060_v41  ;;  %v223_v7 = vld [vmem:[%s3166_s20 + $0x84] sm:$0xf] }
  0x33   : > { %v1651_v5 = vor.u32 %v1650_v30, %v1646_v29  ;;  %v1662_v45 = vrot.slane %v1660_v28, 1  ;;  %v1665_v46 = vshll.u32 %v3329_v34, 16  ;;  %v1562_v48 = vshrl.u32 %v2811_v24, 16  ;;  %2942 = vmatpush3.bf16.msra.mxu1 %v3060_v41  ;;  %v3366_v61 = vld [vmem:[%s3166_s20 + $0x80] ss:$0 sps:$4 sm:$0x11]   ;;  %2903 = vmatprep.subr.bf16.mxu0 %v3065_v56 }
  0x34   : > { %1247 = vrot.lane.b32.xlu1 %v1156_v4, %s3122_s24  ;;  %v1566_v49 = vrot.slane %v1564_v2, 1  ;;  %v1569_v50 = vshll.u32 %v3334_v36, 16  ;;  %v3354_v51 = vcombine.low %v221_v37, %v3338_v39  ;;  %v1555_v52 = vor.u32 %v1554_v33, %v1550_v11  ;;  %2940 = vmatprep.subr.bf16.mxu1 %v3065_v56  ;;  %v207_v13 = vld [vmem:[%s3166_s20 + $0x24] sm:$0xf] }
  0x35   : > { %1231 = vrot.lane.b32.xlu0 %v1060_v62, %s3122_s24  ;;  %v1559_v53 = vrot.slane %v1557_v35, 1  ;;  %v3357_v54 = vcombine.low %v205_v40, %v3342_v17  ;;  %v2850_v55 = vcombine.low %v2706_v42, %v3285_v1  ;;  %v2842_v4 = vcombine.low %v2698_v47, %v3293_v60  ;;  %v2707_v16 = vld [vmem:[%s3166_s20 + $0x84] sm:$0xe]  ;;  %v3408_v40 = vld [vmem:[%s3166_s20 + $0x8c] ss:$0 sps:$4 sm:$0x11]  }
  0x36   : > { %v1663_v58 = vor.u32 %v1662_v45, %v1658_v44  ;;  %v1667_v59 = vrot.slane %v1665_v46, 1  ;;  %v1656_v1 = vsel %vm523_vm1, %v1651_v5, %v1655_v43  ;;  %v1567_v62 = vor.u32 %v1566_v49, %v1562_v48  ;;  %2904 = vmatpush3.bf16.msra.mxu0 %v3065_v56 }
  0x37   : > { %v1571_v0 = vrot.slane %v1569_v50, 1  ;;  %v647_v3 = vshll.u32 %v3354_v51, 16  ;;  %v1560_v60 = vsel %vm523_vm1, %v1555_v52, %v1559_v53  ;;  %v1845_v63 = vrot.slane %v2850_v55, 1  ;;  %2943 = vmatpush3.bf16.msra.mxu1 %v3065_v56  ;;  %v259_v53 = vld [vmem:[%s3166_s20 + $0x78] sm:$0xe] }
  0x38   : > { %1373 = vrot.lane.b32.xlu1 %v1335_v10, %s3123_s25  ;;  %v3378_v10 = vld [vmem:[%s3166_s20 + $0x88] sm:$0xf]  ;;  %v1846_v12 = vrot.slane %v3316_v21, 1  ;;  %v1668_v19 = vsel %vm523_vm1, %v1663_v58, %v1667_v59  ;;  %v1821_v20 = vrot.slane %v2842_v4, 1  ;;  %v652_v22 = vshll.u32 %v3366_v61, 16 }
  0x39   : > { %1357 = vrot.lane.b32.xlu0 %v1311_v15, %s3123_s25  ;;  %v3383_v15 = vld [vmem:[%s3166_s20 + $0x28] sm:$0xf]  ;;  %v1572_v21 = vsel %vm523_vm1, %v1567_v62, %v1571_v0  ;;  %v3395_v28 = vcombine.low %v223_v7, %v3378_v10  ;;  %v549_v29 = vshrl.u32 %v3357_v54, 16  ;;  %v2851_v2 = vcombine.low %v2707_v16, %v3303_v9  ;;  %v3413_v9 = vld [vmem:[%s3166_s20 + $0x2c] ss:$0 sps:$4 sm:$0x11]  }
  0x3a   : > { %v3400_v32 = vcombine.low %v207_v13, %v3383_v15  ;;  %v654_v33 = vrot.slane %v652_v22, 1  ;;  %v1847_v35 = vsel %vm796_vm0, %v1845_v63, %v1846_v12  ;;  %v1849_v45 = vrot.slane %v3329_v34, 1  ;;  %v252_v63 = vld [vmem:[%s3166_s20 + $0x24] sm:$0xe] }
  0x3b   : > { %v659_v5 = vshll.u32 %v3395_v28, 16  ;;  %v1848_v44 = vrot.slane %v2851_v2, 1  ;;  %v1825_v47 = vrot.slane %v3334_v36, 1  ;;  %v657_v49 = vshrl.u32 %v3395_v28, 16  ;;  %v251_v36 = vld [vmem:[%s3166_s20 + $0x18] sm:$0xe] }
  0x3c   : > { %1375 = vrot.lane.b32.xlu1 %v1338_v25, %s3123_s25  ;;  %v645_v25 = vshrl.u32 %v3354_v51, 16  ;;  %v664_v52 = vshll.u32 %v3408_v40, 16  ;;  %v561_v56 = vshrl.u32 %v3400_v32, 16  ;;  %v568_v4 = vshll.u32 %v3413_v9, 16 }
  0x3d   : > { %1359 = vrot.lane.b32.xlu0 %v1314_v27, %s3123_s25  ;;  %v649_v27 = vrot.slane %v647_v3, 1  ;;  %v661_v50 = vrot.slane %v659_v5, 1  ;;  %v1850_v58 = vsel %vm796_vm0, %v1848_v44, %v1849_v45  ;;  %v2756_v62 = vcombine.low %v259_v53, %v3338_v39  ;;  %v260_v3 = vld [vmem:[%s3166_s20 + $0x84] sm:$0xe] }
  0x3e   : > { %v2748_v0 = vcombine.low %v251_v36, %v3342_v17  ;;  %v570_v7 = vrot.slane %v568_v4, 1  ;;  %v828_v12 = vrot.slane %v3366_v61, 1  ;;  %v2757_v16 = vcombine.low %v260_v3, %v3378_v10 }
  0x3f   : > { %v650_v37 = vor.u32 %v649_v27, %v645_v25  ;;  %v662_v59 = vor.u32 %v661_v50, %v657_v49  ;;  %v827_v17 = vrot.slane %v2756_v62, 1  ;;  %v2749_v61 = vcombine.low %v252_v63, %v3383_v15  ;;  %v3460_v15 = vld [vmem:[%s3166_s20 + $0x94] sm:$0xf]  ;;  %v2636_v62 = vld [vmem:[%s3166_s20 + $0x24] sm:$0xe] }
  0x40   : > { %1485 = vrot.lane.b32.xlu1 %v2818_v57, %s3124_s28  ;;  %v3372_v57 = vld [vmem:[%s3166_s20 + $0x20] ss:$0 sps:$4 sm:$0x11]   ;;  %v830_v10 = vrot.slane %v2757_v16, 1 }
  0x41   : > { %1469 = vrot.lane.b32.xlu0 %v2810_v6, %s3124_s28  ;;  %v551_v6 = vshll.u32 %v3357_v54, 16  ;;  %v655_v48 = vsel %vm523_vm1, %v650_v37, %v654_v33  ;;  %v804_v13 = vrot.slane %v3372_v57, 1  ;;  %v829_v27 = vsel %vm796_vm0, %v827_v17, %v828_v12  ;;  %v2592_v33 = vld [vmem:[%s3166_s20 + $0x30] sm:$0xf] }
  0x42   : > { %v806_v2 = vrot.slane %v2749_v61, 1  ;;  %v2645_v12 = vld [vmem:[%s3166_s20 + $0x90] sm:$0xe] }
  0x43   : > { %v553_v30 = vrot.slane %v551_v6, 1  ;;  %v2805_v61 = vcombine.low %v2645_v12, %v3460_v15 }
  0x44   : > { %1487 = vrot.lane.b32.xlu1 %v2819_v8, %s3124_s28  ;;  %v1822_v8 = vrot.slane %v3323_v26, 1  ;;  %v556_v26 = vshll.u32 %v3372_v57, 16  ;;  %v2590_v57 = vld [vmem:[%s3166_s20 + $0x24] sm:$0xf] }
  0x45   : > { %1471 = vrot.lane.b32.xlu0 %v2811_v24, %s3124_s28  ;;  %v2699_v24 = vld [vmem:[%s3166_s20 + $0x24] sm:$0xe]  ;;  %v554_v42 = vor.u32 %v553_v30, %v549_v29  ;;  %v2608_v30 = vld [vmem:[%s3166_s20 + $0x90] sm:$0xf] }
  0x46   : > { %v2843_v11 = vcombine.low %v2699_v24, %v3310_v14  ;;  %v1823_v41 = vsel %vm796_vm0, %v1821_v20, %v1822_v8  ;;  %v558_v43 = vrot.slane %v556_v26, 1  ;;  %v563_v14 = vshll.u32 %v3400_v32, 16  ;;  %v2606_v20 = vld [vmem:[%s3166_s20 + $0x84] sm:$0xf]  ;;  %v3444_v8 = vld [vmem:[%s3166_s20 + $0x88] sm:$0xf] }
  0x47   : > { %v3450_v24 = vld [vmem:[%s3166_s20 + $0x28] sm:$0xf]  ;;  %v2772_v25 = vcombine.low %v2606_v20, %v3444_v8 }
  0x48   : > { %1757 = vrot.lane.b32.xlu1 %v1656_v1, %s3125_s5  ;;  %v1824_v46 = vrot.slane %v2843_v11, 1  ;;  %v559_v55 = vsel %vm523_vm1, %v554_v42, %v558_v43  ;;  %v565_v34 = vrot.slane %v563_v14, 1  ;;  %v666_v1 = vrot.slane %v664_v52, 1  ;;  %v3020_v43 = vld [vmem:[%s3166_s20 + $0x8c] ss:$0 sps:$4 sm:$0x11]  }
  0x49   : > { %1741 = vrot.lane.b32.xlu0 %v1560_v60, %s3125_s5  ;;  %v2764_v29 = vcombine.low %v2590_v57, %v3450_v24  ;;  %v807_v11 = vrot.slane %v3413_v9, 1  ;;  %v1160_v37 = vshll.u32 %v2772_v25, 16  ;;  %v3476_v14 = vld [vmem:[%s3166_s20 + $0x2c] ss:$0 sps:$4 sm:$0x11]   ;;  %v1158_v45 = vshrl.u32 %v2772_v25, 16 }
  0x4a   : > { %v1826_v60 = vsel %vm796_vm0, %v1824_v46, %v1825_v47  ;;  %v566_v6 = vor.u32 %v565_v34, %v561_v56  ;;  %v667_v39 = vsel %vm523_vm1, %v662_v59, %v666_v1  ;;  %v1165_v49 = vshll.u32 %v3020_v43, 16  ;;  %v3481_v52 = vld [vmem:[%s3166_s20 + $0x98] ss:$0 sps:$4 sm:$0x11]   ;;  %v2644_v56 = vld [vmem:[%s3166_s20 + $0x84] sm:$0xe] }
  0x4b   : > { %v808_v9 = vsel %vm796_vm0, %v806_v2, %v807_v11  ;;  %v1162_v46 = vrot.slane %v1160_v37, 1  ;;  %v1062_v47 = vshrl.u32 %v2764_v29, 16  ;;  %v1069_v53 = vshll.u32 %v3476_v14, 16  ;;  %v2670_v57 = vld [vmem:[%s3166_s20 + $0x90] sm:$0xf] }
  0x4c   : > { %1759 = vrot.lane.b32.xlu1 %v1668_v19, %s3125_s5  ;;  %v803_v19 = vrot.slane %v2748_v0, 1  ;;  %v571_v22 = vsel %vm523_vm1, %v566_v6, %v570_v7  ;;  %v1167_v36 = vrot.slane %v1165_v49, 1  ;;  %v1177_v1 = vshll.u32 %v3481_v52, 16  ;;  %v2672_v11 = vld [vmem:[%s3166_s20 + $0x9c] sm:$0xf] }
  0x4d   : > { %1743 = vrot.lane.b32.xlu0 %v1572_v21, %s3125_s5  ;;  %v831_v21 = vrot.slane %v3408_v40, 1  ;;  %v2773_v40 = vcombine.low %v2608_v30, %v3460_v15  ;;  %v1163_v34 = vor.u32 %v1162_v46, %v1158_v45  ;;  %v1071_v0 = vrot.slane %v1069_v53, 1  ;;  %v3514_v15 = vld [vmem:[%s3166_s20 + $0x34] sm:$0xf]  ;;  %v3531_v45 = vld [vmem:[%s3166_s20 + $0x40] sm:$0xf] }
  0x4e   : > { %v805_v26 = vsel %vm796_vm0, %v803_v19, %v804_v13  ;;  %v2804_v7 = vcombine.low %v2644_v56, %v3444_v8  ;;  %v2796_v63 = vcombine.low %v2636_v62, %v3450_v24  ;;  %v3505_v24 = vld [vmem:[%s3166_s20 + $0x94] sm:$0xf]  ;;  %v3534_v46 = vld [vmem:[%s3166_s20 + $0x98] ss:$0 sps:$4 sm:$0x11]  }
  0x4f   : > { %v832_v5 = vsel %vm796_vm0, %v830_v10, %v831_v21  ;;  %v1172_v44 = vshll.u32 %v2773_v40, 16  ;;  %v1170_v4 = vshrl.u32 %v2773_v40, 16  ;;  %v1168_v13 = vsel %vm523_vm1, %v1163_v34, %v1167_v36  ;;  %v3540_v49 = vld [vmem:[%s3166_s20 + $0x38] ss:$0 sps:$4 sm:$0x11]  }
  0x50   : > { %1885 = vrot.lane.b32.xlu1 %v1847_v35, %s3126_s6  ;;  %v3466_v35 = vld [vmem:[%s3166_s20 + $0x34] sm:$0xf]  ;;  %v1339_v8 = vrot.slane %v2804_v7, 1  ;;  %v1340_v21 = vrot.slane %v3020_v43, 1  ;;  %v2820_v2 = vcombine.low %v2670_v57, %v3505_v24  ;;  %v1581_v62 = vshll.u32 %v3540_v49, 16 }
  0x51   : > { %1869 = vrot.lane.b32.xlu0 %v1823_v41, %s3126_s6  ;;  %v1064_v41 = vshll.u32 %v2764_v29, 16  ;;  %v2765_v42 = vcombine.low %v2592_v33, %v3466_v35  ;;  %v1174_v59 = vrot.slane %v1172_v44, 1  ;;  %v3519_v33 = vld [vmem:[%s3166_s20 + $0xa0] sm:$0xf] }
  0x52   : > { %v1341_v37 = vsel %vm796_vm0, %v1339_v8, %v1340_v21  ;;  %v1672_v44 = vshll.u32 %v2820_v2, 16  ;;  %v1670_v56 = vshrl.u32 %v2820_v2, 16  ;;  %v1583_v8 = vrot.slane %v1581_v62, 1 }
  0x53   : > { %v1066_v50 = vrot.slane %v1064_v41, 1  ;;  %v1074_v3 = vshrl.u32 %v2765_v42, 16  ;;  %v1175_v16 = vor.u32 %v1174_v59, %v1170_v4  ;;  %v1677_v4 = vshll.u32 %v3534_v46, 16  ;;  %v3551_v59 = vld [vmem:[%s3166_s20 + $0x44] ss:$0 sps:$4 sm:$0x11]  }
  0x54   : > { %736 = vrot.lane.b32.xlu1 %v655_v48, %s3121_s23  ;;  %v1076_v48 = vshll.u32 %v2765_v42, 16  ;;  %v1674_v34 = vrot.slane %v1672_v44, 1  ;;  %v2709_v44 = vld [vmem:[%s3166_s20 + $0x9c] sm:$0xe] }
  0x55   : > { %720 = vrot.lane.b32.xlu0 %v559_v55, %s3121_s23  ;;  %v3485_v55 = vld [vmem:[%s3166_s20 + $0x38] ss:$0 sps:$4 sm:$0x11]  }
  0x56   : > { %v1081_v6 = vshll.u32 %v3485_v55, 16  ;;  %v1319_v43 = vrot.slane %v3485_v55, 1  ;;  %v2708_v55 = vld [vmem:[%s3166_s20 + $0x90] sm:$0xe] }
  0x57   : > { %v2852_v7 = vcombine.low %v2708_v55, %v3505_v24  ;;  %v1828_v55 = vrot.slane %v3540_v49, 1 }
  0x58   : > { %1887 = vrot.lane.b32.xlu1 %v1850_v58, %s3126_s6  ;;  %v1067_v58 = vor.u32 %v1066_v50, %v1062_v47  ;;  %v1083_v20 = vrot.slane %v1081_v6, 1  ;;  %v3070_v6 = vld [vmem:[%s4491_s1 + $0x10] ss:$0 sps:$4 sm:$0x33]  }
  0x59   : > { %1871 = vrot.lane.b32.xlu0 %v1826_v60, %s3126_s6  ;;  %v1078_v60 = vrot.slane %v1076_v48, 1  ;;  %2945 = vmatprep.subr.msk.bf16.mxu0 %vm2218_vm2, %v3070_v6 }
  0x5a   : > { %v1072_v17 = vsel %vm523_vm1, %v1067_v58, %v1071_v0  ;;  %v3548_v58 = vld [vmem:[%s3166_s20 + $0xa4] ss:$0 sps:$4 sm:$0x11]   ;;  %v225_v0 = vld [vmem:[%s3166_s20 + $0x90] sm:$0xf]  ;;  %2946 = vmatprep.subr.msk.bf16.mxu1 %vm2218_vm2, %v3070_v6 }
  0x5b   : > { %v1079_v19 = vor.u32 %v1078_v60, %v1074_v3  ;;  %v3557_v60 = vld [vmem:[%s3166_s20 + $0x94] sm:$0xf] }
  0x5c   : > { %738 = vrot.lane.b32.xlu1 %v667_v39, %s3121_s23  ;;  %v1179_v39 = vrot.slane %v1177_v1, 1  ;;  %v3572_v57 = vcombine.low %v225_v0, %v3557_v60 }
  0x5d   : > { %722 = vrot.lane.b32.xlu0 %v571_v22, %s3121_s23  ;;  %v2637_v22 = vld [vmem:[%s3166_s20 + $0x30] sm:$0xe]  ;;  %v1084_v30 = vsel %vm523_vm1, %v1079_v19, %v1083_v20  ;;  %v1689_v19 = vshll.u32 %v3548_v58, 16 }
  0x5e   : > { %v1180_v10 = vsel %vm523_vm1, %v1175_v16, %v1179_v39  ;;  %v3565_v16 = vld [vmem:[%s3166_s20 + $0x34] sm:$0xf]  ;;  %v1679_v39 = vrot.slane %v1677_v4, 1  ;;  %v2700_v20 = vld [vmem:[%s3166_s20 + $0x30] sm:$0xe]  ;;  %4499 = vst [vmem:[#allocation2_spill] sm:$0xff] %v3572_v57 }
  0x60   : > { %865 = vrot.lane.b32.xlu1 %v829_v27, %s3120_s22  ;;  %v1316_v27 = vrot.slane %v3476_v14, 1  ;;  %v2656_v14 = vld [vmem:[%s3166_s20 + $0x3c] sm:$0xf] }
  0x61   : > { %849 = vrot.lane.b32.xlu0 %v805_v26, %s3120_s22  ;;  %v2654_v26 = vld [vmem:[%s3166_s20 + $0x30] sm:$0xf]  ;;  %v2813_v53 = vcombine.low %v2656_v14, %v3531_v45  ;;  %v3596_v14 = vld [vmem:[%s3166_s20 + $0xa0] sm:$0xf] }
  0x63   : > { %v1588_v3 = vshll.u32 %v2813_v53, 16 }
  0x64   : > { %867 = vrot.lane.b32.xlu1 %v832_v5, %s3120_s22  ;;  %v2812_v5 = vcombine.low %v2654_v26, %v3514_v15  ;;  %v3581_v26 = vld [vmem:[%s3166_s20 + $0x98] ss:$0 sps:$4 sm:$0x11]  }
  0x65   : > { %851 = vrot.lane.b32.xlu0 %v808_v9, %s3120_s22  ;;  %v2821_v9 = vcombine.low %v2672_v11, %v3519_v33  ;;  %v1590_v24 = vrot.slane %v1588_v3, 1  ;;  %v1851_v11 = vrot.slane %v2852_v7, 1  ;;  %v676_v4 = vshll.u32 %v3581_v26, 16 }
  0x66   : > { %v1576_v48 = vshll.u32 %v2812_v5, 16  ;;  %v1574_v36 = vshrl.u32 %v2812_v5, 16  ;;  %v2853_v7 = vcombine.low %v2709_v44, %v3519_v33 }
  0x67   : > { %v1682_v12 = vshrl.u32 %v2821_v9, 16 }
  0x68   : > { %977 = vrot.lane.b32.xlu1 %v2772_v25, %s3119_s21  ;;  %v1315_v25 = vrot.slane %v2796_v63, 1  ;;  %v1578_v1 = vrot.slane %v1576_v48, 1  ;;  %v1675_v63 = vor.u32 %v1674_v34, %v1670_v56  ;;  %v3601_v48 = vld [vmem:[%s3166_s20 + $0x40] sm:$0xf]  ;;  %v669_v56 = vshrl.u32 %v3572_v57, 16 }
  0x69   : > { %961 = vrot.lane.b32.xlu0 %v2764_v29, %s3119_s21  ;;  %v2797_v29 = vcombine.low %v2637_v22, %v3466_v35  ;;  %v1342_v35 = vrot.slane %v2805_v61, 1  ;;  %v1586_v61 = vshrl.u32 %v2813_v53, 16 }
  0x6a   : > { %v1317_v41 = vsel %vm796_vm0, %v1315_v25, %v1316_v27  ;;  %v1579_v22 = vor.u32 %v1578_v1, %v1574_v36  ;;  %v2220_v25 = vsel %vm2218_vm2, %v3070_v6, 0  ;;  %v2844_v27 = vcombine.low %v2700_v20, %v3514_v15 }
  0x6b   : > { %2906 = vmatpush3.bf16.msra.mxu0 %v2220_v25  ;;  %2944 = vmatpush3.bf16.msra.mxu1 %v2220_v25  ;;  %v671_v15 = vshll.u32 %v3572_v57, 16  ;;  %v1855_v25 = vrot.slane %v3548_v58, 1 }
  0x6c   : > { %979 = vrot.lane.b32.xlu1 %v2773_v40, %s3119_s21  ;;  %v1343_v40 = vrot.slane %v3481_v52, 1  ;;  %v1684_v52 = vshll.u32 %v2821_v9, 16 }
  0x6d   : > { %963 = vrot.lane.b32.xlu0 %v2765_v42, %s3119_s21  ;;  %v1318_v42 = vrot.slane %v2797_v29, 1  ;;  %v673_v34 = vrot.slane %v671_v15, 1  ;;  %v261_v15 = vld [vmem:[%s3166_s20 + $0x90] sm:$0xe] }
  0x6e   : > { %v1344_v47 = vsel %vm796_vm0, %v1342_v35, %v1343_v40  ;;  %v3588_v35 = vld [vmem:[%s3166_s20 + $0x38] ss:$0 sps:$4 sm:$0x11]   ;;  %v1584_v40 = vsel %vm523_vm1, %v1579_v22, %v1583_v8 }
  0x6f   : > { %v1320_v50 = vsel %vm796_vm0, %v1318_v42, %v1319_v43  ;;  %v580_v36 = vshll.u32 %v3588_v35, 16 }
  0x70   : > { %1249 = vrot.lane.b32.xlu1 %v1168_v13, %s3122_s24  ;;  %v209_v13 = vld [vmem:[%s3166_s20 + $0x30] sm:$0xf] }
  0x71   : > { %1233 = vrot.lane.b32.xlu0 %v1072_v17, %s3122_s24  ;;  %v1686_v17 = vrot.slane %v1684_v52, 1  ;;  %v3576_v21 = vcombine.low %v209_v13, %v3565_v16  ;;  %v674_v13 = vor.u32 %v673_v34, %v669_v56 }
  0x73   : > { %4500 = vst [vmem:[#allocation3_spill] sm:$0xff] %v3576_v21  ;;  %v1687_v29 = vor.u32 %v1686_v17, %v1682_v12  ;;  %v575_v43 = vshll.u32 %v3576_v21, 16  ;;  %v573_v0 = vshrl.u32 %v3576_v21, 16  ;;  %v582_v17 = vrot.slane %v580_v36, 1 }
  0x74   : > { %1251 = vrot.lane.b32.xlu1 %v1180_v10, %s3122_s24  ;;  %v1593_v10 = vshll.u32 %v3551_v59, 16 }
  0x75   : > { %1235 = vrot.lane.b32.xlu0 %v1084_v30, %s3122_s24  ;;  %v1691_v30 = vrot.slane %v1689_v19, 1  ;;  %v577_v3 = vrot.slane %v575_v43, 1  ;;  %v3629_v19 = vld [vmem:[%s3166_s20 + $0xa4] ss:$0 sps:$4 sm:$0x11]  }
  0x76   : > { %v1595_v42 = vrot.slane %v1593_v10, 1  ;;  %v1854_v10 = vrot.slane %v2853_v7, 1  ;;  %v253_v43 = vld [vmem:[%s3166_s20 + $0x30] sm:$0xe] }
  0x77   : > { %v1692_v52 = vsel %vm523_vm1, %v1687_v29, %v1691_v30  ;;  %v578_v8 = vor.u32 %v577_v3, %v573_v0  ;;  %v1831_v29 = vrot.slane %v3551_v59, 1  ;;  %v2750_v34 = vcombine.low %v253_v43, %v3565_v16  ;;  %v2610_v3 = vld [vmem:[%s3166_s20 + $0x9c] sm:$0xf] }
  0x78   : > { %1377 = vrot.lane.b32.xlu1 %v1341_v37, %s3123_s25  ;;  %v1852_v37 = vrot.slane %v3534_v46, 1  ;;  %v2701_v46 = vld [vmem:[%s3166_s20 + $0x3c] sm:$0xe]  ;;  %v1856_v44 = vsel %vm796_vm0, %v1854_v10, %v1855_v25  ;;  %v834_v0 = vrot.slane %v3581_v26, 1  ;;  %v2612_v25 = vld [vmem:[%s3166_s20 + $0xa8] sm:$0xf] }
  0x79   : > { %1361 = vrot.lane.b32.xlu0 %v1317_v41, %s3123_s25  ;;  %v1591_v41 = vor.u32 %v1590_v24, %v1586_v61 }
  0x7a   : > { %v1853_v12 = vsel %vm796_vm0, %v1851_v11, %v1852_v37  ;;  %v688_v37 = vshll.u32 %v3629_v19, 16 }
  0x7b   : > { %v1596_v62 = vsel %vm523_vm1, %v1591_v41, %v1595_v42 }
  0x7c   : > { %1379 = vrot.lane.b32.xlu1 %v1344_v47, %s3123_s25  ;;  %v211_v47 = vld [vmem:[%s3166_s20 + $0x3c] sm:$0xf] }
  0x7d   : > { %1363 = vrot.lane.b32.xlu0 %v1320_v50, %s3123_s25  ;;  %v3619_v49 = vcombine.low %v211_v47, %v3601_v48 }
  0x7f   : > { %4502 = vst [vmem:[#allocation5_spill] sm:$0xff] %v3619_v49  ;;  %v587_v61 = vshll.u32 %v3619_v49, 16  ;;  %v585_v41 = vshrl.u32 %v3619_v49, 16 }
  0x80   : > { %1489 = vrot.lane.b32.xlu1 %v2820_v2, %s3124_s28  ;;  %v1680_v2 = vsel %vm523_vm1, %v1675_v63, %v1679_v39  ;;  %v2845_v63 = vcombine.low %v2701_v46, %v3531_v45  ;;  %v678_v39 = vrot.slane %v676_v4, 1  ;;  %v3636_v45 = vld [vmem:[%s3166_s20 + $0x44] ss:$0 sps:$4 sm:$0x11]   ;;  %v690_v46 = vrot.slane %v688_v37, 1 }
  0x81   : > { %1473 = vrot.lane.b32.xlu0 %v2812_v5, %s3124_s28  ;;  %v589_v42 = vrot.slane %v587_v61, 1  ;;  %v592_v58 = vshll.u32 %v3636_v45, 16  ;;  %v262_v4 = vld [vmem:[%s3166_s20 + $0x9c] sm:$0xe] }
  0x82   : > { %v679_v30 = vsel %vm523_vm1, %v674_v13, %v678_v39  ;;  %v809_v39 = vrot.slane %v2750_v34, 1 }
  0x83   : > { %v594_v56 = vrot.slane %v592_v58, 1 }
  0x84   : > { %1491 = vrot.lane.b32.xlu1 %v2821_v9, %s3124_s28  ;;  %v227_v9 = vld [vmem:[%s3166_s20 + $0x9c] sm:$0xf] }
  0x85   : > { %1475 = vrot.lane.b32.xlu0 %v2813_v53, %s3124_s28  ;;  %v1827_v53 = vrot.slane %v2844_v27, 1  ;;  %v3614_v1 = vcombine.low %v227_v9, %v3596_v14  ;;  %v1830_v27 = vrot.slane %v2845_v63, 1  ;;  %v2758_v9 = vcombine.low %v261_v15, %v3557_v60  ;;  %v254_v60 = vld [vmem:[%s3166_s20 + $0x3c] sm:$0xe]  ;;  %v2596_v15 = vld [vmem:[%s3166_s20 + $0x48] sm:$0xf] }
  0x86   : > { %v2759_v63 = vcombine.low %v262_v4, %v3596_v14  ;;  %v2751_v26 = vcombine.low %v254_v60, %v3601_v48 }
  0x87   : > { %4501 = vst [vmem:[#allocation4_spill] sm:$0xff] %v3614_v1  ;;  %v683_v20 = vshll.u32 %v3614_v1, 16  ;;  %v1829_v33 = vsel %vm796_vm0, %v1827_v53, %v1828_v55  ;;  %v1832_v53 = vsel %vm796_vm0, %v1830_v27, %v1831_v29  ;;  %v590_v55 = vor.u32 %v589_v42, %v585_v41  ;;  %v3695_v27 = vld [vmem:[%s3166_s20 + $0xac] sm:$0xf] }
  0x88   : > { %v3591_v5 = vpop.permute.xlu1 %973  ;;  %1761 = vrot.lane.b32.xlu1 %v1680_v2, %s3125_s5  ;;  %v681_v2 = vshrl.u32 %v3614_v1, 16  ;;  %v836_v10 = vrot.slane %v2759_v63, 1  ;;  %v2775_v41 = vcombine.low %v2612_v25, %v3695_v27  ;;  %v3710_v42 = vld [vmem:[%s3166_s20 + $0xa4] ss:$0 sps:$4 sm:$0x11]  }
  0x89   : > { %v3605_v50 = vpop.permute.xlu0 %957  ;;  %1745 = vrot.lane.b32.xlu0 %v1584_v40, %s3125_s5  ;;  %v685_v11 = vrot.slane %v683_v20, 1  ;;  %v583_v40 = vsel %vm523_vm1, %v578_v8, %v582_v17  ;;  %v595_v13 = vsel %vm523_vm1, %v590_v55, %v594_v56  ;;  %v810_v17 = vrot.slane %v3588_v35, 1  ;;  %v2594_v20 = vld [vmem:[%s3166_s20 + $0x3c] sm:$0xf] }
  0x8a   : > { %v837_v35 = vrot.slane %v3629_v19, 1  ;;  %v1196_v55 = vshll.u32 %v2775_v41, 16  ;;  %v1189_v34 = vshll.u32 %v3710_v42, 16  ;;  %v3733_v63 = vld [vmem:[%s3166_s20 + $0x50] ss:$0 sps:$4 sm:$0x11]  }
  0x8b   : > { %v686_v47 = vor.u32 %v685_v11, %v681_v2  ;;  %v812_v2 = vrot.slane %v2751_v26, 1  ;;  %v813_v11 = vrot.slane %v3636_v45, 1  ;;  %v2646_v26 = vld [vmem:[%s3166_s20 + $0x9c] sm:$0xe] }
  0x8c   : > { %v3621_v6 = vpop.permute.xlu1 %861  ;;  %1763 = vrot.lane.b32.xlu1 %v1692_v52, %s3125_s5  ;;  %v838_v58 = vsel %vm796_vm0, %v836_v10, %v837_v35  ;;  %v1198_v10 = vrot.slane %v1196_v55, 1  ;;  %v2638_v25 = vld [vmem:[%s3166_s20 + $0x3c] sm:$0xe] }
  0x8d   : > { %1747 = vrot.lane.b32.xlu0 %v1596_v62, %s3125_s5  ;;  %v833_v62 = vrot.slane %v2758_v9, 1  ;;  %v691_v7 = vsel %vm523_vm1, %v686_v47, %v690_v46  ;;  %v3715_v9 = vld [vmem:[%s3166_s20 + $0x44] ss:$0 sps:$4 sm:$0x11]  }
  0x8e   : > { %v3632_v22 = vpop.permute.xlu0 %845 }
  0x8f   : > { %v835_v61 = vsel %vm796_vm0, %v833_v62, %v834_v0  ;;  %v3727_v62 = vld [vmem:[%s3166_s20 + $0xb0] ss:$0 sps:$4 sm:$0x11]  }
  0x90   : > { %1889 = vrot.lane.b32.xlu1 %v1853_v12, %s3126_s6  ;;  %v3674_v12 = vld [vmem:[%s3166_s20 + $0xa0] sm:$0xf]  ;;  %v1201_v35 = vshll.u32 %v3727_v62, 16 }
  0x91   : > { %v3640_v24 = vpop.permute.xlu1 %863  ;;  %1873 = vrot.lane.b32.xlu0 %v1829_v33, %s3126_s6  ;;  %v3683_v33 = vld [vmem:[%s3166_s20 + $0x40] sm:$0xf]  ;;  %v2774_v14 = vcombine.low %v2610_v3, %v3674_v12 }
  0x92   : > { %v2766_v48 = vcombine.low %v2594_v20, %v3683_v33  ;;  %v1191_v20 = vrot.slane %v1189_v34, 1  ;;  %v1203_v34 = vrot.slane %v1201_v35, 1 }
  0x93   : > { %v3652_v59 = vpop.permute.xlu0 %847  ;;  %v1184_v19 = vshll.u32 %v2774_v14, 16 }
  0x94   : > { %740 = vrot.lane.b32.xlu1 %v679_v30, %s3121_s23  ;;  %v811_v30 = vsel %vm796_vm0, %v809_v39, %v810_v17  ;;  %v1088_v43 = vshll.u32 %v2766_v48, 16  ;;  %v1086_v4 = vshrl.u32 %v2766_v48, 16  ;;  %v1194_v17 = vshrl.u32 %v2775_v41, 16 }
  0x95   : > { %724 = vrot.lane.b32.xlu0 %v583_v40, %s3121_s23  ;;  %v3705_v40 = vld [vmem:[%s3166_s20 + $0x4c] sm:$0xf]  ;;  %v1186_v56 = vrot.slane %v1184_v19, 1 }
  0x96   : > { %v3659_v52 = vpop.permute.xlu1 %718  ;;  %v2767_v47 = vcombine.low %v2596_v15, %v3705_v40  ;;  %v1090_v60 = vrot.slane %v1088_v43, 1  ;;  %v1105_v15 = vshll.u32 %v3733_v63, 16  ;;  %v3749_v43 = vld [vmem:[%s3166_s20 + $0xac] sm:$0xf] }
  0x97   : > { %v3664_v36 = vpop.permute.xlu0 %716 }
  0x98   : > { %1891 = vrot.lane.b32.xlu1 %v1856_v44, %s3126_s6  ;;  %v814_v44 = vsel %vm796_vm0, %v812_v2, %v813_v11  ;;  %v1100_v3 = vshll.u32 %v2767_v47, 16  ;;  %v1098_v11 = vshrl.u32 %v2767_v47, 16 }
  0x99   : > { %1875 = vrot.lane.b32.xlu0 %v1832_v53, %s3126_s6  ;;  %v1182_v53 = vshrl.u32 %v2774_v14, 16 }
  0x9a   : > { %v3676_v16 = vpop.permute.xlu1 %734 }
  0x9b   : > { %v3685_v8 = vpop.permute.xlu0 %732  ;;  %v1187_v39 = vor.u32 %v1186_v56, %v1182_v53  ;;  %v2647_v53 = vld [vmem:[%s3166_s20 + $0xa8] sm:$0xe]  ;;  %v1199_v56 = vor.u32 %v1198_v10, %v1194_v17  ;;  %v3775_v10 = vld [vmem:[%s3166_s20 + $0xb8] sm:$0xf] }
  0x9c   : > { %742 = vrot.lane.b32.xlu1 %v691_v7, %s3121_s23  ;;  %v1093_v7 = vshll.u32 %v3715_v9, 16  ;;  %v2807_v17 = vcombine.low %v2647_v53, %v3695_v27  ;;  %v3783_v27 = vld [vmem:[%s3166_s20 + $0x58] sm:$0xf] }
  0x9d   : > { %726 = vrot.lane.b32.xlu0 %v595_v13, %s3121_s23  ;;  %v1192_v55 = vsel %vm523_vm1, %v1187_v39, %v1191_v20  ;;  %v3768_v39 = vld [vmem:[%s3166_s20 + $0x4c] sm:$0xf]  ;;  %v1346_v20 = vrot.slane %v3710_v42, 1 }
  0x9e   : > { %v3697_v29 = vpop.permute.xlu1 %975  ;;  %v1095_v2 = vrot.slane %v1093_v7, 1  ;;  %v1107_v7 = vrot.slane %v1105_v15, 1 }
  0x9f   : > { %v3701_v37 = vpop.permute.xlu0 %959 }
  0xa0   : > { %869 = vrot.lane.b32.xlu1 %v835_v61, %s3120_s22  ;;  %v1091_v61 = vor.u32 %v1090_v60, %v1086_v4  ;;  %v2639_v4 = vld [vmem:[%s3166_s20 + $0x48] sm:$0xe] }
  0xa1   : > { %853 = vrot.lane.b32.xlu0 %v811_v30, %s3120_s22  ;;  %v2799_v35 = vcombine.low %v2639_v4, %v3705_v40  ;;  %v3793_v40 = vld [vmem:[%s3166_s20 + $0xb0] ss:$0 sps:$4 sm:$0x11]   ;;  %v1349_v4 = vrot.slane %v3727_v62, 1 }
  0xa2   : > { %v3717_v45 = vpop.permute.xlu1 %1245 }
  0xa3   : > { %v3721_v46 = vpop.permute.xlu0 %1229 }
  0xa4   : > { %871 = vrot.lane.b32.xlu1 %v838_v58, %s3120_s22  ;;  %v2674_v58 = vld [vmem:[%s3166_s20 + $0xa8] sm:$0xf] }
  0xa5   : > { %855 = vrot.lane.b32.xlu0 %v814_v44, %s3120_s22  ;;  %v2798_v44 = vcombine.low %v2638_v25, %v3683_v33  ;;  %v1204_v25 = vsel %vm523_vm1, %v1199_v56, %v1203_v34 }
  0xa6   : > { %v3729_v0 = vpop.permute.xlu1 %1247 }
  0xa7   : > { %v3735_v13 = vpop.permute.xlu0 %1231 }
  0xa8   : > { %981 = vrot.lane.b32.xlu1 %v2774_v14, %s3119_s21  ;;  %v1102_v14 = vrot.slane %v1100_v3, 1  ;;  %v1096_v3 = vsel %vm523_vm1, %v1091_v61, %v1095_v2  ;;  %v2676_v61 = vld [vmem:[%s3166_s20 + $0xb4] sm:$0xf]  ;;  %v1321_v2 = vrot.slane %v2798_v44, 1 }
  0xa9   : > { %965 = vrot.lane.b32.xlu0 %v2766_v48, %s3119_s21  ;;  %v2806_v48 = vcombine.low %v2646_v26, %v3674_v12  ;;  %v3798_v44 = vcombine.low %v2676_v61, %v3775_v10 }
  0xaa   : > { %v3742_v30 = vpop.permute.xlu1 %1373  ;;  %v1103_v12 = vor.u32 %v1102_v14, %v1098_v11  ;;  %v1322_v11 = vrot.slane %v3715_v9, 1  ;;  %v2660_v14 = vld [vmem:[%s3166_s20 + $0x54] sm:$0xf] }
  0xab   : > { %v3745_v19 = vpop.permute.xlu0 %1357  ;;  %v1345_v26 = vrot.slane %v2806_v48, 1  ;;  %v3803_v56 = vcombine.low %v2660_v14, %v3783_v27  ;;  %v1708_v62 = vshll.u32 %v3798_v44, 16 }
  0xac   : > { %983 = vrot.lane.b32.xlu1 %v2775_v41, %s3119_s21  ;;  %v3762_v41 = vcombine.low %v2674_v58, %v3749_v43  ;;  %v1108_v58 = vsel %vm523_vm1, %v1103_v12, %v1107_v7  ;;  %v1323_v34 = vsel %vm796_vm0, %v1321_v2, %v1322_v11  ;;  %v1325_v12 = vrot.slane %v3733_v63, 1  ;;  %v3818_v63 = vld [vmem:[%s3166_s20 + $0x50] ss:$0 sps:$4 sm:$0x11]  }
  0xad   : > { %967 = vrot.lane.b32.xlu0 %v2767_v47, %s3119_s21  ;;  %v2658_v47 = vld [vmem:[%s3166_s20 + $0x48] sm:$0xf]  ;;  %v1347_v9 = vsel %vm796_vm0, %v1345_v26, %v1346_v20  ;;  %v1701_v20 = vshll.u32 %v3793_v40, 16  ;;  %v3826_v2 = vld [vmem:[%s3166_s20 + $0xbc] ss:$0 sps:$4 sm:$0x11]   ;;  %v1903_v11 = vsel %vm1901_vm3, %v3203_v23, %v3664_v36 }
  0xae   : > { %v3758_v60 = vpop.permute.xlu1 %1375  ;;  %v1696_v42 = vshll.u32 %v3762_v41, 16  ;;  %v3790_v48 = vcombine.low %v2658_v47, %v3768_v39 }
  0xaf   : > { %v3764_v33 = vpop.permute.xlu0 %1359  ;;  %v1703_v1 = vrot.slane %v1701_v20, 1 }
  0xb0   : > { %1253 = vrot.lane.b32.xlu1 %v1192_v55, %s3122_s24  ;;  %v1348_v55 = vrot.slane %v2807_v17, 1  ;;  %v1600_v47 = vshll.u32 %v3790_v48, 16  ;;  %v1694_v17 = vshrl.u32 %v3762_v41, 16  ;;  %v1698_v26 = vrot.slane %v1696_v42, 1 }
  0xb1   : > { %1237 = vrot.lane.b32.xlu0 %v1096_v3, %s3122_s24  ;;  %v1324_v3 = vrot.slane %v2799_v35, 1  ;;  %v1919_v35 = vsel %vm1901_vm3, %v3198_v18, %v3685_v8  ;;  %v2710_v18 = vld [vmem:[%s3166_s20 + $0xa8] sm:$0xe]  ;;  %v3836_v8 = vld [vmem:[%s3166_s20 + $0x5c] ss:$0 sps:$4 sm:$0x11]  }
  0xb2   : > { %v3785_v15 = vpop.permute.xlu1 %1485  ;;  %v1350_v14 = vsel %vm796_vm0, %v1348_v55, %v1349_v4  ;;  %v1699_v49 = vor.u32 %v1698_v26, %v1694_v17  ;;  %v1598_v21 = vshrl.u32 %v3790_v48, 16  ;;  %v1602_v57 = vrot.slane %v1600_v47, 1 }
  0xb3   : > { %v3795_v53 = vpop.permute.xlu0 %1469  ;;  %v1952_v23 = vsel %vm1934_vm4, %v1919_v35, %v3621_v6  ;;  %v1706_v55 = vshrl.u32 %v3798_v44, 16  ;;  %v1710_v4 = vrot.slane %v1708_v62, 1  ;;  %v1610_v47 = vshrl.u32 %v3803_v56, 16 }
  0xb4   : > { %1255 = vrot.lane.b32.xlu1 %v1204_v25, %s3122_s24  ;;  %v1612_v25 = vshll.u32 %v3803_v56, 16  ;;  %v2854_v6 = vcombine.low %v2710_v18, %v3749_v43  ;;  %v1617_v20 = vshll.u32 %v3836_v8, 16  ;;  %v1704_v35 = vsel %vm523_vm1, %v1699_v49, %v1703_v1 }
  0xb5   : > { %1239 = vrot.lane.b32.xlu0 %v1108_v58, %s3122_s24  ;;  %v1326_v58 = vsel %vm796_vm0, %v1324_v3, %v1325_v12  ;;  %v1936_v3 = vsel %vm1934_vm4, %v1903_v11, %v3632_v22  ;;  %v1713_v12 = vshll.u32 %v3826_v2, 16  ;;  %v1985_v22 = vsel %vm1967_vm5, %v1952_v23, %v3591_v5  ;;  %v229_v11 = vld [vmem:[%s3166_s20 + $0xa8] sm:$0xf]  ;;  %v3870_v23 = vld [vmem:[%s3166_s20 + $0x4c] sm:$0xf] }
  0xb6   : > { %v3809_v7 = vpop.permute.xlu1 %1487  ;;  %v1614_v17 = vrot.slane %v1612_v25, 1  ;;  %v1603_v25 = vor.u32 %v1602_v57, %v1598_v21  ;;  %v2018_v43 = vsel %vm2000_vm6, %v1985_v22, %v3717_v45  ;;  %v213_v5 = vld [vmem:[%s3166_s20 + $0x48] sm:$0xf]  ;;  %v231_v22 = vld [vmem:[%s3166_s20 + $0xb4] sm:$0xf] }
  0xb7   : > { %v3814_v61 = vpop.permute.xlu0 %1471  ;;  %v2051_v57 = vsel %vm2033_vm7, %v2018_v43, %v3742_v30  ;;  %v1715_v21 = vrot.slane %v1713_v12, 1  ;;  %v1921_v30 = vsel %vm1901_vm3, %v3210_v31, %v3676_v16  ;;  %v1857_v31 = vrot.slane %v2854_v6, 1  ;;  %v3902_v16 = vld [vmem:[%s3166_s20 + $0xb0] ss:$0 sps:$4 sm:$0x11]  }
  0xb8   : > { %1381 = vrot.lane.b32.xlu1 %v1347_v9, %s3123_s25  ;;  %v2702_v9 = vld [vmem:[%s3166_s20 + $0x48] sm:$0xe]  ;;  %v1615_v49 = vor.u32 %v1614_v17, %v1610_v47  ;;  %v2084_v45 = vsel %vm2066_vm8, %v2051_v57, %v3785_v15  ;;  %v3894_v15 = vcombine.low %v213_v5, %v3870_v23  ;;  %v1954_v47 = vsel %vm1934_vm4, %v1921_v30, %v3640_v24 }
  0xb9   : > { %1365 = vrot.lane.b32.xlu0 %v1323_v34, %s3123_s25  ;;  %v1605_v34 = vshll.u32 %v3818_v63, 16  ;;  %v2846_v26 = vcombine.low %v2702_v9, %v3768_v39  ;;  %v1969_v39 = vsel %vm1967_vm5, %v1936_v3, %v3605_v50  ;;  %v1711_v9 = vor.u32 %v1710_v4, %v1706_v55 }
  0xba   : > { %v1758_v42 = vpop.permute.xlu1 %1757  ;;  %v2002_v1 = vsel %vm2000_vm6, %v1969_v39, %v3721_v46  ;;  %v1834_v17 = vrot.slane %v3818_v63, 1  ;;  %v700_v43 = vshll.u32 %v3902_v16, 16  ;;  %v215_v39 = vld [vmem:[%s3166_s20 + $0x54] sm:$0xf] }
  0xbb   : > { %v1742_v36 = vpop.permute.xlu0 %1741  ;;  %v1607_v18 = vrot.slane %v1605_v34, 1  ;;  %v2035_v50 = vsel %vm2033_vm7, %v2002_v1, %v3745_v19  ;;  %v1619_v34 = vrot.slane %v1617_v20, 1  ;;  %v2117_v19 = vsel %vm2099_vm9, %v2084_v45, %v1758_v42 }
  0xbc   : > { %1383 = vrot.lane.b32.xlu1 %v1350_v14, %s3123_s25  ;;  %v3860_v14 = vld [vmem:[%s3166_s20 + $0xac] sm:$0xf]  ;;  %v599_v20 = vshll.u32 %v3894_v15, 16 }
  0xbd   : > { %1367 = vrot.lane.b32.xlu0 %v1326_v58, %s3123_s25  ;;  %v3885_v46 = vcombine.low %v229_v11, %v3860_v14  ;;  %v1608_v42 = vsel %vm523_vm1, %v1603_v25, %v1607_v18  ;;  %v3931_v25 = vld [vmem:[%s3166_s20 + $0xb8] sm:$0xf] }
  0xbe   : > { %v3855_v62 = vpop.permute.xlu1 %1759  ;;  %v3943_v18 = vld [vmem:[%s3166_s20 + $0x58] sm:$0xf] }
  0xbf   : > { %v3866_v58 = vpop.permute.xlu0 %1743  ;;  %v695_v6 = vshll.u32 %v3885_v46, 16 }
  0xc0   : > { %1493 = vrot.lane.b32.xlu1 %v3762_v41, %s3124_s28  ;;  %v2068_v41 = vsel %vm2066_vm8, %v2035_v50, %v3795_v53  ;;  %v3960_v50 = vcombine.low %v231_v22, %v3931_v25 }
  0xc1   : > { %1477 = vrot.lane.b32.xlu0 %v3790_v48, %s3124_s28  ;;  %v1905_v48 = vsel %vm1901_vm3, %v3216_v38, %v3659_v52  ;;  %v2101_v4 = vsel %vm2099_vm9, %v2068_v41, %v1742_v36  ;;  %v1858_v38 = vrot.slane %v3793_v40, 1  ;;  %v1833_v52 = vrot.slane %v2846_v26, 1  ;;  %v3911_v36 = vld [vmem:[%s3166_s20 + $0x50] ss:$0 sps:$4 sm:$0x11]  }
  0xc2   : > { %v1886_v55 = vpop.permute.xlu1 %1885  ;;  %v1987_v40 = vsel %vm1967_vm5, %v1954_v47, %v3697_v29  ;;  %v1938_v26 = vsel %vm1934_vm4, %v1905_v48, %v3652_v59  ;;  %v693_v59 = vshrl.u32 %v3885_v46, 16  ;;  %v702_v48 = vrot.slane %v700_v43, 1  ;;  %v255_v43 = vld [vmem:[%s3166_s20 + $0x48] sm:$0xe] }
  0xc3   : > { %v1870_v3 = vpop.permute.xlu0 %1869  ;;  %v2150_v12 = vsel %vm2132_vm10, %v2117_v19, %v1886_v55  ;;  %v1971_v63 = vsel %vm1967_vm5, %v1938_v26, %v3701_v37  ;;  %v2020_v29 = vsel %vm2000_vm6, %v1987_v40, %v3729_v0  ;;  %v597_v37 = vshrl.u32 %v3894_v15, 16 }
  0xc4   : > { %1495 = vrot.lane.b32.xlu1 %v3798_v44, %s3124_s28  ;;  %v2134_v53 = vsel %vm2132_vm10, %v2101_v4, %v1870_v3  ;;  %2923 = vmatprep.mubr.msk.bf16.mxu1 %vm2185_vm11, %v2150_v12  ;;  %v1716_v44 = vsel %vm523_vm1, %v1711_v9, %v1715_v21  ;;  %v2004_v9 = vsel %vm2000_vm6, %v1971_v63, %v3735_v13  ;;  %v604_v0 = vshll.u32 %v3911_v36, 16  ;;  %v2711_v21 = vld [vmem:[%s3166_s20 + $0xb4] sm:$0xe]  ;;  %v3981_v4 = vld [vmem:[%s3166_s20 + $0xbc] ss:$0 sps:$4 sm:$0x11]  }
  0xc5   : > { %1479 = vrot.lane.b32.xlu0 %v3803_v56, %s3124_s28  ;;  %2907 = vmatprep.mubr.msk.bf16.mxu0 %vm2185_vm11, %v2134_v53  ;;  %v1620_v56 = vsel %vm523_vm1, %v1615_v49, %v1619_v34  ;;  %v2053_v5 = vsel %vm2033_vm7, %v2020_v29, %v3758_v60  ;;  %v2037_v1 = vsel %vm2033_vm7, %v2004_v9, %v3764_v33  ;;  %v2703_v49 = vld [vmem:[%s3166_s20 + $0x54] sm:$0xe]  ;;  %v697_v13 = vrot.slane %v695_v6, 1 }
  0xc6   : > { %v3925_v24 = vpop.permute.xlu1 %736  ;;  %v2086_v57 = vsel %vm2066_vm8, %v2053_v5, %v3809_v7  ;;  %v2070_v60 = vsel %vm2066_vm8, %v2037_v1, %v3814_v61  ;;  %v601_v33 = vrot.slane %v599_v20, 1  ;;  %v3967_v34 = vcombine.low %v215_v39, %v3943_v18 }
  0xc7   : > { %v3937_v11 = vpop.permute.xlu0 %720  ;;  %v2103_v7 = vsel %vm2099_vm9, %v2070_v60, %v3866_v58  ;;  %v2855_v19 = vcombine.low %v2711_v21, %v3775_v10  ;;  %v2847_v61 = vcombine.low %v2703_v49, %v3783_v27  ;;  %v698_v58 = vor.u32 %v697_v13, %v693_v59  ;;  %v264_v13 = vld [vmem:[%s3166_s20 + $0xb4] sm:$0xe] }
  0xc8   : > { %1765 = vrot.lane.b32.xlu1 %v1704_v35, %s3125_s5  ;;  %v2119_v35 = vsel %vm2099_vm9, %v2086_v57, %v3855_v62  ;;  %v1859_v62 = vsel %vm796_vm0, %v1857_v31, %v1858_v38  ;;  %v707_v10 = vshll.u32 %v3960_v50, 16  ;;  %v1835_v27 = vsel %vm796_vm0, %v1833_v52, %v1834_v17 }
  0xc9   : > { %1749 = vrot.lane.b32.xlu0 %v1608_v42, %s3125_s5  ;;  %v602_v12 = vor.u32 %v601_v33, %v597_v37  ;;  %v606_v53 = vrot.slane %v604_v0, 1  ;;  %v3988_v42 = vld [vmem:[%s3166_s20 + $0x5c] ss:$0 sps:$4 sm:$0x11]   ;;  %v611_v47 = vshll.u32 %v3967_v34, 16  ;;  %v1860_v31 = vrot.slane %v2855_v19, 1 }
  0xca   : > { %v1888_v45 = vpop.permute.xlu1 %1887  ;;  %v1861_v38 = vrot.slane %v3826_v2, 1  ;;  %v1836_v6 = vrot.slane %v2847_v61, 1  ;;  %v1837_v40 = vrot.slane %v3836_v8, 1  ;;  %v703_v52 = vsel %vm523_vm1, %v698_v58, %v702_v48  ;;  %v263_v8 = vld [vmem:[%s3166_s20 + $0xa8] sm:$0xe] }
  0xcb   : > { %v2152_v30 = vsel %vm2132_vm10, %v2119_v35, %v1888_v45  ;;  %v1872_v41 = vpop.permute.xlu0 %1871  ;;  %v705_v17 = vshrl.u32 %v3960_v50, 16  ;;  %v709_v26 = vrot.slane %v707_v10, 1  ;;  %v607_v22 = vsel %vm523_vm1, %v602_v12, %v606_v53  ;;  %v256_v35 = vld [vmem:[%s3166_s20 + $0x54] sm:$0xe] }
  0xcc   : > { %v2136_v55 = vsel %vm2132_vm10, %v2103_v7, %v1872_v41  ;;  %1767 = vrot.lane.b32.xlu1 %v1716_v44, %s3125_s5  ;;  %2924 = vmatmul.mubr.msk.bf16.vlgmr.msra.gmra.mrb[0].mxu1 %vm2185_vm11, %v2152_v30  ;;  %v609_v63 = vshrl.u32 %v3967_v34, 16  ;;  %v613_v29 = vrot.slane %v611_v47, 1  ;;  %v616_v2 = vshll.u32 %v3988_v42, 16  ;;  %v2598_v48 = vld [vmem:[%s3166_s20 + $0x54] sm:$0xf] }
  0xcd   : > { %1751 = vrot.lane.b32.xlu0 %v1620_v56, %s3125_s5  ;;  %2908 = vmatmul.mubr.msk.bf16.vlgmr.msra.gmra.mrb[0].mxu0 %vm2185_vm11, %v2136_v55  ;;  %v712_v56 = vshll.u32 %v3981_v4, 16  ;;  %v1862_v39 = vsel %vm796_vm0, %v1860_v31, %v1861_v38  ;;  %v710_v9 = vor.u32 %v709_v26, %v705_v17  ;;  %v2760_v37 = vcombine.low %v263_v8, %v3860_v14  ;;  %v2614_v55 = vld [vmem:[%s3166_s20 + $0xb4] sm:$0xf]  ;;  %v2616_v38 = vld [vmem:[%s3166_s20 + $0xc0] sm:$0xf] }
  0xce   : > { %v3984_v3 = vpop.permute.xlu1 %738  ;;  %v1838_v1 = vsel %vm796_vm0, %v1836_v6, %v1837_v40  ;;  %v614_v57 = vor.u32 %v613_v29, %v609_v63  ;;  %v618_v21 = vrot.slane %v616_v2, 1  ;;  %v2752_v49 = vcombine.low %v255_v43, %v3870_v23  ;;  %v4053_v6 = vld [vmem:[%s3166_s20 + $0xc4] sm:$0xf] }
  0xcf   : > { %v3991_v44 = vpop.permute.xlu0 %722  ;;  %v714_v5 = vrot.slane %v712_v56, 1  ;;  %v839_v45 = vrot.slane %v2760_v37, 1  ;;  %v840_v33 = vrot.slane %v3902_v16, 1  ;;  %v2761_v7 = vcombine.low %v264_v13, %v3931_v25  ;;  %v4039_v16 = vld [vmem:[%s3166_s20 + $0x58] sm:$0xf] }
  0xd0   : > { %1893 = vrot.lane.b32.xlu1 %v1859_v62, %s3126_s6  ;;  %v619_v23 = vsel %vm523_vm1, %v614_v57, %v618_v21  ;;  %v815_v41 = vrot.slane %v2752_v49, 1  ;;  %v816_v19 = vrot.slane %v3911_v36, 1  ;;  %v2753_v61 = vcombine.low %v256_v35, %v3943_v18  ;;  %v4033_v62 = vld [vmem:[%s3166_s20 + $0xb8] sm:$0xf]  ;;  %v4059_v17 = vld [vmem:[%s3166_s20 + $0x64] sm:$0xf] }
  0xd1   : > { %1877 = vrot.lane.b32.xlu0 %v1835_v27, %s3126_s6  ;;  %v715_v14 = vsel %vm523_vm1, %v710_v9, %v714_v5  ;;  %v841_v36 = vsel %vm796_vm0, %v839_v45, %v840_v33  ;;  %v842_v25 = vrot.slane %v2761_v7, 1  ;;  %v843_v18 = vrot.slane %v3981_v4, 1  ;;  %v4063_v4 = vld [vmem:[%s3166_s20 + $0xbc] ss:$0 sps:$4 sm:$0x11]  }
  0xd2   : > { %v4000_v20 = vpop.permute.xlu1 %865  ;;  %v2776_v10 = vcombine.low %v2614_v55, %v4033_v62  ;;  %v817_v12 = vsel %vm796_vm0, %v815_v41, %v816_v19  ;;  %v818_v53 = vrot.slane %v2753_v61, 1  ;;  %v819_v47 = vrot.slane %v3988_v42, 1  ;;  %v4087_v35 = vld [vmem:[%s3166_s20 + $0x68] ss:$0 sps:$4 sm:$0x11]  }
  0xd3   : > { %v4006_v59 = vpop.permute.xlu0 %849  ;;  %v2768_v31 = vcombine.low %v2598_v48, %v4039_v16  ;;  %v844_v26 = vsel %vm796_vm0, %v842_v25, %v843_v18  ;;  %v2777_v42 = vcombine.low %v2616_v38, %v4053_v6  ;;  %v1213_v9 = vshll.u32 %v4063_v4, 16 }
  0xd4   : > { %744 = vrot.lane.b32.xlu1 %v703_v52, %s3121_s23  ;;  %v2600_v52 = vld [vmem:[%s3166_s20 + $0x60] sm:$0xf]  ;;  %v1208_v56 = vshll.u32 %v2776_v10, 16  ;;  %v820_v29 = vsel %vm796_vm0, %v818_v53, %v819_v47  ;;  %v1129_v18 = vshll.u32 %v4087_v35, 16  ;;  %v2640_v53 = vld [vmem:[%s3166_s20 + $0x54] sm:$0xe] }
  0xd5   : > { %728 = vrot.lane.b32.xlu0 %v607_v22, %s3121_s23  ;;  %v4069_v22 = vld [vmem:[%s3166_s20 + $0x5c] ss:$0 sps:$4 sm:$0x11]   ;;  %v2769_v2 = vcombine.low %v2600_v52, %v4059_v17  ;;  %v1112_v8 = vshll.u32 %v2768_v31, 16  ;;  %v1220_v57 = vshll.u32 %v2777_v42, 16  ;;  %v1110_v49 = vshrl.u32 %v2768_v31, 16 }
  0xd6   : > { %v4013_v0 = vpop.permute.xlu1 %867  ;;  %v1210_v5 = vrot.slane %v1208_v56, 1  ;;  %v1117_v37 = vshll.u32 %v4069_v22, 16  ;;  %v1215_v33 = vrot.slane %v1213_v9, 1  ;;  %v1218_v7 = vshrl.u32 %v2777_v42, 16  ;;  %v2649_v9 = vld [vmem:[%s3166_s20 + $0xc0] sm:$0xe] }
  0xd7   : > { %v4018_v60 = vpop.permute.xlu0 %851  ;;  %v1114_v13 = vrot.slane %v1112_v8, 1  ;;  %v1222_v19 = vrot.slane %v1220_v57, 1  ;;  %v1131_v8 = vrot.slane %v1129_v18, 1 }
  0xd8   : > { %1895 = vrot.lane.b32.xlu1 %v1862_v39, %s3126_s6  ;;  %v1206_v39 = vshrl.u32 %v2776_v10, 16  ;;  %v1119_v41 = vrot.slane %v1117_v37, 1  ;;  %v4115_v37 = vld [vmem:[%s3166_s20 + $0xc4] sm:$0xf] }
  0xd9   : > { %1879 = vrot.lane.b32.xlu0 %v1838_v1, %s3126_s6  ;;  %v4082_v1 = vld [vmem:[%s3166_s20 + $0xc8] ss:$0 sps:$4 sm:$0x11]   ;;  %v1115_v48 = vor.u32 %v1114_v13, %v1110_v49  ;;  %v2809_v13 = vcombine.low %v2649_v9, %v4053_v6 }
  0xda   : > { %v4026_v30 = vpop.permute.xlu1 %977  ;;  %v1225_v61 = vshll.u32 %v4082_v1, 16  ;;  %v1355_v18 = vrot.slane %v4082_v1, 1 }
  0xdb   : > { %v4035_v58 = vpop.permute.xlu0 %961  ;;  %v1120_v56 = vsel %vm523_vm1, %v1115_v48, %v1119_v41  ;;  %v2680_v48 = vld [vmem:[%s3166_s20 + $0xcc] sm:$0xf] }
  0xdc   : > { %746 = vrot.lane.b32.xlu1 %v715_v14, %s3121_s23  ;;  %v1124_v14 = vshll.u32 %v2769_v2, 16  ;;  %v1227_v38 = vrot.slane %v1225_v61, 1 }
  0xdd   : > { %730 = vrot.lane.b32.xlu0 %v619_v23, %s3121_s23  ;;  %v1211_v23 = vor.u32 %v1210_v5, %v1206_v39  ;;  %v2800_v39 = vcombine.low %v2640_v53, %v4039_v16  ;;  %v2678_v5 = vld [vmem:[%s3166_s20 + $0xc0] sm:$0xf]  ;;  %v1328_v16 = vrot.slane %v4069_v22, 1  ;;  %v4138_v22 = vld [vmem:[%s3166_s20 + $0xd0] sm:$0xf] }
  0xde   : > { %v4046_v27 = vpop.permute.xlu1 %979  ;;  %v1126_v25 = vrot.slane %v1124_v14, 1  ;;  %v2662_v14 = vld [vmem:[%s3166_s20 + $0x60] sm:$0xf] }
  0xdf   : > { %v4055_v40 = vpop.permute.xlu0 %963  ;;  %v1216_v47 = vsel %vm523_vm1, %v1211_v23, %v1215_v33  ;;  %v4125_v33 = vld [vmem:[%s3166_s20 + $0x64] sm:$0xf]  ;;  %v1327_v41 = vrot.slane %v2800_v39, 1  ;;  %v4160_v39 = vld [vmem:[%s3166_s20 + $0x68] ss:$0 sps:$4 sm:$0x11]  }
  0xe0   : > { %873 = vrot.lane.b32.xlu1 %v841_v36, %s3120_s22  ;;  %v1122_v36 = vshrl.u32 %v2769_v2, 16  ;;  %v2816_v6 = vcombine.low %v2662_v14, %v4125_v33  ;;  %v1629_v14 = vshll.u32 %v4160_v39, 16 }
  0xe1   : > { %857 = vrot.lane.b32.xlu0 %v817_v12, %s3120_s22  ;;  %v2648_v12 = vld [vmem:[%s3166_s20 + $0xb4] sm:$0xe]  ;;  %v1329_v53 = vsel %vm796_vm0, %v1327_v41, %v1328_v16  ;;  %v1923_v41 = vsel %vm1901_vm3, %v3354_v51, %v3925_v24 }
  0xe2   : > { %v4071_v63 = vpop.permute.xlu1 %1249  ;;  %v2808_v52 = vcombine.low %v2648_v12, %v4033_v62  ;;  %v1352_v62 = vrot.slane %v4063_v4, 1  ;;  %v1624_v9 = vshll.u32 %v2816_v6, 16 }
  0xe3   : > { %v4075_v43 = vpop.permute.xlu0 %1233 }
  0xe4   : > { %875 = vrot.lane.b32.xlu1 %v844_v26, %s3120_s22  ;;  %v1351_v49 = vrot.slane %v2808_v52, 1 }
  0xe5   : > { %859 = vrot.lane.b32.xlu0 %v820_v29, %s3120_s22  ;;  %v1127_v29 = vor.u32 %v1126_v25, %v1122_v36  ;;  %v4141_v36 = vld [vmem:[%s3166_s20 + $0xc8] ss:$0 sps:$4 sm:$0x11]   ;;  %v1354_v25 = vrot.slane %v2809_v13, 1 }
  0xe6   : > { %v4084_v21 = vpop.permute.xlu1 %1251  ;;  %v1725_v1 = vshll.u32 %v4141_v36, 16 }
  0xe7   : > { %v4089_v45 = vpop.permute.xlu0 %1235  ;;  %v1132_v23 = vsel %vm523_vm1, %v1127_v29, %v1131_v8  ;;  %v4154_v29 = vcombine.low %v2680_v48, %v4138_v22  ;;  %v4157_v8 = vld [vmem:[%s3166_s20 + $0x70] sm:$0xf]  ;;  %v1622_v48 = vshrl.u32 %v2816_v6, 16 }
  0xe8   : > { %985 = vrot.lane.b32.xlu1 %v2776_v10, %s3119_s21 }
  0xe9   : > { %969 = vrot.lane.b32.xlu0 %v2768_v31, %s3119_s21  ;;  %v1223_v31 = vor.u32 %v1222_v19, %v1218_v7  ;;  %v2824_v19 = vcombine.low %v2678_v5, %v4115_v37 }
  0xea   : > { %v4094_v55 = vpop.permute.xlu1 %1377 }
  0xeb   : > { %v4098_v10 = vpop.permute.xlu0 %1361  ;;  %v1228_v57 = vsel %vm523_vm1, %v1223_v31, %v1227_v38  ;;  %v1331_v31 = vrot.slane %v4087_v35, 1  ;;  %v2664_v38 = vld [vmem:[%s3166_s20 + $0x6c] sm:$0xf]  ;;  %v1720_v52 = vshll.u32 %v2824_v19, 16  ;;  %v1356_v35 = vsel %vm796_vm0, %v1354_v25, %v1355_v18 }
  0xec   : > { %987 = vrot.lane.b32.xlu1 %v2777_v42, %s3119_s21  ;;  %v1907_v25 = vsel %vm1901_vm3, %v3357_v54, %v3937_v11  ;;  %v1956_v18 = vsel %vm1934_vm4, %v1923_v41, %v4000_v20 }
  0xed   : > { %971 = vrot.lane.b32.xlu0 %v2769_v2, %s3119_s21  ;;  %v2641_v2 = vld [vmem:[%s3166_s20 + $0x60] sm:$0xe]  ;;  %v1722_v16 = vrot.slane %v1720_v52, 1  ;;  %v1940_v51 = vsel %vm1934_vm4, %v1907_v25, %v4006_v59  ;;  %v1989_v24 = vsel %vm1967_vm5, %v1956_v18, %v4026_v30 }
  0xee   : > { %v4105_v26 = vpop.permute.xlu1 %1379  ;;  %v2801_v4 = vcombine.low %v2641_v2, %v4059_v17  ;;  %v1353_v17 = vsel %vm796_vm0, %v1351_v49, %v1352_v62  ;;  %v4167_v2 = vld [vmem:[%s3166_s20 + $0xd4] ss:$0 sps:$4 sm:$0x11]   ;;  %v1718_v49 = vshrl.u32 %v2824_v19, 16  ;;  %v1973_v20 = vsel %vm1967_vm5, %v1940_v51, %v4035_v58  ;;  %v2712_v58 = vld [vmem:[%s3166_s20 + $0xc0] sm:$0xe] }
  0xef   : > { %v4110_v42 = vpop.permute.xlu0 %1363  ;;  %v2022_v52 = vsel %vm2000_vm6, %v1989_v24, %v4071_v63  ;;  %v2006_v59 = vsel %vm2000_vm6, %v1973_v20, %v4075_v43  ;;  %v2705_v24 = vld [vmem:[%s3166_s20 + $0x6c] sm:$0xe] }
  0xf0   : > { %1257 = vrot.lane.b32.xlu1 %v1216_v47, %s3122_s24  ;;  %v1330_v47 = vrot.slane %v2801_v4, 1  ;;  %v1727_v4 = vrot.slane %v1725_v1, 1  ;;  %v1723_v54 = vor.u32 %v1722_v16, %v1718_v49  ;;  %v2055_v30 = vsel %vm2033_vm7, %v2022_v52, %v4094_v55 }
  0xf1   : > { %1241 = vrot.lane.b32.xlu0 %v1120_v56, %s3122_s24  ;;  %v2039_v63 = vsel %vm2033_vm7, %v2006_v59, %v4098_v10 }
  0xf2   : > { %v4127_v7 = vpop.permute.xlu1 %1489  ;;  %v1332_v62 = vsel %vm796_vm0, %v1330_v47, %v1331_v31  ;;  %v1737_v47 = vshll.u32 %v4167_v2, 16  ;;  %v4188_v31 = vld [vmem:[%s3166_s20 + $0x74] ss:$0 sps:$4 sm:$0x11]   ;;  %v1728_v41 = vsel %vm523_vm1, %v1723_v54, %v1727_v4  ;;  %v1909_v4 = vsel %vm1901_vm3, %v3400_v32, %v3991_v44 }
  0xf3   : > { %v4132_v61 = vpop.permute.xlu0 %1473  ;;  %v2088_v16 = vsel %vm2066_vm8, %v2055_v30, %v4127_v7  ;;  %v1641_v43 = vshll.u32 %v4188_v31, 16 }
  0xf4   : > { %1259 = vrot.lane.b32.xlu1 %v1228_v57, %s3122_s24  ;;  %v4171_v57 = vcombine.low %v2664_v38, %v4157_v8  ;;  %v2072_v55 = vsel %vm2066_vm8, %v2039_v63, %v4132_v61  ;;  %v1925_v61 = vsel %vm1901_vm3, %v3395_v28, %v3984_v3  ;;  %v1942_v3 = vsel %vm1934_vm4, %v1909_v4, %v4018_v60 }
  0xf5   : > { %1243 = vrot.lane.b32.xlu0 %v1132_v23, %s3122_s24  ;;  %v1732_v23 = vshll.u32 %v4154_v29, 16  ;;  %v1643_v44 = vrot.slane %v1641_v43, 1  ;;  %v1864_v60 = vrot.slane %v4141_v36, 1 }
  0xf6   : > { %v4146_v12 = vpop.permute.xlu1 %1491  ;;  %v1636_v11 = vshll.u32 %v4171_v57, 16  ;;  %v1634_v49 = vshrl.u32 %v4171_v57, 16 }
  0xf7   : > { %v4151_v56 = vpop.permute.xlu0 %1475 }
  0xf8   : > { %1385 = vrot.lane.b32.xlu1 %v1353_v17, %s3123_s25  ;;  %v1626_v17 = vrot.slane %v1624_v9, 1  ;;  %v1631_v9 = vrot.slane %v1629_v14, 1  ;;  %v1739_v14 = vrot.slane %v1737_v47, 1  ;;  %v2713_v47 = vld [vmem:[%s3166_s20 + $0xcc] sm:$0xe] }
  0xf9   : > { %1369 = vrot.lane.b32.xlu0 %v1329_v53, %s3123_s25  ;;  %v1730_v53 = vshrl.u32 %v4154_v29, 16  ;;  %v2857_v52 = vcombine.low %v2713_v47, %v4138_v22 }
  0xfa   : > { %v1762_v5 = vpop.permute.xlu1 %1761 }
  0xfb   : > { %v1746_v13 = vpop.permute.xlu0 %1745 }
  0xfc   : > { %1387 = vrot.lane.b32.xlu1 %v1356_v35, %s3123_s25  ;;  %v1734_v35 = vrot.slane %v1732_v23, 1  ;;  %v2105_v10 = vsel %vm2099_vm9, %v2072_v55, %v1746_v13 }
  0xfd   : > { %1371 = vrot.lane.b32.xlu0 %v1332_v62, %s3123_s25  ;;  %v1627_v62 = vor.u32 %v1626_v17, %v1622_v48  ;;  %v1638_v48 = vrot.slane %v1636_v11, 1  ;;  %v2704_v17 = vld [vmem:[%s3166_s20 + $0x60] sm:$0xe] }
  0xfe   : > { %v4194_v38 = vpop.permute.xlu1 %1763  ;;  %v1735_v18 = vor.u32 %v1734_v35, %v1730_v53  ;;  %v2848_v28 = vcombine.low %v2704_v17, %v4125_v33  ;;  %v2849_v35 = vcombine.low %v2705_v24, %v4157_v8  ;;  %v1867_v8 = vrot.slane %v4167_v2, 1 }
  0xff   : > { %v4201_v1 = vpop.permute.xlu0 %1747  ;;  %v1632_v13 = vsel %vm523_vm1, %v1627_v62, %v1631_v9  ;;  %v1639_v32 = vor.u32 %v1638_v48, %v1634_v49  ;;  %v1843_v49 = vrot.slane %v4188_v31, 1 }
 0x100   : > { %1497 = vrot.lane.b32.xlu1 %v2824_v19, %s3124_s28  ;;  %v2121_v19 = vsel %vm2099_vm9, %v2088_v16, %v1762_v5  ;;  %v1740_v33 = vsel %vm523_vm1, %v1735_v18, %v1739_v14  ;;  %v1839_v36 = vrot.slane %v2848_v28, 1  ;;  %v1842_v62 = vrot.slane %v2849_v35, 1 }
 0x101   : > { %1481 = vrot.lane.b32.xlu0 %v2816_v6, %s3124_s28  ;;  %v2856_v6 = vcombine.low %v2712_v58, %v4115_v37  ;;  %v1958_v37 = vsel %vm1934_vm4, %v1925_v61, %v4013_v0  ;;  %v1975_v0 = vsel %vm1967_vm5, %v1942_v3, %v4055_v40  ;;  %v1840_v40 = vrot.slane %v4160_v39, 1 }
 0x102   : > { %v1890_v23 = vpop.permute.xlu1 %1889  ;;  %v1644_v39 = vsel %vm523_vm1, %v1639_v32, %v1643_v44  ;;  %v1844_v14 = vsel %vm796_vm0, %v1842_v62, %v1843_v49  ;;  %v4504_v44 = vld [vmem:[#allocation3_spill] sm:$0xff] }
 0x103   : > { %v2154_v25 = vsel %vm2132_vm10, %v2121_v19, %v1890_v23  ;;  %v1874_v7 = vpop.permute.xlu0 %1873  ;;  %v1863_v11 = vrot.slane %v2856_v6, 1 }
 0x104   : > { %v2138_v5 = vsel %vm2132_vm10, %v2105_v10, %v1874_v7  ;;  %1499 = vrot.lane.b32.xlu1 %v4154_v29, %s3124_s28  ;;  %2927 = vmatprep.mubr.msk.bf16.mxu1 %vm2185_vm11, %v2154_v25  ;;  %v1991_v29 = vsel %vm1967_vm5, %v1958_v37, %v4046_v27  ;;  %v2008_v27 = vsel %vm2000_vm6, %v1975_v0, %v4089_v45 }
 0x105   : > { %1483 = vrot.lane.b32.xlu0 %v4171_v57, %s3124_s28  ;;  %2911 = vmatprep.mubr.msk.bf16.mxu0 %vm2185_vm11, %v2138_v5  ;;  %v2024_v57 = vsel %vm2000_vm6, %v1991_v29, %v4084_v21  ;;  %v2041_v21 = vsel %vm2033_vm7, %v2008_v27, %v4110_v42  ;;  %v1865_v22 = vsel %vm796_vm0, %v1863_v11, %v1864_v60  ;;  %v4503_v29 = vld [vmem:[#allocation2_spill] sm:$0xff] }
 0x106   : > { %v4245_v53 = vpop.permute.xlu1 %740  ;;  %v2057_v54 = vsel %vm2033_vm7, %v2024_v57, %v4105_v26  ;;  %v2074_v45 = vsel %vm2066_vm8, %v2041_v21, %v4151_v56  ;;  %v1866_v56 = vrot.slane %v2857_v52, 1 }
 0x107   : > { %v4252_v51 = vpop.permute.xlu0 %724  ;;  %v2090_v20 = vsel %vm2066_vm8, %v2057_v54, %v4146_v12  ;;  %v2107_v42 = vsel %vm2099_vm9, %v2074_v45, %v4201_v1  ;;  %v1841_v1 = vsel %vm796_vm0, %v1839_v36, %v1840_v40  ;;  %v1927_v32 = vsel %vm1901_vm3, %v4503_v29, %v4245_v53 }
 0x108   : > { %1769 = vrot.lane.b32.xlu1 %v1728_v41, %s3125_s5  ;;  %v2123_v26 = vsel %vm2099_vm9, %v2090_v20, %v4194_v38  ;;  %v1868_v63 = vsel %vm796_vm0, %v1866_v56, %v1867_v8  ;;  %v1911_v47 = vsel %vm1901_vm3, %v4504_v44, %v4252_v51 }
 0x109   : > { %1753 = vrot.lane.b32.xlu0 %v1632_v13, %s3125_s5 }
 0x10a   : > { %v1892_v9 = vpop.permute.xlu1 %1891 }
 0x10b   : > { %v2156_v12 = vsel %vm2132_vm10, %v2123_v26, %v1892_v9  ;;  %v1876_v59 = vpop.permute.xlu0 %1875  ;;  %v4505_v9 = vld [vmem:[#allocation4_spill] sm:$0xff] }
 0x10c   : > { %v2140_v30 = vsel %vm2132_vm10, %v2107_v42, %v1876_v59  ;;  %1771 = vrot.lane.b32.xlu1 %v1740_v33, %s3125_s5  ;;  %2928 = vmatmul.mubr.msk.bf16.gmra.mrb[4].mxu1 %vm2185_vm11, %v2156_v12  ;;  %v4506_v42 = vld [vmem:[#allocation5_spill] sm:$0xff] }
 0x10d   : > { %1755 = vrot.lane.b32.xlu0 %v1644_v39, %s3125_s5  ;;  %2912 = vmatmul.mubr.msk.bf16.gmra.mrb[4].mxu0 %vm2185_vm11, %v2140_v30 }
 0x10e   : > { %v743_v38 = vpop.permute.xlu1 %742 }
 0x10f   : > { %v727_v58 = vpop.permute.xlu0 %726  ;;  %v1929_v39 = vsel %vm1901_vm3, %v4505_v9, %v743_v38 }
 0x110   : > { %1897 = vrot.lane.b32.xlu1 %v1865_v22, %s3126_s6  ;;  %v1913_v12 = vsel %vm1901_vm3, %v4506_v42, %v727_v58 }
 0x111   : > { %1881 = vrot.lane.b32.xlu0 %v1841_v1, %s3126_s6 }
 0x112   : > { %v870_v16 = vpop.permute.xlu1 %869 }
 0x113   : > { %v854_v43 = vpop.permute.xlu0 %853  ;;  %v1960_v0 = vsel %vm1934_vm4, %v1927_v32, %v870_v16 }
 0x114   : > { %1899 = vrot.lane.b32.xlu1 %v1868_v63, %s3126_s6  ;;  %v1944_v57 = vsel %vm1934_vm4, %v1911_v47, %v854_v43 }
 0x115   : > { %1883 = vrot.lane.b32.xlu0 %v1844_v14, %s3126_s6 }
 0x116   : > { %v872_v2 = vpop.permute.xlu1 %871 }
 0x117   : > { %v856_v55 = vpop.permute.xlu0 %855  ;;  %v1962_v59 = vsel %vm1934_vm4, %v1929_v39, %v872_v2 }
 0x118   : > { %v1946_v30 = vsel %vm1934_vm4, %v1913_v12, %v856_v55 }
 0x11a   : > { %v982_v19 = vpop.permute.xlu1 %981 }
 0x11b   : > { %v966_v23 = vpop.permute.xlu0 %965  ;;  %v1993_v33 = vsel %vm1967_vm5, %v1960_v0, %v982_v19 }
 0x11c   : > { %v1977_v24 = vsel %vm1967_vm5, %v1944_v57, %v966_v23 }
 0x11e   : > { %v984_v31 = vpop.permute.xlu1 %983 }
 0x11f   : > { %v968_v41 = vpop.permute.xlu0 %967  ;;  %v1995_v22 = vsel %vm1967_vm5, %v1962_v59, %v984_v31 }
 0x120   : > { %v1979_v8 = vsel %vm1967_vm5, %v1946_v30, %v968_v41 }
 0x122   : > { %v1254_v48 = vpop.permute.xlu1 %1253 }
 0x123   : > { %v1238_v17 = vpop.permute.xlu0 %1237  ;;  %v2026_v27 = vsel %vm2000_vm6, %v1993_v33, %v1254_v48 }
 0x124   : > { %v2010_v11 = vsel %vm2000_vm6, %v1977_v24, %v1238_v17 }
 0x126   : > { %v1256_v10 = vpop.permute.xlu1 %1255 }
 0x127   : > { %v1240_v25 = vpop.permute.xlu0 %1239  ;;  %v2028_v38 = vsel %vm2000_vm6, %v1995_v22, %v1256_v10 }
 0x128   : > { %v2012_v62 = vsel %vm2000_vm6, %v1979_v8, %v1240_v25 }
 0x12a   : > { %v1382_v7 = vpop.permute.xlu1 %1381 }
 0x12b   : > { %v1366_v18 = vpop.permute.xlu0 %1365  ;;  %v2059_v53 = vsel %vm2033_vm7, %v2026_v27, %v1382_v7 }
 0x12c   : > { %v2043_v40 = vsel %vm2033_vm7, %v2010_v11, %v1366_v18 }
 0x12e   : > { %v1384_v6 = vpop.permute.xlu1 %1383 }
 0x12f   : > { %v1368_v61 = vpop.permute.xlu0 %1367  ;;  %v2061_v49 = vsel %vm2033_vm7, %v2028_v38, %v1384_v6 }
 0x130   : > { %v2045_v58 = vsel %vm2033_vm7, %v2012_v62, %v1368_v61 }
 0x132   : > { %v1494_v5 = vpop.permute.xlu1 %1493 }
 0x133   : > { %v1478_v13 = vpop.permute.xlu0 %1477  ;;  %v2092_v51 = vsel %vm2066_vm8, %v2059_v53, %v1494_v5 }
 0x134   : > { %v2076_v21 = vsel %vm2066_vm8, %v2043_v40, %v1478_v13 }
 0x136   : > { %v1496_v4 = vpop.permute.xlu1 %1495 }
 0x137   : > { %v1480_v37 = vpop.permute.xlu0 %1479  ;;  %v2094_v63 = vsel %vm2066_vm8, %v2061_v49, %v1496_v4 }
 0x138   : > { %v2078_v16 = vsel %vm2066_vm8, %v2045_v58, %v1480_v37 }
 0x13a   : > { %v1766_v28 = vpop.permute.xlu1 %1765 }
 0x13b   : > { %v1750_v3 = vpop.permute.xlu0 %1749  ;;  %v2125_v20 = vsel %vm2099_vm9, %v2092_v51, %v1766_v28 }
 0x13c   : > { %v2109_v52 = vsel %vm2099_vm9, %v2076_v21, %v1750_v3 }
 0x13e   : > { %v1768_v60 = vpop.permute.xlu1 %1767 }
 0x13f   : > { %v1752_v54 = vpop.permute.xlu0 %1751  ;;  %v2127_v14 = vsel %vm2099_vm9, %v2094_v63, %v1768_v60 }
 0x140   : > { %v2111_v2 = vsel %vm2099_vm9, %v2078_v16, %v1752_v54 }
 0x142   : > { %v1894_v36 = vpop.permute.xlu1 %1893 }
 0x143   : > { %v2158_v45 = vsel %vm2132_vm10, %v2125_v20, %v1894_v36  ;;  %v1878_v26 = vpop.permute.xlu0 %1877 }
 0x144   : > { %v2142_v35 = vsel %vm2132_vm10, %v2109_v52, %v1878_v26  ;;  %2931 = vmatprep.mubr.msk.bf16.mxu1 %vm2185_vm11, %v2158_v45 }
 0x145   : > { %2915 = vmatprep.mubr.msk.bf16.mxu0 %vm2185_vm11, %v2142_v35 }
 0x146   : > { %v745_v56 = vpop.permute.xlu1 %744 }
 0x147   : > { %v729_v1 = vpop.permute.xlu0 %728  ;;  %v1931_v24 = vsel %vm1901_vm3, %v3885_v46, %v745_v56 }
 0x148   : > { %v1915_v27 = vsel %vm1901_vm3, %v3894_v15, %v729_v1 }
 0x14a   : > { %v1896_v43 = vpop.permute.xlu1 %1895 }
 0x14b   : > { %v2160_v55 = vsel %vm2132_vm10, %v2127_v14, %v1896_v43  ;;  %v1880_v19 = vpop.permute.xlu0 %1879 }
 0x14c   : > { %v2144_v23 = vsel %vm2132_vm10, %v2111_v2, %v1880_v19  ;;  %2932 = vmatmul.mubr.msk.bf16.gmra.mrb[8].mxu1 %vm2185_vm11, %v2160_v55  ;;  %v4378_v19 = vld [vmem:[%s4492_s2] ss:$0 sm:$0xff] }
 0x14d   : > { %2916 = vmatmul.mubr.msk.bf16.gmra.mrb[8].mxu0 %vm2185_vm11, %v2144_v23  ;;  %v4383_v23 = vld [vmem:[%s4493_s3] ss:$0 sm:$0xff] }
 0x14e   : > { %v747_v31 = vpop.permute.xlu1 %746 }
 0x14f   : > { %v731_v41 = vpop.permute.xlu0 %730  ;;  %v1933_v36 = vsel %vm1901_vm3, %v3960_v50, %v747_v31 }
 0x150   : > { %v1917_v15 = vsel %vm1901_vm3, %v3967_v34, %v731_v41 }
 0x152   : > { %v874_v48 = vpop.permute.xlu1 %873 }
 0x153   : > { %v858_v17 = vpop.permute.xlu0 %857  ;;  %v1964_v54 = vsel %vm1934_vm4, %v1931_v24, %v874_v48 }
 0x154   : > { %v1948_v11 = vsel %vm1934_vm4, %v1915_v27, %v858_v17 }
 0x156   : > { %v876_v10 = vpop.permute.xlu1 %875 }
 0x157   : > { %v860_v25 = vpop.permute.xlu0 %859  ;;  %v1966_v45 = vsel %vm1934_vm4, %v1933_v36, %v876_v10 }
 0x158   : > { %v1950_v39 = vsel %vm1934_vm4, %v1917_v15, %v860_v25 }
 0x15a   : > { %v986_v7 = vpop.permute.xlu1 %985 }
 0x15b   : > { %v970_v18 = vpop.permute.xlu0 %969  ;;  %v1997_v53 = vsel %vm1967_vm5, %v1964_v54, %v986_v7 }
 0x15c   : > { %v1981_v51 = vsel %vm1967_vm5, %v1948_v11, %v970_v18 }
 0x15e   : > { %v988_v6 = vpop.permute.xlu1 %987 }
 0x15f   : > { %v972_v61 = vpop.permute.xlu0 %971  ;;  %v1999_v35 = vsel %vm1967_vm5, %v1966_v45, %v988_v6 }
 0x160   : > { %v1983_v59 = vsel %vm1967_vm5, %v1950_v39, %v972_v61 }
 0x162   : > { %v1258_v5 = vpop.permute.xlu1 %1257 }
 0x163   : > { %v1242_v13 = vpop.permute.xlu0 %1241  ;;  %v2030_v21 = vsel %vm2000_vm6, %v1997_v53, %v1258_v5 }
 0x164   : > { %v2014_v46 = vsel %vm2000_vm6, %v1981_v51, %v1242_v13 }
 0x166   : > { %v1260_v4 = vpop.permute.xlu1 %1259 }
 0x167   : > { %v1244_v37 = vpop.permute.xlu0 %1243  ;;  %v2032_v30 = vsel %vm2000_vm6, %v1999_v35, %v1260_v4 }
 0x168   : > { %v2016_v8 = vsel %vm2000_vm6, %v1983_v59, %v1244_v37 }
 0x16a   : > { %v1386_v28 = vpop.permute.xlu1 %1385 }
 0x16b   : > { %v1370_v3 = vpop.permute.xlu0 %1369  ;;  %v2063_v52 = vsel %vm2033_vm7, %v2030_v21, %v1386_v28 }
 0x16c   : > { %v2047_v26 = vsel %vm2033_vm7, %v2014_v46, %v1370_v3 }
 0x16e   : > { %v1388_v29 = vpop.permute.xlu1 %1387 }
 0x16f   : > { %v1372_v32 = vpop.permute.xlu0 %1371  ;;  %v2065_v38 = vsel %vm2033_vm7, %v2032_v30, %v1388_v29 }
 0x170   : > { %v2049_v62 = vsel %vm2033_vm7, %v2016_v8, %v1372_v32 }
 0x172   : > { %v1498_v44 = vpop.permute.xlu1 %1497 }
 0x173   : > { %v1482_v47 = vpop.permute.xlu0 %1481  ;;  %v2096_v9 = vsel %vm2066_vm8, %v2063_v52, %v1498_v44 }
 0x174   : > { %v2080_v42 = vsel %vm2066_vm8, %v2047_v26, %v1482_v47 }
 0x176   : > { %v1500_v0 = vpop.permute.xlu1 %1499 }
 0x177   : > { %v1484_v57 = vpop.permute.xlu0 %1483  ;;  %v2098_v49 = vsel %vm2066_vm8, %v2065_v38, %v1500_v0 }
 0x178   : > { %v2082_v58 = vsel %vm2066_vm8, %v2049_v62, %v1484_v57 }
 0x17a   : > { %v1770_v33 = vpop.permute.xlu1 %1769 }
 0x17b   : > { %v1754_v60 = vpop.permute.xlu0 %1753  ;;  %v2129_v50 = vsel %vm2099_vm9, %v2096_v9, %v1770_v33 }
 0x17c   : > { %v2113_v34 = vsel %vm2099_vm9, %v2080_v42, %v1754_v60 }
 0x17e   : > { %v1772_v40 = vpop.permute.xlu1 %1771 }
 0x17f   : > { %v1756_v20 = vpop.permute.xlu0 %1755  ;;  %v2131_v63 = vsel %vm2099_vm9, %v2098_v49, %v1772_v40 }
 0x180   : > { %v2115_v14 = vsel %vm2099_vm9, %v2082_v58, %v1756_v20 }
 0x182   : > { %v1898_v12 = vpop.permute.xlu1 %1897 }
 0x183   : > { %v2162_v22 = vsel %vm2132_vm10, %v2129_v50, %v1898_v12  ;;  %v1882_v56 = vpop.permute.xlu0 %1881 }
 0x184   : > { %v2146_v1 = vsel %vm2132_vm10, %v2113_v34, %v1882_v56  ;;  %2935 = vmatprep.mubr.msk.bf16.mxu1 %vm2185_vm11, %v2162_v22 }
 0x185   : > { %2919 = vmatprep.mubr.msk.bf16.mxu0 %vm2185_vm11, %v2146_v1 }
 0x186   : > { %v1900_v16 = vpop.permute.xlu1 %1899 }
 0x187   : > { %v2164_v43 = vsel %vm2132_vm10, %v2131_v63, %v1900_v16  ;;  %v1884_v2 = vpop.permute.xlu0 %1883 }
 0x188   : > { %v2148_v55 = vsel %vm2132_vm10, %v2115_v14, %v1884_v2  ;;  %2936 = vmatmul.mubr.msk.bf16.gmra.mrb[12].mxu1 %vm2185_vm11, %v2164_v43 }
 0x189   : > { %2920 = vmatmul.mubr.msk.bf16.gmra.mrb[12].mxu0 %vm2185_vm11, %v2148_v55 }
 0x19f   : > { %v2925_v31 = vpop.f32.mrb[0].mxu1 }
 0x1a0   : > { %v2909_v41 = vpop.f32.mrb[0].mxu0  ;;  %v2407_v48 = vmul.f32 %v2925_v31, %v4378_v19  ;;  %v2320_v17 = vpop.f32.mrb[1].mxu1 }
 0x1a1   : > { %v2391_v10 = vmul.f32 %v2909_v41, %v4378_v19  ;;  %v2256_v25 = vpop.f32.mrb[1].mxu0  ;;  %v2405_v7 = vmul.f32 %v4378_v19, %v2320_v17  ;;  %v2926_v18 = vpop.f32.mrb[2].mxu1 }
 0x1a2   : > { %v2445_v6 = vadd.f32 %v4383_v23, %v2407_v48  ;;  %v2389_v61 = vmul.f32 %v4378_v19, %v2256_v25  ;;  %v2910_v5 = vpop.f32.mrb[2].mxu0  ;;  %v2408_v13 = vmul.f32 %v2926_v18, %v4378_v19  ;;  %v2323_v4 = vpop.f32.mrb[3].mxu1 }
 0x1a3   : > { %v2429_v37 = vadd.f32 %v4383_v23, %v2391_v10  ;;  %v2443_v28 = vadd.f32 %v4383_v23, %v2405_v7  ;;  %v2392_v3 = vmul.f32 %v2910_v5, %v4378_v19  ;;  %v2259_v29 = vpop.f32.mrb[3].mxu0  ;;  %v2406_v32 = vmul.f32 %v4378_v19, %v2323_v4 }
 0x1a4   : > { %v2477_v44 = vmax.f32 %v2445_v6, 0.0  ;;  %v2427_v47 = vadd.f32 %v4383_v23, %v2389_v61  ;;  %v2446_v0 = vadd.f32 %v4383_v23, %v2408_v13  ;;  %v2390_v57 = vmul.f32 %v4378_v19, %v2259_v29 }
 0x1a5   : > { %v2461_v33 = vmax.f32 %v2429_v37, 0.0  ;;  %v2475_v60 = vmax.f32 %v2443_v28, 0.0  ;;  %v2430_v24 = vadd.f32 %v4383_v23, %v2392_v3  ;;  %v2444_v27 = vadd.f32 %v4383_v23, %v2406_v32 }
 0x1a6   : > { %2509 = vst [vmem:[%s4395_s17 + $0x90] sm:$0xff] %v2477_v44  ;;  %v2459_v54 = vmax.f32 %v2427_v47, 0.0  ;;  %v2478_v11 = vmax.f32 %v2446_v0, 0.0  ;;  %v2428_v53 = vadd.f32 %v4383_v23, %v2390_v57 }
 0x1a7   : > { %2493 = vst [vmem:[%s4395_s17 + $0x10] sm:$0xff] %v2461_v33  ;;  %2507 = vst [vmem:[%s4395_s17 + $0x80] sm:$0xff] %v2475_v60  ;;  %v2462_v40 = vmax.f32 %v2430_v24, 0.0  ;;  %v2476_v51 = vmax.f32 %v2444_v27, 0.0 }
 0x1a8   : > { %2491 = vst [vmem:[%s4395_s17] sm:$0xff] %v2459_v54  ;;  %2510 = vst [vmem:[%s4395_s17 + $0x98] sm:$0xff] %v2478_v11  ;;  %v2460_v21 = vmax.f32 %v2428_v53, 0.0 }
 0x1a9   : > { %2494 = vst [vmem:[%s4395_s17 + $0x18] sm:$0xff] %v2462_v40  ;;  %2508 = vst [vmem:[%s4395_s17 + $0x88] sm:$0xff] %v2476_v51 }
 0x1aa   : > { %2492 = vst [vmem:[%s4395_s17 + $0x8] sm:$0xff] %v2460_v21 }
 0x1df   : > { %v2929_v20 = vpop.f32.mrb[4].mxu1 }
 0x1e0   : > { %v2913_v36 = vpop.f32.mrb[4].mxu0  ;;  %v2411_v46 = vmul.f32 %v2929_v20, %v4378_v19  ;;  %v2336_v52 = vpop.f32.mrb[5].mxu1 }
 0x1e1   : > { %v2395_v15 = vmul.f32 %v2913_v36, %v4378_v19  ;;  %v2272_v45 = vpop.f32.mrb[5].mxu0  ;;  %v2409_v26 = vmul.f32 %v4378_v19, %v2336_v52  ;;  %v2930_v9 = vpop.f32.mrb[6].mxu1 }
 0x1e2   : > { %v2449_v39 = vadd.f32 %v4383_v23, %v2411_v46  ;;  %v2393_v35 = vmul.f32 %v4378_v19, %v2272_v45  ;;  %v2914_v42 = vpop.f32.mrb[6].mxu0  ;;  %v2412_v50 = vmul.f32 %v2930_v9, %v4378_v19  ;;  %v2339_v12 = vpop.f32.mrb[7].mxu1 }
 0x1e3   : > { %v2433_v59 = vadd.f32 %v4383_v23, %v2395_v15  ;;  %v2447_v30 = vadd.f32 %v4383_v23, %v2409_v26  ;;  %v2396_v34 = vmul.f32 %v2914_v42, %v4378_v19  ;;  %v2275_v22 = vpop.f32.mrb[7].mxu0  ;;  %v2410_v56 = vmul.f32 %v4378_v19, %v2339_v12 }
 0x1e4   : > { %v2481_v8 = vmax.f32 %v2449_v39, 0.0  ;;  %v2431_v38 = vadd.f32 %v4383_v23, %v2393_v35  ;;  %v2450_v1 = vadd.f32 %v4383_v23, %v2412_v50  ;;  %v2394_v62 = vmul.f32 %v4378_v19, %v2275_v22 }
 0x1e5   : > { %v2465_v49 = vmax.f32 %v2433_v59, 0.0  ;;  %v2479_v58 = vmax.f32 %v2447_v30, 0.0  ;;  %v2434_v63 = vadd.f32 %v4383_v23, %v2396_v34  ;;  %v2448_v16 = vadd.f32 %v4383_v23, %v2410_v56 }
 0x1e6   : > { %2513 = vst [vmem:[%s4395_s17 + $0xb0] sm:$0xff] %v2481_v8  ;;  %v2463_v14 = vmax.f32 %v2431_v38, 0.0  ;;  %v2482_v43 = vmax.f32 %v2450_v1, 0.0  ;;  %v2432_v2 = vadd.f32 %v4383_v23, %v2394_v62 }
 0x1e7   : > { %2497 = vst [vmem:[%s4395_s17 + $0x30] sm:$0xff] %v2465_v49  ;;  %2511 = vst [vmem:[%s4395_s17 + $0xa0] sm:$0xff] %v2479_v58  ;;  %v2466_v55 = vmax.f32 %v2434_v63, 0.0  ;;  %v2480_v31 = vmax.f32 %v2448_v16, 0.0 }
 0x1e8   : > { %2495 = vst [vmem:[%s4395_s17 + $0x20] sm:$0xff] %v2463_v14  ;;  %2514 = vst [vmem:[%s4395_s17 + $0xb8] sm:$0xff] %v2482_v43  ;;  %v2464_v41 = vmax.f32 %v2432_v2, 0.0 }
 0x1e9   : > { %2498 = vst [vmem:[%s4395_s17 + $0x38] sm:$0xff] %v2466_v55  ;;  %2512 = vst [vmem:[%s4395_s17 + $0xa8] sm:$0xff] %v2480_v31 }
 0x1ea   : > { %2496 = vst [vmem:[%s4395_s17 + $0x28] sm:$0xff] %v2464_v41 }
 0x21f   : > { %v2933_v48 = vpop.f32.mrb[8].mxu1 }
 0x220   : > { %v2917_v17 = vpop.f32.mrb[8].mxu0  ;;  %v2415_v10 = vmul.f32 %v2933_v48, %v4378_v19  ;;  %v2352_v25 = vpop.f32.mrb[9].mxu1 }
 0x221   : > { %v2399_v7 = vmul.f32 %v2917_v17, %v4378_v19  ;;  %v2288_v18 = vpop.f32.mrb[9].mxu0  ;;  %v2413_v6 = vmul.f32 %v4378_v19, %v2352_v25  ;;  %v2934_v61 = vpop.f32.mrb[10].mxu1 }
 0x222   : > { %v2453_v5 = vadd.f32 %v4383_v23, %v2415_v10  ;;  %v2397_v13 = vmul.f32 %v4378_v19, %v2288_v18  ;;  %v2918_v4 = vpop.f32.mrb[10].mxu0  ;;  %v2416_v37 = vmul.f32 %v2934_v61, %v4378_v19  ;;  %v2355_v28 = vpop.f32.mrb[11].mxu1 }
 0x223   : > { %v2437_v3 = vadd.f32 %v4383_v23, %v2399_v7  ;;  %v2451_v29 = vadd.f32 %v4383_v23, %v2413_v6  ;;  %v2400_v32 = vmul.f32 %v2918_v4, %v4378_v19  ;;  %v2291_v44 = vpop.f32.mrb[11].mxu0  ;;  %v2414_v47 = vmul.f32 %v4378_v19, %v2355_v28 }
 0x224   : > { %v2485_v0 = vmax.f32 %v2453_v5, 0.0  ;;  %v2435_v57 = vadd.f32 %v4383_v23, %v2397_v13  ;;  %v2454_v33 = vadd.f32 %v4383_v23, %v2416_v37  ;;  %v2398_v60 = vmul.f32 %v4378_v19, %v2291_v44 }
 0x225   : > { %v2469_v24 = vmax.f32 %v2437_v3, 0.0  ;;  %v2483_v27 = vmax.f32 %v2451_v29, 0.0  ;;  %v2438_v54 = vadd.f32 %v4383_v23, %v2400_v32  ;;  %v2452_v11 = vadd.f32 %v4383_v23, %v2414_v47 }
 0x226   : > { %2517 = vst [vmem:[%s4395_s17 + $0xd0] sm:$0xff] %v2485_v0  ;;  %v2467_v53 = vmax.f32 %v2435_v57, 0.0  ;;  %v2486_v40 = vmax.f32 %v2454_v33, 0.0  ;;  %v2436_v51 = vadd.f32 %v4383_v23, %v2398_v60 }
 0x227   : > { %2501 = vst [vmem:[%s4395_s17 + $0x50] sm:$0xff] %v2469_v24  ;;  %2515 = vst [vmem:[%s4395_s17 + $0xc0] sm:$0xff] %v2483_v27  ;;  %v2470_v21 = vmax.f32 %v2438_v54, 0.0  ;;  %v2484_v20 = vmax.f32 %v2452_v11, 0.0 }
 0x228   : > { %2499 = vst [vmem:[%s4395_s17 + $0x40] sm:$0xff] %v2467_v53  ;;  %2518 = vst [vmem:[%s4395_s17 + $0xd8] sm:$0xff] %v2486_v40  ;;  %v2468_v36 = vmax.f32 %v2436_v51, 0.0 }
 0x229   : > { %2502 = vst [vmem:[%s4395_s17 + $0x58] sm:$0xff] %v2470_v21  ;;  %2516 = vst [vmem:[%s4395_s17 + $0xc8] sm:$0xff] %v2484_v20 }
 0x22a   : > { %2500 = vst [vmem:[%s4395_s17 + $0x48] sm:$0xff] %v2468_v36 }
 0x25b   : > { %v2937_v46 = vpop.f32.mrb[12].mxu1 }
 0x25c   : > { %v2921_v52 = vpop.f32.mrb[12].mxu0  ;;  %v2419_v15 = vmul.f32 %v2937_v46, %v4378_v19  ;;  %v2368_v45 = vpop.f32.mrb[13].mxu1 }
 0x25d   : > { %v2403_v26 = vmul.f32 %v2921_v52, %v4378_v19  ;;  %v2304_v9 = vpop.f32.mrb[13].mxu0  ;;  %v2417_v39 = vmul.f32 %v4378_v19, %v2368_v45  ;;  %v2938_v35 = vpop.f32.mrb[14].mxu1 }
 0x25e   : > { %v2457_v42 = vadd.f32 %v4383_v23, %v2419_v15  ;;  %v2401_v50 = vmul.f32 %v4378_v19, %v2304_v9  ;;  %v2922_v12 = vpop.f32.mrb[14].mxu0  ;;  %v2420_v59 = vmul.f32 %v2938_v35, %v4378_v19  ;;  %v2371_v30 = vpop.f32.mrb[15].mxu1 }
 0x25f   : > { %v2441_v34 = vadd.f32 %v4383_v23, %v2403_v26  ;;  %v2455_v22 = vadd.f32 %v4383_v23, %v2417_v39  ;;  %v2404_v56 = vmul.f32 %v2922_v12, %v4378_v19  ;;  %v2307_v8 = vpop.f32.mrb[15].mxu0  ;;  %v2418_v38 = vmul.f32 %v4378_v19, %v2371_v30 }
 0x260   : > { %v2489_v1 = vmax.f32 %v2457_v42, 0.0  ;;  %v2439_v62 = vadd.f32 %v4383_v23, %v2401_v50  ;;  %v2458_v49 = vadd.f32 %v4383_v23, %v2420_v59  ;;  %v2402_v58 = vmul.f32 %v4378_v19, %v2307_v8 }
 0x261   : > { %v2473_v63 = vmax.f32 %v2441_v34, 0.0  ;;  %v2487_v16 = vmax.f32 %v2455_v22, 0.0  ;;  %v2442_v14 = vadd.f32 %v4383_v23, %v2404_v56  ;;  %v2456_v43 = vadd.f32 %v4383_v23, %v2418_v38 }
 0x262   : > { %2521 = vst [vmem:[%s4395_s17 + $0xf0] sm:$0xff] %v2489_v1  ;;  %v2471_v2 = vmax.f32 %v2439_v62, 0.0  ;;  %v2490_v55 = vmax.f32 %v2458_v49, 0.0  ;;  %v2440_v31 = vadd.f32 %v4383_v23, %v2402_v58 }
 0x263   : > { %2505 = vst [vmem:[%s4395_s17 + $0x70] sm:$0xff] %v2473_v63  ;;  %2519 = vst [vmem:[%s4395_s17 + $0xe0] sm:$0xff] %v2487_v16  ;;  %v2474_v41 = vmax.f32 %v2442_v14, 0.0  ;;  %v2488_v48 = vmax.f32 %v2456_v43, 0.0 }
 0x264   : > { %2503 = vst [vmem:[%s4395_s17 + $0x60] sm:$0xff] %v2471_v2  ;;  %2522 = vst [vmem:[%s4395_s17 + $0xf8] sm:$0xff] %v2490_v55  ;;  %v2472_v19 = vmax.f32 %v2440_v31, 0.0 }
 0x265   : > { %2506 = vst [vmem:[%s4395_s17 + $0x78] sm:$0xff] %v2474_v41  ;;  %2520 = vst [vmem:[%s4395_s17 + $0xe8] sm:$0xff] %v2488_v48 }
 0x266   : > { %2504 = vst [vmem:[%s4395_s17 + $0x68] sm:$0xff] %v2472_v19 }
 0x267 PF: > { %s14_s15 = sadd.s32 1, %s3117_s15  }
 0x268   : > { %p11_p4 = scmp.ge.s32.totalorder %s14_s15, 4  }
 0x26a   :  { %13 = sbr.rel (!%p11_p4) target bundleno = 1 (0x1), region = 68 }

// kernel: vgg_block_forward.2
= control target key start
LH: loop header
LB: loop body
LE: loop exit
PB: predicated region body
PF: predicated region fallthrough
CT: control target
= control target key end

     0   :  { %s3103_s12 = smov 0   ;;  %s4176_s0 = inlined_call_operand.vmem [shape: bf16[2,18,18,4], index: 0, kind: input, shape index: {}]   ;;  %s4177_s1 = inlined_call_operand.vmem [shape: bf16[36,128], index: 1, kind: input, shape index: {}]   ;;  %s4178_s2 = inlined_call_operand.vmem [shape: f32[2,1,128], index: 2, kind: output, shape index: {0}]   ;;  %s4179_s3 = inlined_call_operand.vmem [shape: f32[2,1,128], index: 3, kind: output, shape index: {1}]  }
   0x1 LB: > { %s2539_s13 = sadd.s32 4294967295, %s3073_s12   ;;  %p2543_p0 = scmp.ge.s32.totalorder %s3073_s12, 1  ;;  %s3073_s12 = sphi %s3103_s12, %s14_s12  }
   0x2   : > { %p140_p1 = scmp.lt.s32.totalorder %s3073_s12, 3 }
   0x4   : > { %p141_p2 = pnand %p2543_p0, %p140_p1 }
   0x5   : > { %p165_p3 = scmp.lt.s32.totalorder (!%p141_p2), %s2539_s13, 1  ;;  %vm772_vm0 = vcmask (!%p141_p2), 1046528   ;;  %s3075_s18 = smov (!%p141_p2), 12   ;;  %vm499_vm1 = vsmask.f32 (!%p141_p2), 7424  ;;  %v2998_v57 = vld [vmem:[%s4177_s1] sm:$0xff] (!%p141_p2)  }
   0x6   : > { %144 = sbr.rel (%p141_p2) target bundleno = 629 (0x275), region = 28  ;;  %s3076_s19 = smov (!%p141_p2), 20   ;;  %2857 = vmatprep.subr.bf16.mxu0 (!%p141_p2), %v2998_v57  ;;  %2895 = vmatprep.subr.bf16.mxu1 (!%p141_p2), %v2998_v57  ;;  %vm2194_vm2 = vcmask (!%p141_p2), 1041408   ;;  %vm1877_vm3 = vcmask (!%p141_p2), 31744   ;;  %vm1910_vm4 = vcmask (!%p141_p2), 64512   ;;  %vm1943_vm5 = vcmask (!%p141_p2), 97280  }
   0x7   : > { %s3077_s20 = smov (!%p141_p2), 8   ;;  %s3078_s23 = smov (!%p141_p2), 4   ;;  %2858 = vmatpush3.bf16.msra.mxu0 (!%p141_p2), %v2998_v57  ;;  %2898 = vmatpush3.bf16.msra.mxu1 (!%p141_p2), %v2998_v57  ;;  %vm1976_vm6 = vcmask (!%p141_p2), 130048   ;;  %vm2009_vm7 = vcmask (!%p141_p2), 162816   ;;  %vm2042_vm8 = vcmask (!%p141_p2), 195584   ;;  %vm2075_vm9 = vcmask (!%p141_p2), 228352  }
   0x8   : > { %s3079_s26 = smov (!%p141_p2), 16   ;;  %s3080_s27 = smov (!%p141_p2), 24   ;;  %vm2108_vm10 = vcmask (!%p141_p2), 261120   ;;  %vm2161_vm11 = vcmask (!%p141_p2), 293888  }
   0x9   : > { %s3081_s28 = smov (!%p141_p2), 28   ;;  %s3082_s29 = smov (!%p141_p2), 32  }
   0xd   : > { %s4181_s13 = smov (!%p165_p3, %s2539_s13), 1 }
   0xe   : > { %s2903_s14 = smul.u32 216, %s4181_s13  ;;  %s172_s7 = scalar_lea.vmem %s4178_s2, %s4181_s13 }
   0xf   : > { %s175_s10 = scalar_lea.vmem %s4179_s3, %s4181_s13 }
  0x10   : > { %s3117_s17 = scalar_lea.vmem %s4176_s0, %s2903_s14 }
  0x11   : > { %v2547_v0 = vld [vmem:[%s3117_s17 + $0x18] sm:$0xf]  ;;  %v2548_v1 = vld [vmem:[%s3117_s17 + $0x1c] sm:$0xf]  ;;  %v2545_v5 = vld [vmem:[%s3117_s17 + $0xc] sm:$0xf] }
  0x12   : > { %v2594_v2 = vld [vmem:[%s3117_s17 + $0x18] sm:$0xe]  ;;  %v3122_v3 = vcombine.low %v2547_v0, %v2548_v1  ;;  %v2546_v6 = vld [vmem:[%s3117_s17 + $0x10] sm:$0xf]  ;;  %v2593_v7 = vld [vmem:[%s3117_s17 + $0xc] sm:$0xe] }
  0x13   : > { %v2754_v4 = vcombine.low %v2594_v2, %v2548_v1  ;;  %v3127_v8 = vcombine.low %v2545_v5, %v2546_v6  ;;  %v2753_v9 = vcombine.low %v2593_v7, %v2546_v6  ;;  %v3130_v10 = vld [vmem:[%s3117_s17 + $0x14] ss:$0 sps:$4 sm:$0x11]   ;;  %v178_v12 = vld [vmem:[%s3117_s17 + $0x4] sm:$0xf] }
  0x14   : > { %935 = vrot.lane.b32.xlu1 %v3122_v3, %s3075_s18  ;;  %v1028_v11 = vshll.u32 %v3122_v3, 16  ;;  %v1286_v15 = vrot.slane %v3130_v10, 1  ;;  %v225_v16 = vld [vmem:[%s3117_s17] sm:$0xe]  ;;  %v1026_v21 = vshrl.u32 %v3122_v3, 16  ;;  %v1021_v60 = vshll.u32 %v3130_v10, 16 }
  0x15   : > { %933 = vrot.lane.b32.xlu0 %v3127_v8, %s3075_s18  ;;  %v1016_v13 = vshll.u32 %v3127_v8, 16  ;;  %v1285_v14 = vrot.slane %v2753_v9, 1  ;;  %v1288_v17 = vrot.slane %v2754_v4, 1  ;;  %v2925_v18 = vld [vmem:[%s3117_s17 + $0x8] ss:$0 sps:$4 sm:$0x11]   ;;  %v2705_v19 = vcombine.low %v225_v16, %v178_v12 }
  0x16   : > { %v177_v20 = vld [vmem:[%s3117_s17] sm:$0xf]  ;;  %v179_v24 = vld [vmem:[%s3117_s17 + $0xc] sm:$0xf]  ;;  %v180_v25 = vld [vmem:[%s3117_s17 + $0x10] sm:$0xf] }
  0x17   : > { %v1287_v22 = vsel %vm772_vm0, %v1285_v14, %v1286_v15  ;;  %v3145_v23 = vcombine.low %v177_v20, %v178_v12  ;;  %v773_v26 = vrot.slane %v2705_v19, 1  ;;  %v774_v27 = vrot.slane %v2925_v18, 1  ;;  %v226_v28 = vld [vmem:[%s3117_s17 + $0xc] sm:$0xe]  ;;  %v2611_v43 = vld [vmem:[%s3117_s17 + $0x24] sm:$0xf] }
  0x18   : > { %v3150_v29 = vcombine.low %v179_v24, %v180_v25  ;;  %v508_v30 = vshll.u32 %v2925_v18, 16  ;;  %v2929_v31 = vld [vmem:[%s3117_s17 + $0x14] ss:$0 sps:$4 sm:$0x11]   ;;  %v2706_v32 = vcombine.low %v226_v28, %v180_v25  ;;  %v1030_v35 = vrot.slane %v1028_v11, 1  ;;  %v3003_v12 = vld [vmem:[%s4177_s1 + $0x8] sm:$0xff]  }
  0x19   : > { %1333 = vrot.lane.b32.xlu0 %v1287_v22, %s3076_s19  ;;  %v501_v33 = vshrl.u32 %v3145_v23, 16  ;;  %v503_v34 = vshll.u32 %v3145_v23, 16  ;;  %v775_v36 = vsel %vm772_vm0, %v773_v26, %v774_v27  ;;  %v2931_v38 = vld [vmem:[%s3117_s17 + $0x20] ss:$0 sps:$4 sm:$0x11]   ;;  %v777_v40 = vrot.slane %v2929_v31, 1  ;;  %2859 = vmatprep.subr.bf16.mxu0 %v3003_v12 }
  0x1a   : > { %v510_v37 = vrot.slane %v508_v30, 1  ;;  %821 = vrot.lane.b32.xlu1 %v775_v36, %s3077_s20  ;;  %v776_v39 = vrot.slane %v2706_v32, 1  ;;  %v513_v42 = vshrl.u32 %v3150_v29, 16  ;;  %v1289_v44 = vrot.slane %v2931_v38, 1  ;;  %v3163_v48 = vld [vmem:[%s3117_s17 + $0x28] sm:$0xf]  ;;  %2896 = vmatprep.subr.bf16.mxu1 %v3003_v12 }
  0x1b   : > { %v505_v41 = vrot.slane %v503_v34, 1  ;;  %v515_v45 = vshll.u32 %v3150_v29, 16  ;;  %v520_v46 = vshll.u32 %v2929_v31, 16  ;;  %v1033_v47 = vshll.u32 %v2931_v38, 16  ;;  %v2609_v53 = vld [vmem:[%s3117_s17 + $0x18] sm:$0xf]  ;;  %2860 = vmatpush3.bf16.msra.mxu0 %v3003_v12  ;;  %2899 = vmatpush3.bf16.msra.mxu1 %v3003_v12 }
  0x1c   : > { %v778_v49 = vsel %vm772_vm0, %v776_v39, %v777_v40  ;;  %v1014_v51 = vshrl.u32 %v3127_v8, 16  ;;  %v1018_v52 = vrot.slane %v1016_v13, 1  ;;  %v3169_v56 = vld [vmem:[%s3117_s17 + $0x1c] sm:$0xf]  ;;  %v1031_v59 = vor.u32 %v1030_v35, %v1026_v21  ;;  %v2657_v6 = vld [vmem:[%s3117_s17 + $0x18] sm:$0xe] }
  0x1d   : > { %v506_v50 = vor.u32 %v505_v41, %v501_v33  ;;  %v517_v54 = vrot.slane %v515_v45, 1  ;;  %v522_v55 = vrot.slane %v520_v46, 1  ;;  %v2770_v61 = vcombine.low %v2611_v43, %v3163_v48  ;;  %v3182_v2 = vld [vmem:[%s3117_s17 + $0x2c] ss:$0 sps:$4 sm:$0x11]  }
  0x1e   : > { %823 = vrot.lane.b32.xlu1 %v778_v49, %s3077_s20  ;;  %v1290_v62 = vsel %vm772_vm0, %v1288_v17, %v1289_v44  ;;  %v1035_v0 = vrot.slane %v1033_v47, 1  ;;  %v2769_v1 = vcombine.low %v2609_v53, %v3169_v56  ;;  %v1019_v3 = vor.u32 %v1018_v52, %v1014_v51  ;;  %v3186_v7 = vld [vmem:[%s3117_s17 + $0x20] ss:$0 sps:$4 sm:$0x11]   ;;  %v181_v11 = vld [vmem:[%s3117_s17 + $0x18] sm:$0xf] }
  0x1f   : > { %v511_v58 = vsel %vm499_vm1, %v506_v50, %v510_v37  ;;  %v518_v63 = vor.u32 %v517_v54, %v513_v42  ;;  %v1023_v4 = vrot.slane %v1021_v60, 1  ;;  %v1540_v5 = vshll.u32 %v2770_v61, 16  ;;  %v3196_v15 = vld [vmem:[%s3117_s17 + $0x1c] sm:$0xf]  ;;  %v183_v24 = vld [vmem:[%s3117_s17 + $0x24] sm:$0xf] }
  0x20   : > { %692 = vrot.lane.b32.xlu0 %v511_v58, %s3078_s23  ;;  %v1528_v9 = vshll.u32 %v2769_v1, 16  ;;  %v1538_v10 = vshrl.u32 %v2770_v61, 16  ;;  %v1545_v14 = vshll.u32 %v3182_v2, 16  ;;  %v1036_v16 = vsel %vm499_vm1, %v1031_v59, %v1035_v0  ;;  %v3204_v19 = vld [vmem:[%s3117_s17 + $0x20] ss:$0 sps:$4 sm:$0x11]  }
  0x21   : > { %v523_v8 = vsel %vm499_vm1, %v518_v63, %v522_v55  ;;  %v1542_v13 = vrot.slane %v1540_v5, 1  ;;  %v1526_v17 = vshrl.u32 %v2769_v1, 16  ;;  %v3201_v18 = vcombine.low %v181_v11, %v3196_v15  ;;  %v184_v25 = vld [vmem:[%s3117_s17 + $0x28] sm:$0xf]  ;;  %v2658_v39 = vld [vmem:[%s3117_s17 + $0x24] sm:$0xe] }
  0x22   : > { %1335 = vrot.lane.b32.xlu1 %v1290_v62, %s3076_s19  ;;  %v1024_v20 = vsel %vm499_vm1, %v1019_v3, %v1023_v4  ;;  %v1530_v21 = vrot.slane %v1528_v9, 1  ;;  %v1533_v22 = vshll.u32 %v3186_v7, 16  ;;  %v2801_v26 = vcombine.low %v2657_v6, %v3169_v56  ;;  %v2941_v35 = vld [vmem:[%s3117_s17 + $0x2c] ss:$0 sps:$4 sm:$0x11]  }
  0x23   : > { %v527_v27 = vshll.u32 %v3201_v18, 16  ;;  %v1543_v28 = vor.u32 %v1542_v13, %v1538_v10  ;;  %v1547_v30 = vrot.slane %v1545_v14, 1  ;;  %v532_v31 = vshll.u32 %v3204_v19, 16  ;;  %v228_v44 = vld [vmem:[%s3117_s17 + $0x24] sm:$0xe] }
  0x24   : > { %694 = vrot.lane.b32.xlu0 %v523_v8, %s3078_s23  ;;  %v3214_v32 = vcombine.low %v183_v24, %v184_v25  ;;  %v525_v33 = vshrl.u32 %v3201_v18, 16  ;;  %v1531_v36 = vor.u32 %v1530_v21, %v1526_v17  ;;  %v1535_v37 = vrot.slane %v1533_v22, 1  ;;  %v227_v50 = vld [vmem:[%s3117_s17 + $0x18] sm:$0xe]  ;;  %v2551_v53 = vld [vmem:[%s3117_s17 + $0x30] sm:$0xf] }
  0x25   : > { %v529_v34 = vrot.slane %v527_v27, 1  ;;  %v1548_v40 = vsel %vm499_vm1, %v1543_v28, %v1547_v30  ;;  %v534_v41 = vrot.slane %v532_v31, 1  ;;  %v1797_v42 = vrot.slane %v2801_v26, 1  ;;  %v2552_v54 = vld [vmem:[%s3117_s17 + $0x34] sm:$0xf] }
  0x26   : > { %1207 = vrot.lane.b32.xlu1 %v1036_v16, %s3079_s26  ;;  %v539_v38 = vshll.u32 %v3214_v32, 16  ;;  %v1798_v43 = vrot.slane %v3186_v7, 1  ;;  %v537_v46 = vshrl.u32 %v3214_v32, 16  ;;  %v544_v49 = vshll.u32 %v2941_v35, 16  ;;  %v2549_v55 = vld [vmem:[%s3117_s17 + $0x24] sm:$0xf] }
  0x27   : > { %v530_v45 = vor.u32 %v529_v34, %v525_v33  ;;  %v2802_v51 = vcombine.low %v2658_v39, %v3163_v48  ;;  %v1536_v52 = vsel %vm499_vm1, %v1531_v36, %v1535_v37  ;;  %v2550_v56 = vld [vmem:[%s3117_s17 + $0x28] sm:$0xf]  ;;  %v2708_v58 = vcombine.low %v228_v44, %v184_v25  ;;  %v3242_v3 = vld [vmem:[%s3117_s17 + $0x38] ss:$0 sps:$4 sm:$0x11]  }
  0x28   : > { %1205 = vrot.lane.b32.xlu0 %v1024_v20, %s3079_s26  ;;  %v541_v47 = vrot.slane %v539_v38, 1  ;;  %v1799_v57 = vsel %vm772_vm0, %v1797_v42, %v1798_v43  ;;  %v2724_v48 = vcombine.low %v2551_v53, %v2552_v54  ;;  %v1801_v63 = vrot.slane %v3182_v2, 1  ;;  %v2949_v11 = vld [vmem:[%s3117_s17 + $0x2c] ss:$0 sps:$4 sm:$0x11]  }
  0x29   : > { %v535_v59 = vsel %vm499_vm1, %v530_v45, %v534_v41  ;;  %v1800_v62 = vrot.slane %v2802_v51, 1  ;;  %v2707_v0 = vcombine.low %v227_v50, %v3196_v15  ;;  %v782_v5 = vrot.slane %v2708_v58, 1  ;;  %v2596_v12 = vld [vmem:[%s3117_s17 + $0x30] sm:$0xe]  ;;  %v2595_v13 = vld [vmem:[%s3117_s17 + $0x24] sm:$0xe] }
  0x2a   : > { %1447 = vrot.lane.b32.xlu1 %v2770_v61, %s3080_s27  ;;  %v542_v60 = vor.u32 %v541_v47, %v537_v46  ;;  %v546_v61 = vrot.slane %v544_v49, 1  ;;  %v783_v6 = vrot.slane %v2941_v35, 1  ;;  %v1052_v7 = vshll.u32 %v2724_v48, 16  ;;  %v2615_v21 = vld [vmem:[%s3117_s17 + $0x3c] sm:$0xf] }
  0x2b   : > { %v1802_v2 = vsel %vm772_vm0, %v1800_v62, %v1801_v63  ;;  %v779_v8 = vrot.slane %v2707_v0, 1  ;;  %v780_v9 = vrot.slane %v3204_v19, 1  ;;  %v1050_v14 = vshrl.u32 %v2724_v48, 16  ;;  %v3257_v22 = vld [vmem:[%s3117_s17 + $0x40] sm:$0xf] }
  0x2c   : > { %1445 = vrot.lane.b32.xlu0 %v2769_v1, %s3080_s27  ;;  %v2723_v1 = vcombine.low %v2549_v55, %v2550_v56  ;;  %v547_v4 = vsel %vm499_vm1, %v542_v60, %v546_v61  ;;  %v1057_v15 = vshll.u32 %v3242_v3, 16  ;;  %v784_v16 = vsel %vm772_vm0, %v782_v5, %v783_v6  ;;  %v2613_v26 = vld [vmem:[%s3117_s17 + $0x30] sm:$0xf]  ;;  %v2614_v27 = vld [vmem:[%s3117_s17 + $0x34] sm:$0xf] }
  0x2d   : > { %v1054_v17 = vrot.slane %v1052_v7, 1  ;;  %v781_v19 = vsel %vm772_vm0, %v779_v8, %v780_v9  ;;  %v1045_v25 = vshll.u32 %v2949_v11, 16  ;;  %v2756_v28 = vcombine.low %v2596_v12, %v2552_v54  ;;  %v185_v38 = vld [vmem:[%s3117_s17 + $0x30] sm:$0xf]  ;;  %v3267_v39 = vld [vmem:[%s3117_s17 + $0x34] sm:$0xf] }
  0x2e   : > { %1719 = vrot.lane.b32.xlu1 %v1548_v40, %s3081_s28  ;;  %v1040_v10 = vshll.u32 %v2723_v1, 16  ;;  %v1038_v20 = vshrl.u32 %v2723_v1, 16  ;;  %v2755_v30 = vcombine.low %v2595_v13, %v2550_v56  ;;  %v2772_v31 = vcombine.low %v2615_v21, %v3257_v22  ;;  %v3272_v45 = vld [vmem:[%s3117_s17 + $0x44] ss:$0 sps:$4 sm:$0x11]  }
  0x2f   : > { %v1055_v33 = vor.u32 %v1054_v17, %v1050_v14  ;;  %v1059_v34 = vrot.slane %v1057_v15, 1  ;;  %v2771_v35 = vcombine.low %v2613_v26, %v2614_v27  ;;  %v1047_v37 = vrot.slane %v1045_v25, 1  ;;  %v2955_v49 = vld [vmem:[%s3117_s17 + $0x38] ss:$0 sps:$4 sm:$0x11]  }
  0x30   : > { %1717 = vrot.lane.b32.xlu0 %v1536_v52, %s3081_s28  ;;  %v1042_v24 = vrot.slane %v1040_v10, 1  ;;  %v1294_v40 = vrot.slane %v2756_v28, 1  ;;  %v1295_v41 = vrot.slane %v3242_v3, 1  ;;  %v1291_v42 = vrot.slane %v2755_v30, 1  ;;  %v187_v52 = vld [vmem:[%s3117_s17 + $0x3c] sm:$0xf] }
  0x31   : > { %v1292_v43 = vrot.slane %v2949_v11, 1  ;;  %v1564_v44 = vshll.u32 %v2772_v31, 16  ;;  %v1060_v46 = vsel %vm499_vm1, %v1055_v33, %v1059_v34  ;;  %v1552_v47 = vshll.u32 %v2771_v35, 16  ;;  %v188_v53 = vld [vmem:[%s3117_s17 + $0x40] sm:$0xf] }
  0x32   : > { %696 = vrot.lane.b32.xlu1 %v535_v59, %s3078_s23  ;;  %v1043_v36 = vor.u32 %v1042_v24, %v1038_v20  ;;  %v3278_v50 = vcombine.low %v185_v38, %v3267_v39  ;;  %v1562_v54 = vshrl.u32 %v2772_v31, 16  ;;  %v1569_v56 = vshll.u32 %v3272_v45, 16  ;;  %v2659_v59 = vld [vmem:[%s3117_s17 + $0x30] sm:$0xe]  ;;  %v230_v24 = vld [vmem:[%s3117_s17 + $0x3c] sm:$0xe] }
  0x33   : > { %v1566_v55 = vrot.slane %v1564_v44, 1  ;;  %v1296_v58 = vsel %vm772_vm0, %v1294_v40, %v1295_v41  ;;  %v3292_v61 = vcombine.low %v187_v52, %v188_v53  ;;  %v1550_v62 = vshrl.u32 %v2771_v35, 16  ;;  %v2959_v8 = vld [vmem:[%s3117_s17 + $0x44] ss:$0 sps:$4 sm:$0x11]  }
  0x34   : > { %1845 = vrot.lane.b32.xlu0 %v1799_v57, %s3082_s29  ;;  %v1048_v51 = vsel %vm499_vm1, %v1043_v36, %v1047_v37  ;;  %v3286_v57 = vld [vmem:[%s3117_s17 + $0x38] ss:$0 sps:$4 sm:$0x11]   ;;  %v551_v60 = vshll.u32 %v3278_v50, 16  ;;  %v1554_v63 = vrot.slane %v1552_v47, 1  ;;  %v1557_v0 = vshll.u32 %v2955_v49, 16 }
  0x35   : > { %v2803_v3 = vcombine.low %v2659_v59, %v2614_v27  ;;  %v1571_v5 = vrot.slane %v1569_v56, 1  ;;  %v556_v6 = vshll.u32 %v3286_v57, 16  ;;  %v549_v7 = vshrl.u32 %v3278_v50, 16  ;;  %v2556_v26 = vld [vmem:[%s3117_s17 + $0x4c] sm:$0xf] }
  0x36   : > { %698 = vrot.lane.b32.xlu1 %v547_v4, %s3078_s23  ;;  %v1567_v4 = vor.u32 %v1566_v55, %v1562_v54  ;;  %v563_v9 = vshll.u32 %v3292_v61, 16  ;;  %v1555_v10 = vor.u32 %v1554_v63, %v1550_v62  ;;  %v1559_v11 = vrot.slane %v1557_v0, 1  ;;  %v229_v27 = vld [vmem:[%s3117_s17 + $0x30] sm:$0xe]  ;;  %v2553_v28 = vld [vmem:[%s3117_s17 + $0x3c] sm:$0xf] }
  0x37   : > { %v558_v14 = vrot.slane %v556_v6, 1  ;;  %v1803_v15 = vrot.slane %v2803_v3, 1  ;;  %v561_v20 = vshrl.u32 %v3292_v61, 16  ;;  %v2554_v30 = vld [vmem:[%s3117_s17 + $0x40] sm:$0xf]  ;;  %v2710_v33 = vcombine.low %v230_v24, %v188_v53 }
  0x38   : > { %1847 = vrot.lane.b32.xlu0 %v1802_v2, %s3082_s29  ;;  %v553_v2 = vrot.slane %v551_v60, 1  ;;  %v1572_v13 = vsel %vm499_vm1, %v1567_v4, %v1571_v5  ;;  %v565_v21 = vrot.slane %v563_v9, 1  ;;  %v1560_v25 = vsel %vm499_vm1, %v1555_v10, %v1559_v11  ;;  %v2967_v53 = vld [vmem:[%s3117_s17 + $0x44] ss:$0 sps:$4 sm:$0x11]  }
  0x39   : > { %v1807_v40 = vrot.slane %v3272_v45, 1  ;;  %v2709_v41 = vcombine.low %v229_v27, %v3267_v39  ;;  %v788_v44 = vrot.slane %v2710_v33, 1  ;;  %v786_v52 = vrot.slane %v3286_v57, 1  ;;  %v2619_v54 = vld [vmem:[%s3117_s17 + $0x54] sm:$0xf] }
  0x3a   : > { %827 = vrot.lane.b32.xlu1 %v784_v16, %s3077_s20  ;;  %v1804_v16 = vrot.slane %v2955_v49, 1  ;;  %v554_v17 = vor.u32 %v553_v2, %v549_v7  ;;  %v2966_v49 = vld [vmem:[%s3117_s17 + $0x50] ss:$0 sps:$4 sm:$0x11]   ;;  %v3330_v55 = vld [vmem:[%s3117_s17 + $0x58] sm:$0xf] }
  0x3b   : > { %v785_v45 = vrot.slane %v2709_v41, 1  ;;  %v2597_v62 = vld [vmem:[%s3117_s17 + $0x3c] sm:$0xe]  ;;  %v2774_v3 = vcombine.low %v2619_v54, %v3330_v55  ;;  %v2617_v4 = vld [vmem:[%s3117_s17 + $0x48] sm:$0xf] }
  0x3c   : > { %825 = vrot.lane.b32.xlu0 %v781_v19, %s3077_s20  ;;  %v568_v19 = vshll.u32 %v2959_v8, 16  ;;  %v559_v34 = vsel %vm499_vm1, %v554_v17, %v558_v14  ;;  %v1805_v38 = vsel %vm772_vm0, %v1803_v15, %v1804_v16  ;;  %v3340_v5 = vld [vmem:[%s3117_s17 + $0x4c] sm:$0xf]  ;;  %v2757_v7 = vcombine.low %v2597_v62, %v2554_v30  ;;  %v189_v9 = vld [vmem:[%s3117_s17 + $0x48] sm:$0xf] }
  0x3d   : > { %v787_v57 = vsel %vm772_vm0, %v785_v45, %v786_v52  ;;  %v3346_v10 = vld [vmem:[%s3117_s17 + $0x4c] sm:$0xf]  ;;  %v1588_v14 = vshll.u32 %v2774_v3, 16  ;;  %v1301_v16 = vrot.slane %v2966_v49, 1  ;;  %v191_v27 = vld [vmem:[%s3117_s17 + $0x54] sm:$0xf] }
  0x3e   : > { %939 = vrot.lane.b32.xlu1 %v2724_v48, %s3075_s18  ;;  %v1293_v48 = vsel %vm772_vm0, %v1291_v42, %v1292_v43  ;;  %v570_v36 = vrot.slane %v568_v19, 1  ;;  %v2725_v42 = vcombine.low %v2553_v28, %v2554_v30  ;;  %v3351_v17 = vld [vmem:[%s3117_s17 + $0x5c] ss:$0 sps:$4 sm:$0x11]   ;;  %v1297_v19 = vrot.slane %v2757_v7, 1 }
  0x3f   : > { %v3359_v24 = vld [vmem:[%s3117_s17 + $0x50] ss:$0 sps:$4 sm:$0x11]   ;;  %v3364_v28 = vld [vmem:[%s3117_s17 + $0x58] sm:$0xf]  ;;  %v1586_v30 = vshrl.u32 %v2774_v3, 16 }
  0x40   : > { %937 = vrot.lane.b32.xlu0 %v2723_v1, %s3075_s18  ;;  %v2660_v1 = vld [vmem:[%s3117_s17 + $0x3c] sm:$0xe]  ;;  %v1064_v39 = vshll.u32 %v2725_v42, 16  ;;  %v1062_v63 = vshrl.u32 %v2725_v42, 16  ;;  %v1593_v33 = vshll.u32 %v3351_v17, 16 }
  0x41   : > { %v2804_v12 = vcombine.low %v2660_v1, %v3257_v22  ;;  %v2555_v22 = vld [vmem:[%s3117_s17 + $0x48] sm:$0xf]  ;;  %v1069_v1 = vshll.u32 %v2967_v53, 16  ;;  %v2977_v52 = vld [vmem:[%s3117_s17 + $0x5c] ss:$0 sps:$4 sm:$0x11]  }
  0x42   : > { %1211 = vrot.lane.b32.xlu1 %v1060_v46, %s3079_s26  ;;  %v2726_v37 = vcombine.low %v2555_v22, %v2556_v26  ;;  %v789_v46 = vrot.slane %v2959_v8, 1  ;;  %v1066_v0 = vrot.slane %v1064_v39, 1  ;;  %v1298_v22 = vrot.slane %v2967_v53, 1  ;;  %v2559_v62 = vld [vmem:[%s3117_s17 + $0x60] sm:$0xf] }
  0x43   : > { %v231_v7 = vld [vmem:[%s3117_s17 + $0x48] sm:$0xe] }
  0x44   : > { %1209 = vrot.lane.b32.xlu0 %v1048_v51, %s3079_s26  ;;  %v1076_v47 = vshll.u32 %v2726_v37, 16  ;;  %v790_v56 = vsel %vm772_vm0, %v788_v44, %v789_v46  ;;  %v1074_v59 = vshrl.u32 %v2726_v37, 16  ;;  %v1067_v11 = vor.u32 %v1066_v0, %v1062_v63  ;;  %v2661_v44 = vld [vmem:[%s3117_s17 + $0x48] sm:$0xe] }
  0x45   : > { %v2805_v53 = vcombine.low %v2661_v44, %v3340_v5 }
  0x46   : > { %1339 = vrot.lane.b32.xlu1 %v1296_v58, %s3076_s19  ;;  %v2598_v58 = vld [vmem:[%s3117_s17 + $0x48] sm:$0xe]  ;;  %v1078_v60 = vrot.slane %v1076_v47, 1  ;;  %v1595_v47 = vrot.slane %v1593_v33, 1 }
  0x47   : > { %v2758_v6 = vcombine.low %v2598_v58, %v2556_v26  ;;  %v3006_v58 = vld [vmem:[%s4177_s1 + $0x10] ss:$0 sps:$4 sm:$0x33]  }
  0x48   : > { %1337 = vrot.lane.b32.xlu0 %v1293_v48, %s3076_s19  ;;  %v1081_v48 = vshll.u32 %v2966_v49, 16  ;;  %v1079_v2 = vor.u32 %v1078_v60, %v1074_v59  ;;  %2901 = vmatprep.subr.msk.bf16.mxu0 %vm2194_vm2, %v3006_v58 }
  0x49   : > { %v1300_v15 = vrot.slane %v2758_v6, 1  ;;  %v1810_v6 = vrot.slane %v3359_v24, 1  ;;  %2902 = vmatprep.subr.msk.bf16.mxu1 %vm2194_vm2, %v3006_v58 }
  0x4a   : > { %1451 = vrot.lane.b32.xlu1 %v2772_v31, %s3080_s27  ;;  %v1806_v31 = vrot.slane %v2804_v12, 1  ;;  %v1083_v8 = vrot.slane %v1081_v48, 1  ;;  %v1071_v12 = vrot.slane %v1069_v1, 1 }
  0x4c   : > { %1449 = vrot.lane.b32.xlu0 %v2771_v35, %s3080_s27  ;;  %v566_v35 = vor.u32 %v565_v21, %v561_v20  ;;  %v1808_v51 = vsel %vm772_vm0, %v1806_v31, %v1807_v40  ;;  %v3354_v20 = vcombine.low %v189_v9, %v3346_v10  ;;  %v1084_v21 = vsel %vm499_vm1, %v1079_v2, %v1083_v8  ;;  %v2557_v2 = vld [vmem:[%s3117_s17 + $0x54] sm:$0xf]  ;;  %v3406_v8 = vld [vmem:[%s3117_s17 + $0x58] sm:$0xf] }
  0x4d   : > { %v1590_v31 = vrot.slane %v1588_v14, 1  ;;  %v2196_v9 = vsel %vm2194_vm2, %v3006_v58, 0 }
  0x4e   : > { %1723 = vrot.lane.b32.xlu1 %v1572_v13, %s3081_s28  ;;  %v571_v43 = vsel %vm499_vm1, %v566_v35, %v570_v36  ;;  %v2773_v13 = vcombine.low %v2617_v4, %v3340_v5  ;;  %v575_v35 = vshll.u32 %v3354_v20, 16  ;;  %v1302_v36 = vsel %vm772_vm0, %v1300_v15, %v1301_v16  ;;  %v3399_v5 = vld [vmem:[%s3117_s17 + $0x64] sm:$0xf]  ;;  %2862 = vmatpush3.bf16.msra.mxu0 %v2196_v9 }
  0x4f   : > { %v1591_v46 = vor.u32 %v1590_v31, %v1586_v30  ;;  %v573_v49 = vshrl.u32 %v3354_v20, 16  ;;  %v592_v4 = vshll.u32 %v2977_v52, 16  ;;  %2900 = vmatpush3.bf16.msra.mxu1 %v2196_v9  ;;  %v2984_v30 = vld [vmem:[%s3117_s17 + $0x68] ss:$0 sps:$4 sm:$0x11]  }
  0x50   : > { %1721 = vrot.lane.b32.xlu0 %v1560_v25, %s3081_s28  ;;  %v1072_v25 = vsel %vm499_vm1, %v1067_v11, %v1071_v12  ;;  %v1576_v26 = vshll.u32 %v2773_v13, 16  ;;  %v1574_v40 = vshrl.u32 %v2773_v13, 16  ;;  %v2728_v12 = vcombine.low %v2559_v62, %v3399_v5  ;;  %v2985_v31 = vld [vmem:[%s3117_s17 + $0x5c] ss:$0 sps:$4 sm:$0x11]  }
  0x51   : > { %v1596_v60 = vsel %vm499_vm1, %v1591_v46, %v1595_v47  ;;  %v594_v15 = vrot.slane %v592_v4, 1  ;;  %v1105_v44 = vshll.u32 %v2984_v30, 16  ;;  %v1093_v46 = vshll.u32 %v2985_v31, 16  ;;  %v3443_v62 = vld [vmem:[%s3117_s17 + $0x64] sm:$0xf] }
  0x52   : > { %700 = vrot.lane.b32.xlu1 %v559_v34, %s3078_s23  ;;  %v3369_v34 = vld [vmem:[%s3117_s17 + $0x50] ss:$0 sps:$4 sm:$0x11]   ;;  %v1578_v41 = vrot.slane %v1576_v26, 1  ;;  %v795_v26 = vrot.slane %v2977_v52, 1 }
  0x53   : > { %v580_v45 = vshll.u32 %v3369_v34, 16  ;;  %v792_v33 = vrot.slane %v3369_v34, 1  ;;  %v2599_v34 = vld [vmem:[%s3117_s17 + $0x54] sm:$0xe]  ;;  %v2621_v52 = vld [vmem:[%s3117_s17 + $0x60] sm:$0xf] }
  0x54   : > { %1849 = vrot.lane.b32.xlu0 %v1805_v38, %s3082_s29  ;;  %v1299_v38 = vsel %vm772_vm0, %v1297_v19, %v1298_v22  ;;  %v1579_v54 = vor.u32 %v1578_v41, %v1574_v40  ;;  %v1813_v19 = vrot.slane %v3351_v17, 1  ;;  %v3428_v40 = vld [vmem:[%s3117_s17 + $0x70] sm:$0xf]  ;;  %v2600_v41 = vld [vmem:[%s3117_s17 + $0x60] sm:$0xe]  ;;  %v1107_v58 = vrot.slane %v1105_v44, 1 }
  0x55   : > { %v582_v48 = vrot.slane %v580_v45, 1  ;;  %v195_v9 = vld [vmem:[%s3117_s17 + $0x6c] sm:$0xf] }
  0x56   : > { %702 = vrot.lane.b32.xlu1 %v571_v43, %s3078_s23  ;;  %v2662_v43 = vld [vmem:[%s3117_s17 + $0x54] sm:$0xe]  ;;  %v2664_v44 = vld [vmem:[%s3117_s17 + $0x6c] sm:$0xe] }
  0x57   : > { %v2806_v59 = vcombine.low %v2662_v43, %v3330_v55 }
  0x58   : > { %1851 = vrot.lane.b32.xlu0 %v1808_v51, %s3082_s29  ;;  %v577_v51 = vrot.slane %v575_v35, 1 }
  0x59   : > { %v1812_v16 = vrot.slane %v2806_v59, 1  ;;  %v1095_v59 = vrot.slane %v1093_v46, 1 }
  0x5a   : > { %831 = vrot.lane.b32.xlu1 %v790_v56, %s3077_s20  ;;  %v578_v63 = vor.u32 %v577_v51, %v573_v49 }
  0x5c   : > { %829 = vrot.lane.b32.xlu0 %v787_v57, %s3077_s20  ;;  %v232_v57 = vld [vmem:[%s3117_s17 + $0x54] sm:$0xe] }
  0x5d   : > { %v2712_v11 = vcombine.low %v232_v57, %v3364_v28  ;;  %v193_v57 = vld [vmem:[%s3117_s17 + $0x60] sm:$0xf] }
  0x5e   : > { %943 = vrot.lane.b32.xlu1 %v2726_v37, %s3075_s18  ;;  %v3375_v37 = vcombine.low %v191_v27, %v3364_v28  ;;  %v1100_v27 = vshll.u32 %v2728_v12, 16 }
  0x5f   : > { %v794_v22 = vrot.slane %v2712_v11, 1  ;;  %v3458_v11 = vld [vmem:[%s3117_s17 + $0x70] sm:$0xf] }
  0x60   : > { %941 = vrot.lane.b32.xlu0 %v2725_v42, %s3075_s18  ;;  %v1581_v42 = vshll.u32 %v3359_v24, 16  ;;  %v587_v39 = vshll.u32 %v3375_v37, 16  ;;  %v585_v0 = vshrl.u32 %v3375_v37, 16  ;;  %v2711_v24 = vcombine.low %v231_v7, %v3346_v10 }
  0x61   : > { %v1814_v10 = vsel %vm772_vm0, %v1812_v16, %v1813_v19  ;;  %v1102_v43 = vrot.slane %v1100_v27, 1 }
  0x62   : > { %1215 = vrot.lane.b32.xlu1 %v1084_v21, %s3079_s26  ;;  %v1583_v56 = vrot.slane %v1581_v42, 1  ;;  %v589_v1 = vrot.slane %v587_v39, 1  ;;  %v791_v17 = vrot.slane %v2711_v24, 1  ;;  %v1098_v42 = vshrl.u32 %v2728_v12, 16  ;;  %v2622_v39 = vld [vmem:[%s3117_s17 + $0x64] sm:$0xf] }
  0x63   : > { %v3470_v24 = vcombine.low %v195_v9, %v3458_v11 }
  0x64   : > { %1213 = vrot.lane.b32.xlu0 %v1072_v25, %s3079_s26  ;;  %v1584_v55 = vsel %vm499_vm1, %v1579_v54, %v1583_v56  ;;  %v590_v14 = vor.u32 %v589_v1, %v585_v0  ;;  %v2727_v25 = vcombine.low %v2557_v2, %v3406_v8  ;;  %v793_v47 = vsel %vm772_vm0, %v791_v17, %v792_v33  ;;  %v3447_v1 = vld [vmem:[%s3117_s17 + $0x74] ss:$0 sps:$4 sm:$0x11]  }
  0x65   : > { %v2759_v54 = vcombine.low %v2599_v34, %v3406_v8  ;;  %v1103_v56 = vor.u32 %v1102_v43, %v1098_v42  ;;  %v1304_v2 = vrot.slane %v2985_v31, 1  ;;  %v1819_v9 = vrot.slane %v3447_v1, 1 }
  0x66   : > { %1343 = vrot.lane.b32.xlu1 %v1302_v36, %s3076_s19  ;;  %v595_v28 = vsel %vm499_vm1, %v590_v14, %v594_v15  ;;  %v1088_v35 = vshll.u32 %v2727_v25, 16  ;;  %v796_v36 = vsel %vm772_vm0, %v794_v22, %v795_v26  ;;  %v1086_v49 = vshrl.u32 %v2727_v25, 16  ;;  %v3463_v15 = vld [vmem:[%s3117_s17 + $0x68] ss:$0 sps:$4 sm:$0x11]  }
  0x67   : > { %v1108_v4 = vsel %vm499_vm1, %v1103_v56, %v1107_v58  ;;  %v1617_v14 = vshll.u32 %v3447_v1, 16  ;;  %v604_v33 = vshll.u32 %v3463_v15, 16  ;;  %v2808_v58 = vcombine.low %v2664_v44, %v3428_v40 }
  0x68   : > { %1341 = vrot.lane.b32.xlu0 %v1299_v38, %s3076_s19  ;;  %v2623_v38 = vld [vmem:[%s3117_s17 + $0x6c] sm:$0xf]  ;;  %v1090_v51 = vrot.slane %v1088_v35, 1 }
  0x69   : > { %v2776_v45 = vcombine.low %v2623_v38, %v3428_v40  ;;  %v1619_v17 = vrot.slane %v1617_v14, 1  ;;  %v2995_v38 = vld [vmem:[%s3117_s17 + $0x74] ss:$0 sps:$4 sm:$0x11]  }
  0x6a   : > { %1455 = vrot.lane.b32.xlu1 %v2774_v3, %s3080_s27  ;;  %v1809_v3 = vrot.slane %v2805_v53, 1  ;;  %v2760_v53 = vcombine.low %v2600_v41, %v3399_v5  ;;  %v1307_v5 = vrot.slane %v2984_v30, 1  ;;  %v611_v41 = vshll.u32 %v3470_v24, 16 }
  0x6b   : > { %v616_v56 = vshll.u32 %v2995_v38, 16  ;;  %v801_v14 = vrot.slane %v2995_v38, 1 }
  0x6c   : > { %1453 = vrot.lane.b32.xlu0 %v2773_v13, %s3080_s27  ;;  %v583_v13 = vsel %vm499_vm1, %v578_v63, %v582_v48  ;;  %v1811_v21 = vsel %vm772_vm0, %v1809_v3, %v1810_v6  ;;  %v2775_v48 = vcombine.low %v2621_v52, %v2622_v39  ;;  %v1612_v63 = vshll.u32 %v2776_v45, 16  ;;  %v2991_v3 = vld [vmem:[%s3117_s17 + $0x68] ss:$0 sps:$4 sm:$0x11]  }
  0x6d   : > { %v1306_v0 = vrot.slane %v2760_v53, 1  ;;  %v3453_v6 = vcombine.low %v193_v57, %v3443_v62  ;;  %v1605_v27 = vshll.u32 %v2991_v3, 16  ;;  %v609_v53 = vshrl.u32 %v3470_v24, 16  ;;  %v2563_v57 = vld [vmem:[%s3117_s17 + $0x78] sm:$0xf] }
  0x6e   : > { %1727 = vrot.lane.b32.xlu1 %v1596_v60, %s3081_s28  ;;  %v1091_v60 = vor.u32 %v1090_v51, %v1086_v49  ;;  %v1600_v8 = vshll.u32 %v2775_v48, 16  ;;  %v1598_v22 = vshrl.u32 %v2775_v48, 16  ;;  %v1816_v49 = vrot.slane %v2991_v3, 1  ;;  %v234_v51 = vld [vmem:[%s3117_s17 + $0x6c] sm:$0xe] }
  0x6f   : > { %v1308_v16 = vsel %vm772_vm0, %v1306_v0, %v1307_v5  ;;  %v599_v19 = vshll.u32 %v3453_v6, 16  ;;  %v597_v35 = vshrl.u32 %v3453_v6, 16  ;;  %v1607_v43 = vrot.slane %v1605_v27, 1  ;;  %v2561_v0 = vld [vmem:[%s3117_s17 + $0x6c] sm:$0xf] }
  0x70   : > { %1725 = vrot.lane.b32.xlu0 %v1584_v55, %s3081_s28  ;;  %v1303_v55 = vrot.slane %v2759_v54, 1  ;;  %v1096_v7 = vsel %vm499_vm1, %v1091_v60, %v1095_v59  ;;  %v1602_v26 = vrot.slane %v1600_v8, 1  ;;  %v613_v54 = vrot.slane %v611_v41, 1 }
  0x71   : > { %v2714_v5 = vcombine.low %v234_v51, %v3458_v11  ;;  %v618_v3 = vrot.slane %v616_v56, 1  ;;  %v1818_v8 = vrot.slane %v2808_v58, 1  ;;  %v3552_v51 = vld [vmem:[%s3117_s17 + $0x7c] sm:$0xf] }
  0x72   : > { %704 = vrot.lane.b32.xlu1 %v583_v13, %s3078_s23  ;;  %v1614_v13 = vrot.slane %v1612_v63, 1  ;;  %v1603_v42 = vor.u32 %v1602_v26, %v1598_v22  ;;  %v3498_v63 = vld [vmem:[%s3117_s17 + $0x7c] sm:$0xf]  ;;  %v798_v26 = vrot.slane %v3463_v15, 1 }
  0x74   : > { %1853 = vrot.lane.b32.xlu0 %v1811_v21, %s3082_s29  ;;  %v2663_v21 = vld [vmem:[%s3117_s17 + $0x60] sm:$0xe]  ;;  %v1608_v60 = vsel %vm499_vm1, %v1603_v42, %v1607_v43  ;;  %v2627_v42 = vld [vmem:[%s3117_s17 + $0x84] sm:$0xf]  ;;  %v3544_v43 = vld [vmem:[%s3117_s17 + $0x88] sm:$0xf] }
  0x75   : > { %v2807_v31 = vcombine.low %v2663_v21, %v2622_v39 }
  0x76   : > { %706 = vrot.lane.b32.xlu1 %v595_v28, %s3078_s23 }
  0x77   : > { %v1815_v34 = vrot.slane %v2807_v31, 1  ;;  %v3532_v31 = vld [vmem:[%s3117_s17 + $0x74] ss:$0 sps:$4 sm:$0x11]  }
  0x78   : > { %1855 = vrot.lane.b32.xlu0 %v1814_v10, %s3082_s29 }
  0x7a   : > { %835 = vrot.lane.b32.xlu1 %v796_v36, %s3077_s20  ;;  %v601_v36 = vrot.slane %v599_v19, 1  ;;  %v800_v19 = vrot.slane %v2714_v5, 1  ;;  %v197_v5 = vld [vmem:[%s3117_s17 + $0x78] sm:$0xf] }
  0x7c   : > { %833 = vrot.lane.b32.xlu0 %v793_v47, %s3077_s20  ;;  %v606_v47 = vrot.slane %v604_v33, 1  ;;  %v602_v39 = vor.u32 %v601_v36, %v597_v35  ;;  %v2601_v33 = vld [vmem:[%s3117_s17 + $0x6c] sm:$0xe]  ;;  %v802_v15 = vsel %vm772_vm0, %v800_v19, %v801_v14 }
  0x7e   : > { %947 = vrot.lane.b32.xlu1 %v2728_v12, %s3075_s18  ;;  %v1610_v12 = vshrl.u32 %v2776_v45, 16  ;;  %v607_v40 = vsel %vm499_vm1, %v602_v39, %v606_v47 }
  0x80   : > { %945 = vrot.lane.b32.xlu0 %v2727_v25, %s3075_s18  ;;  %v1305_v25 = vsel %vm772_vm0, %v1303_v55, %v1304_v2  ;;  %v1615_v10 = vor.u32 %v1614_v13, %v1610_v12  ;;  %v614_v55 = vor.u32 %v613_v54, %v609_v53 }
  0x82   : > { %1219 = vrot.lane.b32.xlu1 %v1108_v4, %s3079_s26  ;;  %v1620_v46 = vsel %vm499_vm1, %v1615_v10, %v1619_v17  ;;  %v3502_v4 = vld [vmem:[%s3117_s17 + $0x70] sm:$0xf]  ;;  %v619_v21 = vsel %vm499_vm1, %v614_v55, %v618_v3  ;;  %v2602_v17 = vld [vmem:[%s3117_s17 + $0x78] sm:$0xe] }
  0x83   : > { %v3517_v13 = vcombine.low %v2561_v0, %v3502_v4  ;;  %v2762_v54 = vcombine.low %v2602_v17, %v3498_v63  ;;  %v2761_v56 = vcombine.low %v2601_v33, %v3502_v4 }
  0x84   : > { %1217 = vrot.lane.b32.xlu0 %v1096_v7, %s3079_s26  ;;  %v3510_v7 = vcombine.low %v2563_v57, %v3498_v63 }
  0x85   : > { %v1112_v27 = vshll.u32 %v3517_v13, 16  ;;  %v1110_v41 = vshrl.u32 %v3517_v13, 16  ;;  %v1312_v55 = vrot.slane %v2762_v54, 1  ;;  %v2666_v54 = vld [vmem:[%s3117_s17 + $0x84] sm:$0xe] }
  0x86   : > { %1347 = vrot.lane.b32.xlu1 %v1308_v16, %s3076_s19  ;;  %v3474_v28 = vpop.permute.xlu1 %935  ;;  %v3521_v16 = vld [vmem:[%s3117_s17 + $0x80] ss:$0 sps:$4 sm:$0x11]   ;;  %v1124_v1 = vshll.u32 %v3510_v7, 16  ;;  %v1122_v35 = vshrl.u32 %v3510_v7, 16 }
  0x87   : > { %v3476_v30 = vpop.permute.xlu0 %933  ;;  %v1129_v36 = vshll.u32 %v3521_v16, 16  ;;  %v1114_v47 = vrot.slane %v1112_v27, 1  ;;  %v1313_v3 = vrot.slane %v3521_v16, 1 }
  0x88   : > { %1345 = vrot.lane.b32.xlu0 %v1305_v25, %s3076_s19  ;;  %v1126_v38 = vrot.slane %v1124_v1, 1 }
  0x89   : > { %v1115_v4 = vor.u32 %v1114_v47, %v1110_v41  ;;  %v1314_v27 = vsel %vm772_vm0, %v1312_v55, %v1313_v3 }
  0x8a   : > { %1459 = vrot.lane.b32.xlu1 %v2776_v45, %s3080_s27  ;;  %v233_v45 = vld [vmem:[%s3117_s17 + $0x60] sm:$0xe] }
  0x8b   : > { %v3488_v52 = vpop.permute.xlu0 %1333  ;;  %v2713_v12 = vcombine.low %v233_v45, %v3443_v62  ;;  %v1820_v62 = vsel %vm772_vm0, %v1818_v8, %v1819_v9  ;;  %v3560_v45 = vcombine.low %v2627_v42, %v3544_v43  ;;  %v1309_v8 = vrot.slane %v2761_v56, 1 }
  0x8c   : > { %1457 = vrot.lane.b32.xlu0 %v2775_v48, %s3080_s27  ;;  %v3493_v59 = vpop.permute.xlu1 %821  ;;  %v1817_v48 = vsel %vm772_vm0, %v1815_v34, %v1816_v49  ;;  %v1117_v34 = vshll.u32 %v3532_v31, 16  ;;  %v2625_v49 = vld [vmem:[%s3117_s17 + $0x78] sm:$0xf]  ;;  %v1310_v9 = vrot.slane %v3532_v31, 1 }
  0x8d   : > { %v797_v22 = vrot.slane %v2713_v12, 1  ;;  %v3566_v57 = vcombine.low %v2625_v49, %v3552_v51  ;;  %v1636_v12 = vshll.u32 %v3560_v45, 16 }
  0x8e   : > { %1731 = vrot.lane.b32.xlu1 %v1620_v46, %s3081_s28  ;;  %v1311_v31 = vsel %vm772_vm0, %v1309_v8, %v1310_v9 }
  0x8f   : > { %v799_v46 = vsel %vm772_vm0, %v797_v22, %v798_v26  ;;  %v199_v22 = vld [vmem:[%s3117_s17 + $0x84] sm:$0xf]  ;;  %v1638_v17 = vrot.slane %v1636_v12, 1  ;;  %v2810_v12 = vcombine.low %v2666_v54, %v3544_v43  ;;  %v3023_v54 = vld [vmem:[%s3117_s17 + $0x98] ss:$0 sps:$4 sm:$0x11]  }
  0x90   : > { %1729 = vrot.lane.b32.xlu0 %v1608_v60, %s3081_s28  ;;  %v3512_v2 = vpop.permute.xlu1 %823  ;;  %v1131_v60 = vrot.slane %v1129_v36, 1  ;;  %v1622_v36 = vshrl.u32 %v3566_v57, 16 }
  0x92   : > { %v693_v11 = vpop.permute.xlu0 %692  ;;  %708 = vrot.lane.b32.xlu1 %v607_v40, %s3078_s23  ;;  %v3574_v40 = vld [vmem:[%s3117_s17 + $0x7c] sm:$0xf] }
  0x93   : > { %v1879_v39 = vsel %vm1877_vm3, %v3145_v23, %v693_v11  ;;  %v1127_v23 = vor.u32 %v1126_v38, %v1122_v35  ;;  %v3584_v11 = vld [vmem:[%s3117_s17 + $0x8c] ss:$0 sps:$4 sm:$0x11]   ;;  %v3612_v35 = vld [vmem:[%s3117_s17 + $0x80] ss:$0 sps:$4 sm:$0x11]  }
  0x94   : > { %1857 = vrot.lane.b32.xlu0 %v1817_v48, %s3082_s29  ;;  %v3526_v25 = vpop.permute.xlu1 %1335  ;;  %v1912_v63 = vsel %vm1910_vm4, %v1879_v39, %v3493_v59  ;;  %v1119_v48 = vrot.slane %v1117_v34, 1  ;;  %v1641_v33 = vshll.u32 %v3584_v11, 16  ;;  %v2665_v39 = vld [vmem:[%s3117_s17 + $0x78] sm:$0xe] }
  0x95   : > { %v1945_v14 = vsel %vm1943_vm5, %v1912_v63, %v3476_v30  ;;  %v1132_v16 = vsel %vm499_vm1, %v1127_v23, %v1131_v60  ;;  %v3602_v30 = vld [vmem:[%s3117_s17 + $0x88] sm:$0xf]  ;;  %v2809_v55 = vcombine.low %v2665_v39, %v3552_v51 }
  0x96   : > { %v695_v10 = vpop.permute.xlu0 %694  ;;  %710 = vrot.lane.b32.xlu1 %v619_v21, %s3078_s23  ;;  %v3593_v21 = vld [vmem:[%s3117_s17 + $0x80] ss:$0 sps:$4 sm:$0x11]   ;;  %v3620_v38 = vcombine.low %v199_v22, %v3602_v30 }
  0x97   : > { %v1881_v58 = vsel %vm1877_vm3, %v3150_v29, %v695_v10  ;;  %v1634_v10 = vshrl.u32 %v3560_v45, 16  ;;  %v1822_v22 = vrot.slane %v3593_v21, 1 }
  0x98   : > { %1859 = vrot.lane.b32.xlu0 %v1820_v62, %s3082_s29  ;;  %v3546_v44 = vpop.permute.xlu1 %1207  ;;  %v1914_v59 = vsel %vm1910_vm4, %v1881_v58, %v3512_v2  ;;  %v1624_v2 = vshll.u32 %v3566_v57, 16  ;;  %v1120_v62 = vsel %vm499_vm1, %v1115_v4, %v1119_v48  ;;  %v1643_v58 = vrot.slane %v1641_v33, 1  ;;  %v3640_v4 = vld [vmem:[%s3117_s17 + $0x8c] ss:$0 sps:$4 sm:$0x11]  }
  0x99   : > { %v1639_v56 = vor.u32 %v1638_v17, %v1634_v10  ;;  %v635_v48 = vshll.u32 %v3620_v38, 16  ;;  %v640_v43 = vshll.u32 %v3640_v4, 16  ;;  %v3673_v10 = vld [vmem:[%s3117_s17 + $0x88] sm:$0xf]  ;;  %v1824_v17 = vrot.slane %v2810_v12, 1 }
  0x9a   : > { %v1206_v53 = vpop.permute.xlu0 %1205  ;;  %839 = vrot.lane.b32.xlu1 %v802_v15, %s3077_s20  ;;  %v1626_v47 = vrot.slane %v1624_v2, 1 }
  0x9b   : > { %v1978_v19 = vsel %vm1976_vm6, %v1945_v14, %v1206_v53  ;;  %v637_v2 = vrot.slane %v635_v48, 1  ;;  %v2604_v48 = vld [vmem:[%s3117_s17 + $0x90] sm:$0xe] }
  0x9c   : > { %837 = vrot.lane.b32.xlu0 %v799_v46, %s3077_s20  ;;  %v3570_v0 = vpop.permute.xlu1 %1447 }
  0x9e   : > { %v1446_v29 = vpop.permute.xlu0 %1445  ;;  %951 = vrot.lane.b32.xlu1 %v3510_v7, %s3075_s18  ;;  %v3596_v7 = vcombine.low %v197_v5, %v3574_v40 }
  0xa0   : > { %949 = vrot.lane.b32.xlu0 %v3517_v13, %s3075_s18  ;;  %v1720_v1 = vpop.permute.xlu1 %1719  ;;  %v1947_v13 = vsel %vm1943_vm5, %v1914_v59, %v3474_v28  ;;  %v2011_v28 = vsel %vm2009_vm7, %v1978_v19, %v3488_v52  ;;  %v623_v15 = vshll.u32 %v3596_v7, 16  ;;  %v1629_v52 = vshll.u32 %v3593_v21, 16  ;;  %v236_v19 = vld [vmem:[%s3117_s17 + $0x84] sm:$0xe] }
  0xa1   : > { %v1980_v41 = vsel %vm1976_vm6, %v1947_v13, %v3546_v44  ;;  %v2044_v42 = vsel %vm2042_vm8, %v2011_v28, %v1446_v29  ;;  %v628_v44 = vshll.u32 %v3612_v35, 16  ;;  %v621_v60 = vshrl.u32 %v3596_v7, 16  ;;  %v2567_v13 = vld [vmem:[%s3117_s17 + $0x90] sm:$0xf] }
  0xa2   : > { %v1718_v26 = vpop.permute.xlu0 %1717  ;;  %1223 = vrot.lane.b32.xlu1 %v1132_v16, %s3079_s26  ;;  %v2013_v23 = vsel %vm2009_vm7, %v1980_v41, %v3526_v25  ;;  %v625_v63 = vrot.slane %v623_v15, 1  ;;  %v1627_v25 = vor.u32 %v1626_v47, %v1622_v36  ;;  %v1631_v3 = vrot.slane %v1629_v52, 1 }
  0xa3   : > { %v2077_v34 = vsel %vm2075_vm9, %v2044_v42, %v1718_v26  ;;  %v2046_v5 = vsel %vm2042_vm8, %v2013_v23, %v3570_v0  ;;  %v1644_v0 = vsel %vm499_vm1, %v1639_v56, %v1643_v58  ;;  %v630_v14 = vrot.slane %v628_v44, 1  ;;  %v3666_v26 = vld [vmem:[%s3117_s17 + $0x94] sm:$0xf] }
  0xa4   : > { %1221 = vrot.lane.b32.xlu0 %v1120_v62, %s3079_s26  ;;  %v3625_v46 = vpop.permute.xlu1 %696  ;;  %v2079_v59 = vsel %vm2075_vm9, %v2046_v5, %v1720_v1  ;;  %v626_v51 = vor.u32 %v625_v63, %v621_v60  ;;  %v633_v16 = vshrl.u32 %v3620_v38, 16  ;;  %v1821_v62 = vrot.slane %v2809_v55, 1  ;;  %v3024_v60 = vld [vmem:[%s3117_s17 + $0x8c] ss:$0 sps:$4 sm:$0x11]  }
  0xa5   : > { %v2716_v33 = vcombine.low %v236_v19, %v3602_v30  ;;  %v642_v36 = vrot.slane %v640_v43, 1  ;;  %v2732_v15 = vcombine.low %v2567_v13, %v3666_v26  ;;  %v1825_v47 = vrot.slane %v3584_v11, 1  ;;  %v2631_v5 = vld [vmem:[%s3117_s17 + $0x9c] sm:$0xf]  ;;  %v3702_v55 = vld [vmem:[%s3117_s17 + $0xa0] sm:$0xf] }
  0xa6   : > { %v1846_v49 = vpop.permute.xlu0 %1845  ;;  %1351 = vrot.lane.b32.xlu1 %v1314_v27, %s3076_s19  ;;  %v235_v27 = vld [vmem:[%s3117_s17 + $0x78] sm:$0xe]  ;;  %v631_v28 = vsel %vm499_vm1, %v626_v51, %v630_v14  ;;  %v638_v21 = vor.u32 %v637_v2, %v633_v16  ;;  %v1823_v42 = vsel %vm772_vm0, %v1821_v62, %v1822_v22  ;;  %v804_v44 = vrot.slane %v3612_v35, 1  ;;  %v2629_v43 = vld [vmem:[%s3117_s17 + $0x90] sm:$0xf] }
  0xa7   : > { %v2110_v53 = vsel %vm2108_vm10, %v2077_v34, %v1846_v49  ;;  %v2715_v52 = vcombine.low %v235_v27, %v3574_v40  ;;  %v806_v39 = vrot.slane %v2716_v33, 1  ;;  %v1148_v11 = vshll.u32 %v2732_v15, 16  ;;  %v3716_v19 = vld [vmem:[%s3117_s17 + $0x94] sm:$0xf] }
  0xa8   : > { %1349 = vrot.lane.b32.xlu0 %v1311_v31, %s3076_s19  ;;  %2863 = vmatprep.mubr.msk.bf16.mxu0 %vm2161_vm11, %v2110_v53  ;;  %v3645_v29 = vpop.permute.xlu1 %698  ;;  %v2565_v31 = vld [vmem:[%s3117_s17 + $0x84] sm:$0xf]  ;;  %v643_v49 = vsel %vm499_vm1, %v638_v21, %v642_v36  ;;  %v807_v53 = vrot.slane %v3640_v4, 1  ;;  %v1826_v56 = vsel %vm772_vm0, %v1824_v17, %v1825_v47  ;;  %v1141_v14 = vshll.u32 %v3024_v60, 16  ;;  %v201_v17 = vld [vmem:[%s3117_s17 + $0x90] sm:$0xf] }
  0xa9   : > { %v2731_v30 = vcombine.low %v2565_v31, %v3673_v10  ;;  %v803_v58 = vrot.slane %v2715_v52, 1  ;;  %v2764_v16 = vcombine.low %v2604_v48, %v3666_v26  ;;  %v3712_v2 = vcombine.low %v2631_v5, %v3702_v55  ;;  %v3728_v33 = vld [vmem:[%s3117_s17 + $0x94] sm:$0xf]  ;;  %v3733_v52 = vld [vmem:[%s3117_s17 + $0xa4] ss:$0 sps:$4 sm:$0x11]  }
  0xaa   : > { %v1848_v8 = vpop.permute.xlu0 %1847  ;;  %1463 = vrot.lane.b32.xlu1 %v3560_v45, %s3080_s27  ;;  %v1632_v45 = vsel %vm499_vm1, %v1627_v25, %v1631_v3  ;;  %v808_v4 = vsel %vm772_vm0, %v806_v39, %v807_v53  ;;  %v2603_v25 = vld [vmem:[%s3117_s17 + $0x84] sm:$0xe]  ;;  %v1146_v3 = vshrl.u32 %v2732_v15, 16  ;;  %v1143_v26 = vrot.slane %v1141_v14, 1 }
  0xab   : > { %v2112_v9 = vsel %vm2108_vm10, %v2079_v59, %v1848_v8  ;;  %v1136_v23 = vshll.u32 %v2731_v30, 16  ;;  %v1150_v59 = vrot.slane %v1148_v11, 1  ;;  %v1153_v8 = vshll.u32 %v3023_v54, 16  ;;  %v3741_v53 = vld [vmem:[%s3117_s17 + $0x98] ss:$0 sps:$4 sm:$0x11]  }
  0xac   : > { %1461 = vrot.lane.b32.xlu0 %v3566_v57, %s3080_s27  ;;  %2864 = vmatmul.mubr.msk.bf16.vlgmr.msra.gmra.mrb[0].mxu0 %vm2161_vm11, %v2112_v9  ;;  %v3660_v1 = vpop.permute.xlu1 %827  ;;  %v805_v9 = vsel %vm772_vm0, %v803_v58, %v804_v44  ;;  %v1134_v12 = vshrl.u32 %v2731_v30, 16  ;;  %v3724_v31 = vcombine.low %v2629_v43, %v3716_v19  ;;  %v1318_v21 = vrot.slane %v2764_v16, 1  ;;  %v203_v44 = vld [vmem:[%s3117_s17 + $0x9c] sm:$0xf]  ;;  %v2667_v43 = vld [vmem:[%s3117_s17 + $0x90] sm:$0xe] }
  0xad   : > { %v1151_v62 = vor.u32 %v1150_v59, %v1146_v3  ;;  %v1155_v22 = vrot.slane %v1153_v8, 1  ;;  %v1660_v36 = vshll.u32 %v3712_v2, 16  ;;  %v1316_v47 = vrot.slane %v3024_v60, 1  ;;  %v3764_v3 = vld [vmem:[%s3117_s17 + $0x98] ss:$0 sps:$4 sm:$0x11]  }
  0xae   : > { %v3668_v57 = vpop.permute.xlu0 %825  ;;  %1735 = vrot.lane.b32.xlu1 %v1644_v0, %s3081_s28  ;;  %v1138_v0 = vrot.slane %v1136_v23, 1  ;;  %v3744_v11 = vcombine.low %v201_v17, %v3728_v33  ;;  %v1648_v58 = vshll.u32 %v3724_v31, 16  ;;  %v1658_v60 = vshrl.u32 %v3712_v2, 16 }
  0xaf   : > { %v1156_v39 = vsel %vm499_vm1, %v1151_v62, %v1155_v22  ;;  %v1662_v48 = vrot.slane %v1660_v36, 1  ;;  %v1653_v16 = vshll.u32 %v3741_v53, 16  ;;  %v2811_v36 = vcombine.low %v2667_v43, %v3716_v19 }
  0xb0   : > { %1733 = vrot.lane.b32.xlu0 %v1632_v45, %s3081_s28  ;;  %v3680_v41 = vpop.permute.xlu1 %939  ;;  %v2763_v45 = vcombine.low %v2603_v25, %v3673_v10  ;;  %v1139_v27 = vor.u32 %v1138_v0, %v1134_v12  ;;  %v1319_v10 = vrot.slane %v3023_v54, 1  ;;  %v1646_v25 = vshrl.u32 %v3724_v31, 16 }
  0xb1   : > { %v1650_v14 = vrot.slane %v1648_v58, 1  ;;  %v238_v58 = vld [vmem:[%s3117_s17 + $0x9c] sm:$0xe]  ;;  %v810_v43 = vrot.slane %v3764_v3, 1 }
  0xb2   : > { %v3686_v34 = vpop.permute.xlu0 %937  ;;  %712 = vrot.lane.b32.xlu1 %v631_v28, %s3078_s23  ;;  %v1320_v23 = vsel %vm772_vm0, %v1318_v21, %v1319_v10 }
  0xb4   : > { %1861 = vrot.lane.b32.xlu0 %v1823_v42, %s3082_s29  ;;  %v3693_v40 = vpop.permute.xlu1 %1211  ;;  %v1315_v42 = vrot.slane %v2763_v45, 1  ;;  %v1663_v45 = vor.u32 %v1662_v48, %v1658_v60  ;;  %v1827_v48 = vrot.slane %v2811_v36, 1 }
  0xb6   : > { %v1210_v63 = vpop.permute.xlu0 %1209  ;;  %714 = vrot.lane.b32.xlu1 %v643_v49, %s3078_s23  ;;  %v1883_v49 = vsel %vm1877_vm3, %v3201_v18, %v3625_v46  ;;  %v3752_v18 = vld [vmem:[%s3117_s17 + $0xa0] sm:$0xf]  ;;  %v1317_v5 = vsel %vm772_vm0, %v1315_v42, %v1316_v47  ;;  %v1655_v42 = vrot.slane %v1653_v16, 1 }
  0xb7   : > { %v3773_v8 = vcombine.low %v203_v44, %v3752_v18 }
  0xb8   : > { %1863 = vrot.lane.b32.xlu0 %v1826_v56, %s3082_s29  ;;  %v3707_v35 = vpop.permute.xlu1 %1339  ;;  %v1144_v56 = vsel %vm499_vm1, %v1139_v27, %v1143_v26  ;;  %v652_v27 = vshll.u32 %v3764_v3, 16 }
  0xba   : > { %v1338_v51 = vpop.permute.xlu0 %1337  ;;  %843 = vrot.lane.b32.xlu1 %v808_v4, %s3077_s20  ;;  %v1665_v4 = vshll.u32 %v3733_v52, 16 }
  0xbc   : > { %841 = vrot.lane.b32.xlu0 %v805_v9, %s3077_s20  ;;  %v3721_v13 = vpop.permute.xlu1 %1451  ;;  %v1667_v22 = vrot.slane %v1665_v4, 1 }
  0xbe   : > { %v1450_v28 = vpop.permute.xlu0 %1449  ;;  %955 = vrot.lane.b32.xlu1 %v2732_v15, %s3075_s18  ;;  %v1916_v15 = vsel %vm1910_vm4, %v1883_v49, %v3668_v57 }
  0xbf   : > { %v1949_v46 = vsel %vm1943_vm5, %v1916_v15, %v3686_v34  ;;  %v1885_v34 = vsel %vm1877_vm3, %v3214_v32, %v3645_v29 }
  0xc0   : > { %953 = vrot.lane.b32.xlu0 %v2731_v30, %s3075_s18  ;;  %v1724_v54 = vpop.permute.xlu1 %1723  ;;  %v1982_v57 = vsel %vm1976_vm6, %v1949_v46, %v1210_v63  ;;  %v647_v63 = vshll.u32 %v3744_v11, 16  ;;  %v1918_v9 = vsel %vm1910_vm4, %v1885_v34, %v3660_v1  ;;  %v3828_v34 = vld [vmem:[%s3117_s17 + $0xa0] sm:$0xf] }
  0xc1   : > { %v2015_v59 = vsel %vm2009_vm7, %v1982_v57, %v1338_v51  ;;  %v1951_v32 = vsel %vm1943_vm5, %v1918_v9, %v3680_v41  ;;  %v645_v41 = vshrl.u32 %v3744_v11, 16  ;;  %v1828_v57 = vrot.slane %v3741_v53, 1 }
  0xc2   : > { %v1722_v30 = vpop.permute.xlu0 %1721  ;;  %1227 = vrot.lane.b32.xlu1 %v1156_v39, %s3079_s26  ;;  %v2048_v12 = vsel %vm2042_vm8, %v2015_v59, %v1450_v28  ;;  %v1984_v62 = vsel %vm1976_vm6, %v1951_v32, %v3693_v40  ;;  %v649_v17 = vrot.slane %v647_v63, 1  ;;  %v3796_v40 = vld [vmem:[%s3117_s17 + $0xa4] ss:$0 sps:$4 sm:$0x11]   ;;  %v659_v28 = vshll.u32 %v3773_v8, 16 }
  0xc3   : > { %v2081_v29 = vsel %vm2075_vm9, %v2048_v12, %v1722_v30  ;;  %v2017_v26 = vsel %vm2009_vm7, %v1984_v62, %v3707_v35  ;;  %v1651_v35 = vor.u32 %v1650_v14, %v1646_v25  ;;  %v2668_v39 = vld [vmem:[%s3117_s17 + $0x9c] sm:$0xe]  ;;  %v664_v46 = vshll.u32 %v3796_v40, 16 }
  0xc4   : > { %1225 = vrot.lane.b32.xlu0 %v1144_v56, %s3079_s26  ;;  %v3778_v0 = vpop.permute.xlu1 %700  ;;  %v2050_v21 = vsel %vm2042_vm8, %v2017_v26, %v3721_v13  ;;  %v1668_v56 = vsel %vm499_vm1, %v1663_v45, %v1667_v22  ;;  %v654_v13 = vrot.slane %v652_v27, 1  ;;  %v650_v19 = vor.u32 %v649_v17, %v645_v41  ;;  %v2569_v25 = vld [vmem:[%s3117_s17 + $0x9c] sm:$0xf]  ;;  %v3039_v22 = vld [vmem:[%s3117_s17 + $0xb0] ss:$0 sps:$4 sm:$0x11]  }
  0xc5   : > { %v2083_v47 = vsel %vm2075_vm9, %v2050_v21, %v1724_v54  ;;  %v657_v54 = vshrl.u32 %v3773_v8, 16  ;;  %v661_v44 = vrot.slane %v659_v28, 1  ;;  %v2812_v30 = vcombine.low %v2668_v39, %v3702_v55  ;;  %v3040_v41 = vld [vmem:[%s3117_s17 + $0xa4] ss:$0 sps:$4 sm:$0x11]  }
  0xc6   : > { %v1850_v51 = vpop.permute.xlu0 %1849  ;;  %1355 = vrot.lane.b32.xlu1 %v1320_v23, %s3076_s19  ;;  %v1656_v60 = vsel %vm499_vm1, %v1651_v35, %v1655_v42  ;;  %v2718_v59 = vcombine.low %v238_v58, %v3752_v18  ;;  %v655_v63 = vsel %vm499_vm1, %v650_v19, %v654_v13  ;;  %v666_v53 = vrot.slane %v664_v46, 1  ;;  %v2605_v21 = vld [vmem:[%s3117_s17 + $0x9c] sm:$0xe]  ;;  %v3859_v39 = vld [vmem:[%s3117_s17 + $0xb8] sm:$0xf] }
  0xc7   : > { %v2114_v1 = vsel %vm2108_vm10, %v2081_v29, %v1850_v51  ;;  %v662_v9 = vor.u32 %v661_v44, %v657_v54  ;;  %v1829_v16 = vsel %vm772_vm0, %v1827_v48, %v1828_v57  ;;  %v1830_v32 = vrot.slane %v2812_v30, 1  ;;  %v2633_v46 = vld [vmem:[%s3117_s17 + $0xa8] sm:$0xf] }
  0xc8   : > { %1353 = vrot.lane.b32.xlu0 %v1317_v5, %s3076_s19  ;;  %2867 = vmatprep.mubr.msk.bf16.mxu0 %vm2161_vm11, %v2114_v1  ;;  %v3801_v10 = vpop.permute.xlu1 %702  ;;  %v2572_v5 = vld [vmem:[%s3117_s17 + $0xac] sm:$0xf]  ;;  %v1831_v29 = vrot.slane %v3733_v52, 1  ;;  %v2733_v18 = vcombine.low %v2569_v25, %v3828_v34  ;;  %v813_v51 = vrot.slane %v3796_v40, 1  ;;  %v812_v62 = vrot.slane %v2718_v59, 1 }
  0xc9   : > { %v667_v45 = vsel %vm499_vm1, %v662_v9, %v666_v53  ;;  %v2606_v40 = vld [vmem:[%s3117_s17 + $0xa8] sm:$0xe]  ;;  %v1177_v42 = vshll.u32 %v3039_v22, 16  ;;  %v1165_v19 = vshll.u32 %v3040_v41, 16  ;;  %v2765_v44 = vcombine.low %v2605_v21, %v3828_v34 }
  0xca   : > { %v1852_v49 = vpop.permute.xlu0 %1851  ;;  %1467 = vrot.lane.b32.xlu1 %v3712_v2, %s3080_s27  ;;  %v237_v2 = vld [vmem:[%s3117_s17 + $0x90] sm:$0xe]  ;;  %v1832_v26 = vsel %vm772_vm0, %v1830_v32, %v1831_v29  ;;  %v1160_v17 = vshll.u32 %v2733_v18, 16  ;;  %v814_v36 = vsel %vm772_vm0, %v812_v62, %v813_v51  ;;  %v1158_v13 = vshrl.u32 %v2733_v18, 16  ;;  %v205_v59 = vld [vmem:[%s3117_s17 + $0xa8] sm:$0xf] }
  0xcb   : > { %v2116_v15 = vsel %vm2108_vm10, %v2083_v47, %v1852_v49  ;;  %v2717_v55 = vcombine.low %v237_v2, %v3728_v33  ;;  %v2766_v47 = vcombine.low %v2606_v40, %v2572_v5  ;;  %v2635_v49 = vld [vmem:[%s3117_s17 + $0xb4] sm:$0xf]  ;;  %v3867_v2 = vld [vmem:[%s3117_s17 + $0xac] sm:$0xf]  ;;  %v1179_v48 = vrot.slane %v1177_v42, 1 }
  0xcc   : > { %1465 = vrot.lane.b32.xlu0 %v3724_v31, %s3080_s27  ;;  %2868 = vmatmul.mubr.msk.bf16.gmra.mrb[4].mxu0 %vm2161_vm11, %v2116_v15  ;;  %v3818_v23 = vpop.permute.xlu1 %831  ;;  %v2571_v31 = vld [vmem:[%s3117_s17 + $0xa8] sm:$0xf]  ;;  %v1162_v58 = vrot.slane %v1160_v17, 1  ;;  %v3871_v30 = vcombine.low %v2635_v49, %v3859_v39  ;;  %v3877_v34 = vcombine.low %v2633_v46, %v3867_v2  ;;  %v1325_v9 = vrot.slane %v3039_v22, 1 }
  0xcd   : > { %v2734_v12 = vcombine.low %v2571_v31, %v2572_v5  ;;  %v809_v1 = vrot.slane %v2717_v55, 1  ;;  %v1167_v5 = vrot.slane %v1165_v19, 1  ;;  %v1324_v25 = vrot.slane %v2766_v47, 1  ;;  %v3881_v55 = vld [vmem:[%s3117_s17 + $0xac] sm:$0xf] }
  0xce   : > { %v3824_v4 = vpop.permute.xlu0 %829  ;;  %1739 = vrot.lane.b32.xlu1 %v1668_v56, %s3081_s28  ;;  %v1163_v31 = vor.u32 %v1162_v58, %v1158_v13  ;;  %v1321_v53 = vrot.slane %v2765_v44, 1  ;;  %v3884_v32 = vld [vmem:[%s3117_s17 + $0xbc] ss:$0 sps:$4 sm:$0x11]   ;;  %v1684_v29 = vshll.u32 %v3871_v30, 16  ;;  %v1887_v51 = vsel %vm1877_vm3, %v3278_v50, %v3778_v0 }
  0xcf   : > { %v1172_v52 = vshll.u32 %v2734_v12, 16  ;;  %v1170_v3 = vshrl.u32 %v2734_v12, 16  ;;  %v811_v56 = vsel %vm772_vm0, %v809_v1, %v810_v43  ;;  %v3897_v62 = vcombine.low %v205_v59, %v3881_v55  ;;  %v3905_v50 = vld [vmem:[%s3117_s17 + $0xb8] sm:$0xf]  ;;  %v2669_v46 = vld [vmem:[%s3117_s17 + $0xa8] sm:$0xe] }
  0xd0   : > { %1737 = vrot.lane.b32.xlu0 %v1656_v60, %s3081_s28  ;;  %v3835_v14 = vpop.permute.xlu1 %943  ;;  %v1920_v1 = vsel %vm1910_vm4, %v1887_v51, %v3824_v4  ;;  %v1168_v22 = vsel %vm499_vm1, %v1163_v31, %v1167_v5  ;;  %v1689_v40 = vshll.u32 %v3884_v32, 16  ;;  %v1686_v21 = vrot.slane %v1684_v29, 1  ;;  %v3949_v59 = vld [vmem:[%s3117_s17 + $0xbc] ss:$0 sps:$4 sm:$0x11]  }
  0xd1   : > { %v1174_v35 = vrot.slane %v1172_v52, 1  ;;  %v1672_v52 = vshll.u32 %v3877_v34, 16 }
  0xd2   : > { %v3840_v33 = vpop.permute.xlu0 %941  ;;  %716 = vrot.lane.b32.xlu1 %v655_v63, %s3078_s23  ;;  %v1691_v44 = vrot.slane %v1689_v40, 1  ;;  %v2575_v40 = vld [vmem:[%s3117_s17 + $0xc0] sm:$0xf] }
  0xd3   : > { %v1175_v60 = vor.u32 %v1174_v35, %v1170_v3  ;;  %v1953_v0 = vsel %vm1943_vm5, %v1920_v1, %v3840_v33  ;;  %v1682_v3 = vshrl.u32 %v3871_v30, 16  ;;  %v3917_v35 = vld [vmem:[%s3117_s17 + $0xb0] ss:$0 sps:$4 sm:$0x11]   ;;  %v1889_v33 = vsel %vm1877_vm3, %v3292_v61, %v3801_v10 }
  0xd4   : > { %1865 = vrot.lane.b32.xlu0 %v1829_v16, %s3082_s29  ;;  %v3848_v27 = vpop.permute.xlu1 %1215  ;;  %v1322_v16 = vrot.slane %v3040_v41, 1  ;;  %v1326_v41 = vsel %vm772_vm0, %v1324_v25, %v1325_v9  ;;  %v1922_v49 = vsel %vm1910_vm4, %v1889_v33, %v3818_v23  ;;  %v1674_v58 = vrot.slane %v1672_v52, 1  ;;  %v3983_v33 = vld [vmem:[%s3117_s17 + $0xb8] sm:$0xf] }
  0xd5   : > { %v1180_v43 = vsel %vm499_vm1, %v1175_v60, %v1179_v48  ;;  %v1955_v61 = vsel %vm1943_vm5, %v1922_v49, %v3835_v14  ;;  %v1687_v48 = vor.u32 %v1686_v21, %v1682_v3  ;;  %v676_v31 = vshll.u32 %v3917_v35, 16  ;;  %v239_v21 = vld [vmem:[%s3117_s17 + $0xa8] sm:$0xe] }
  0xd6   : > { %v1214_v28 = vpop.permute.xlu0 %1213  ;;  %718 = vrot.lane.b32.xlu1 %v667_v45, %s3078_s23  ;;  %v3894_v45 = vld [vmem:[%s3117_s17 + $0xb0] ss:$0 sps:$4 sm:$0x11]   ;;  %v1323_v17 = vsel %vm772_vm0, %v1321_v53, %v1322_v16  ;;  %v1988_v60 = vsel %vm1976_vm6, %v1955_v61, %v3848_v27  ;;  %v669_v14 = vshrl.u32 %v3897_v62, 16 }
  0xd7   : > { %v1986_v4 = vsel %vm1976_vm6, %v1953_v0, %v1214_v28  ;;  %v671_v28 = vshll.u32 %v3897_v62, 16  ;;  %v1677_v19 = vshll.u32 %v3894_v45, 16  ;;  %v240_v0 = vld [vmem:[%s3117_s17 + $0xb4] sm:$0xe] }
  0xd8   : > { %1867 = vrot.lane.b32.xlu0 %v1832_v26, %s3082_s29  ;;  %v3861_v15 = vpop.permute.xlu1 %1343  ;;  %v207_v26 = vld [vmem:[%s3117_s17 + $0xb4] sm:$0xf] }
  0xd9   : > { %v3926_v47 = vcombine.low %v207_v26, %v3905_v50  ;;  %v2021_v5 = vsel %vm2009_vm7, %v1988_v60, %v3861_v15  ;;  %v673_v25 = vrot.slane %v671_v28, 1  ;;  %v1679_v16 = vrot.slane %v1677_v19, 1  ;;  %v3057_v60 = vld [vmem:[%s3117_s17 + $0xc8] ss:$0 sps:$4 sm:$0x11]  }
  0xda   : > { %v1342_v54 = vpop.permute.xlu0 %1341  ;;  %847 = vrot.lane.b32.xlu1 %v814_v36, %s3077_s20  ;;  %v1670_v36 = vshrl.u32 %v3877_v34, 16  ;;  %v2813_v15 = vcombine.low %v2669_v46, %v3867_v2  ;;  %v688_v26 = vshll.u32 %v3949_v59, 16  ;;  %v2720_v28 = vcombine.low %v240_v0, %v3905_v50 }
  0xdb   : > { %v2019_v42 = vsel %vm2009_vm7, %v1986_v4, %v1342_v54  ;;  %v683_v27 = vshll.u32 %v3926_v47, 16  ;;  %v674_v2 = vor.u32 %v673_v25, %v669_v14  ;;  %v3976_v4 = vld [vmem:[%s3117_s17 + $0xc4] sm:$0xf]  ;;  %v819_v46 = vrot.slane %v3949_v59, 1  ;;  %v2607_v59 = vld [vmem:[%s3117_s17 + $0xb4] sm:$0xe] }
  0xdc   : > { %845 = vrot.lane.b32.xlu0 %v811_v56, %s3077_s20  ;;  %v3874_v57 = vpop.permute.xlu1 %1455  ;;  %v1675_v53 = vor.u32 %v1674_v58, %v1670_v36  ;;  %v2573_v36 = vld [vmem:[%s3117_s17 + $0xb4] sm:$0xf]  ;;  %v690_v49 = vrot.slane %v688_v26, 1  ;;  %v3058_v14 = vld [vmem:[%s3117_s17 + $0xbc] ss:$0 sps:$4 sm:$0x11]  }
  0xdd   : > { %v685_v52 = vrot.slane %v683_v27, 1  ;;  %v4020_v26 = vld [vmem:[%s3117_s17 + $0xc4] sm:$0xf] }
  0xde   : > { %v1454_v63 = vpop.permute.xlu0 %1453  ;;  %959 = vrot.lane.b32.xlu1 %v2734_v12, %s3075_s18 }
  0xdf   : > { %v2052_v56 = vsel %vm2042_vm8, %v2019_v42, %v1454_v63  ;;  %v2054_v63 = vsel %vm2042_vm8, %v2021_v5, %v3874_v57  ;;  %v1692_v57 = vsel %vm499_vm1, %v1687_v48, %v1691_v44  ;;  %v1837_v42 = vrot.slane %v3884_v32, 1 }
  0xe0   : > { %957 = vrot.lane.b32.xlu0 %v2733_v18, %s3075_s18  ;;  %v1728_v12 = vpop.permute.xlu1 %1727  ;;  %v2735_v32 = vcombine.low %v2573_v36, %v3983_v33  ;;  %v818_v44 = vrot.slane %v2720_v28, 1  ;;  %v816_v5 = vrot.slane %v3917_v35, 1 }
  0xe1   : > { %v2087_v29 = vsel %vm2075_vm9, %v2054_v63, %v1728_v12  ;;  %v681_v12 = vshrl.u32 %v3926_v47, 16  ;;  %v2608_v63 = vld [vmem:[%s3117_s17 + $0xc0] sm:$0xe] }
  0xe2   : > { %v1726_v18 = vpop.permute.xlu0 %1725  ;;  %1231 = vrot.lane.b32.xlu1 %v1180_v43, %s3079_s26  ;;  %v2670_v43 = vld [vmem:[%s3117_s17 + $0xb4] sm:$0xe]  ;;  %v1184_v25 = vshll.u32 %v2735_v32, 16  ;;  %v2768_v0 = vcombine.low %v2608_v63, %v3976_v4 }
  0xe3   : > { %v2085_v10 = vsel %vm2075_vm9, %v2052_v56, %v1726_v18  ;;  %v1680_v18 = vsel %vm499_vm1, %v1675_v53, %v1679_v16  ;;  %v2736_v56 = vcombine.low %v2575_v40, %v3976_v4  ;;  %v820_v53 = vsel %vm772_vm0, %v818_v44, %v819_v46 }
  0xe4   : > { %1229 = vrot.lane.b32.xlu0 %v1168_v22, %s3079_s26  ;;  %v3931_v13 = vpop.permute.xlu1 %704  ;;  %v678_v22 = vrot.slane %v676_v31, 1  ;;  %v1330_v4 = vrot.slane %v2768_v0, 1 }
  0xe5   : > { %v1194_v16 = vshrl.u32 %v2736_v56, 16 }
  0xe6   : > { %v1854_v54 = vpop.permute.xlu0 %1853  ;;  %1359 = vrot.lane.b32.xlu1 %v1326_v41, %s3076_s19  ;;  %v1833_v41 = vrot.slane %v2813_v15, 1 }
  0xe7   : > { %v2118_v23 = vsel %vm2108_vm10, %v2085_v10, %v1854_v54  ;;  %v2719_v10 = vcombine.low %v239_v21, %v3881_v55 }
  0xe8   : > { %1357 = vrot.lane.b32.xlu0 %v1323_v17, %s3076_s19  ;;  %2871 = vmatprep.mubr.msk.bf16.mxu0 %vm2161_vm11, %v2118_v23  ;;  %v3954_v9 = vpop.permute.xlu1 %706  ;;  %v1834_v17 = vrot.slane %v3894_v45, 1  ;;  %v686_v45 = vor.u32 %v685_v52, %v681_v12  ;;  %v1196_v23 = vshll.u32 %v2736_v56, 16  ;;  %v2637_v52 = vld [vmem:[%s3117_s17 + $0xc0] sm:$0xf] }
  0xe9   : > { %v815_v31 = vrot.slane %v2719_v10, 1 }
  0xea   : > { %v1856_v51 = vpop.permute.xlu0 %1855  ;;  %1471 = vrot.lane.b32.xlu1 %v3871_v30, %s3080_s27  ;;  %v1835_v19 = vsel %vm772_vm0, %v1833_v41, %v1834_v17  ;;  %v691_v54 = vsel %vm499_vm1, %v686_v45, %v690_v49  ;;  %v1198_v15 = vrot.slane %v1196_v23, 1  ;;  %v1331_v45 = vrot.slane %v3057_v60, 1 }
  0xeb   : > { %v2120_v1 = vsel %vm2108_vm10, %v2087_v29, %v1856_v51  ;;  %v1201_v29 = vshll.u32 %v3057_v60, 16  ;;  %v2639_v51 = vld [vmem:[%s3117_s17 + $0xcc] sm:$0xf]  ;;  %v817_v35 = vsel %vm772_vm0, %v815_v31, %v816_v5  ;;  %v1328_v49 = vrot.slane %v3058_v14, 1 }
  0xec   : > { %1469 = vrot.lane.b32.xlu0 %v3877_v34, %s3080_s27  ;;  %2872 = vmatmul.mubr.msk.bf16.gmra.mrb[8].mxu0 %vm2161_vm11, %v2120_v1  ;;  %v3969_v30 = vpop.permute.xlu1 %835  ;;  %v2814_v34 = vcombine.low %v2670_v43, %v3859_v39  ;;  %v679_v39 = vsel %vm499_vm1, %v674_v2, %v678_v22  ;;  %v1182_v1 = vshrl.u32 %v2735_v32, 16  ;;  %v1189_v22 = vshll.u32 %v3058_v14, 16  ;;  %v4016_v2 = vld [vmem:[%s3117_s17 + $0xd0] sm:$0xf] }
  0xed   : > { %v1199_v41 = vor.u32 %v1198_v15, %v1194_v16  ;;  %v1203_v17 = vrot.slane %v1201_v29, 1  ;;  %v1893_v5 = vsel %vm1877_vm3, %v3375_v37, %v3954_v9  ;;  %v2672_v15 = vld [vmem:[%s3117_s17 + $0xcc] sm:$0xe] }
  0xee   : > { %v3978_v3 = vpop.permute.xlu0 %833  ;;  %1743 = vrot.lane.b32.xlu1 %v1692_v57, %s3081_s28  ;;  %v1836_v61 = vrot.slane %v2814_v34, 1  ;;  %v1186_v57 = vrot.slane %v1184_v25, 1  ;;  %v2784_v34 = vcombine.low %v2639_v51, %v4016_v2  ;;  %v1191_v36 = vrot.slane %v1189_v22, 1  ;;  %v2671_v51 = vld [vmem:[%s3117_s17 + $0xc0] sm:$0xe] }
  0xef   : > { %v2816_v22 = vcombine.low %v2672_v15, %v4016_v2 }
  0xf0   : > { %1741 = vrot.lane.b32.xlu0 %v1680_v18, %s3081_s28  ;;  %v3991_v58 = vpop.permute.xlu1 %947  ;;  %v1838_v55 = vsel %vm772_vm0, %v1836_v61, %v1837_v42  ;;  %v2767_v18 = vcombine.low %v2607_v59, %v3983_v33  ;;  %v1187_v21 = vor.u32 %v1186_v57, %v1182_v1  ;;  %v2783_v42 = vcombine.low %v2637_v52, %v4020_v26 }
  0xf1   : > { %v1204_v61 = vsel %vm499_vm1, %v1199_v41, %v1203_v17  ;;  %v1708_v10 = vshll.u32 %v2784_v34, 16  ;;  %v1706_v31 = vshrl.u32 %v2784_v34, 16 }
  0xf2   : > { %v946_v50 = vpop.permute.xlu0 %945  ;;  %720 = vrot.lane.b32.xlu1 %v679_v39, %s3078_s23  ;;  %v4029_v39 = vld [vmem:[%s3117_s17 + $0xd4] ss:$0 sps:$4 sm:$0x11]   ;;  %v1327_v33 = vrot.slane %v2767_v18, 1  ;;  %v1192_v46 = vsel %vm499_vm1, %v1187_v21, %v1191_v36  ;;  %v1696_v23 = vshll.u32 %v2783_v42, 16  ;;  %v1694_v25 = vshrl.u32 %v2783_v42, 16 }
  0xf3   : > { %v1710_v14 = vrot.slane %v1708_v10, 1  ;;  %v2815_v18 = vcombine.low %v2671_v51, %v4020_v26  ;;  %v1842_v21 = vrot.slane %v2816_v22, 1 }
  0xf4   : > { %1869 = vrot.lane.b32.xlu0 %v1835_v19, %s3082_s29  ;;  %v4001_v48 = vpop.permute.xlu1 %1219  ;;  %v1891_v19 = vsel %vm1877_vm3, %v3354_v20, %v3931_v13  ;;  %v1332_v13 = vsel %vm772_vm0, %v1330_v4, %v1331_v45 }
  0xf5   : > { %v1711_v57 = vor.u32 %v1710_v14, %v1706_v31  ;;  %v1839_v26 = vrot.slane %v2815_v18, 1 }
  0xf6   : > { %v1218_v27 = vpop.permute.xlu0 %1217  ;;  %722 = vrot.lane.b32.xlu1 %v691_v54, %s3078_s23  ;;  %v1924_v54 = vsel %vm1910_vm4, %v1891_v19, %v3978_v3  ;;  %v1713_v3 = vshll.u32 %v4029_v39, 16 }
  0xf7   : > { %v1957_v60 = vsel %vm1943_vm5, %v1924_v54, %v946_v50 }
  0xf8   : > { %1871 = vrot.lane.b32.xlu0 %v1838_v55, %s3082_s29  ;;  %v4012_v43 = vpop.permute.xlu1 %1347  ;;  %v1990_v20 = vsel %vm1976_vm6, %v1957_v60, %v1218_v27  ;;  %v1926_v27 = vsel %vm1910_vm4, %v1893_v5, %v3969_v30 }
  0xf9   : > { %v1959_v29 = vsel %vm1943_vm5, %v1926_v27, %v3991_v58  ;;  %v1715_v58 = vrot.slane %v1713_v3, 1 }
  0xfa   : > { %v1346_v12 = vpop.permute.xlu0 %1345  ;;  %851 = vrot.lane.b32.xlu1 %v820_v53, %s3077_s20  ;;  %v1698_v53 = vrot.slane %v1696_v23, 1 }
  0xfb   : > { %v2023_v50 = vsel %vm2009_vm7, %v1990_v20, %v1346_v12  ;;  %v1716_v2 = vsel %vm499_vm1, %v1711_v57, %v1715_v58 }
  0xfc   : > { %849 = vrot.lane.b32.xlu0 %v817_v35, %s3077_s20  ;;  %v1460_v40 = vpop.permute.xlu1 %1459  ;;  %v1992_v35 = vsel %vm1976_vm6, %v1959_v29, %v4001_v48  ;;  %v1699_v0 = vor.u32 %v1698_v53, %v1694_v25 }
  0xfd   : > { %v2025_v30 = vsel %vm2009_vm7, %v1992_v35, %v4012_v43 }
  0xfe   : > { %v1458_v28 = vpop.permute.xlu0 %1457  ;;  %963 = vrot.lane.b32.xlu1 %v2736_v56, %s3075_s18  ;;  %v3064_v56 = vld [vmem:[%s3117_s17 + $0xc8] ss:$0 sps:$4 sm:$0x11]   ;;  %v2058_v12 = vsel %vm2042_vm8, %v2025_v30, %v1460_v40  ;;  %v1843_v40 = vrot.slane %v4029_v39, 1 }
  0xff   : > { %v2056_v63 = vsel %vm2042_vm8, %v2023_v50, %v1458_v28  ;;  %v1701_v16 = vshll.u32 %v3064_v56, 16  ;;  %v1840_v4 = vrot.slane %v3064_v56, 1 }
 0x100   : > { %961 = vrot.lane.b32.xlu0 %v2735_v32, %s3075_s18  ;;  %v1732_v44 = vpop.permute.xlu1 %1731  ;;  %v1329_v32 = vsel %vm772_vm0, %v1327_v33, %v1328_v49 }
 0x101   : > { %v1703_v48 = vrot.slane %v1701_v16, 1  ;;  %v2091_v41 = vsel %vm2075_vm9, %v2058_v12, %v1732_v44  ;;  %v1841_v33 = vsel %vm772_vm0, %v1839_v26, %v1840_v4 }
 0x102   : > { %v1730_v55 = vpop.permute.xlu0 %1729  ;;  %1235 = vrot.lane.b32.xlu1 %v1204_v61, %s3079_s26 }
 0x103   : > { %v2089_v37 = vsel %vm2075_vm9, %v2056_v63, %v1730_v55  ;;  %v1704_v28 = vsel %vm499_vm1, %v1699_v0, %v1703_v48 }
 0x104   : > { %1233 = vrot.lane.b32.xlu0 %v1192_v46, %s3079_s26  ;;  %v709_v59 = vpop.permute.xlu1 %708 }
 0x105   : > { %v1895_v46 = vsel %vm1877_vm3, %v3453_v6, %v709_v59 }
 0x106   : > { %v1858_v9 = vpop.permute.xlu0 %1857  ;;  %1363 = vrot.lane.b32.xlu1 %v1332_v13, %s3076_s19 }
 0x107   : > { %v2122_v1 = vsel %vm2108_vm10, %v2089_v37, %v1858_v9 }
 0x108   : > { %1361 = vrot.lane.b32.xlu0 %v1329_v32, %s3076_s19  ;;  %2875 = vmatprep.mubr.msk.bf16.mxu0 %vm2161_vm11, %v2122_v1  ;;  %v711_v52 = vpop.permute.xlu1 %710 }
 0x109   : > { %v1897_v20 = vsel %vm1877_vm3, %v3470_v24, %v711_v52 }
 0x10a   : > { %v1860_v17 = vpop.permute.xlu0 %1859  ;;  %1475 = vrot.lane.b32.xlu1 %v2784_v34, %s3080_s27  ;;  %v1844_v34 = vsel %vm772_vm0, %v1842_v21, %v1843_v40 }
 0x10b   : > { %v2124_v43 = vsel %vm2108_vm10, %v2091_v41, %v1860_v17 }
 0x10c   : > { %1473 = vrot.lane.b32.xlu0 %v2783_v42, %s3080_s27  ;;  %2876 = vmatmul.mubr.msk.bf16.gmra.mrb[12].mxu0 %vm2161_vm11, %v2124_v43  ;;  %v840_v36 = vpop.permute.xlu1 %839 }
 0x10d   : > { %v1930_v32 = vsel %vm1910_vm4, %v1897_v20, %v840_v36 }
 0x10e   : > { %v838_v45 = vpop.permute.xlu0 %837  ;;  %1747 = vrot.lane.b32.xlu1 %v1716_v2, %s3081_s28 }
 0x10f   : > { %v1928_v56 = vsel %vm1910_vm4, %v1895_v46, %v838_v45 }
 0x110   : > { %1745 = vrot.lane.b32.xlu0 %v1704_v28, %s3081_s28  ;;  %v952_v42 = vpop.permute.xlu1 %951 }
 0x111   : > { %v1963_v6 = vsel %vm1943_vm5, %v1930_v32, %v952_v42 }
 0x112   : > { %v950_v49 = vpop.permute.xlu0 %949  ;;  %1875 = vrot.lane.b32.xlu1 %v1844_v34, %s3082_s29 }
 0x113   : > { %v1961_v60 = vsel %vm1943_vm5, %v1928_v56, %v950_v49 }
 0x114   : > { %1873 = vrot.lane.b32.xlu0 %v1841_v33, %s3082_s29  ;;  %v1224_v39 = vpop.permute.xlu1 %1223 }
 0x115   : > { %v1996_v25 = vsel %vm1976_vm6, %v1963_v6, %v1224_v39 }
 0x116   : > { %v1222_v19 = vpop.permute.xlu0 %1221 }
 0x117   : > { %v1994_v31 = vsel %vm1976_vm6, %v1961_v60, %v1222_v19 }
 0x118   : > { %v1352_v61 = vpop.permute.xlu1 %1351 }
 0x119   : > { %v2029_v63 = vsel %vm2009_vm7, %v1996_v25, %v1352_v61 }
 0x11a   : > { %v1350_v10 = vpop.permute.xlu0 %1349 }
 0x11b   : > { %v2027_v13 = vsel %vm2009_vm7, %v1994_v31, %v1350_v10 }
 0x11c   : > { %v1464_v54 = vpop.permute.xlu1 %1463 }
 0x11d   : > { %v2062_v24 = vsel %vm2042_vm8, %v2029_v63, %v1464_v54 }
 0x11e   : > { %v1462_v44 = vpop.permute.xlu0 %1461 }
 0x11f   : > { %v2060_v3 = vsel %vm2042_vm8, %v2027_v13, %v1462_v44 }
 0x120   : > { %v1736_v23 = vpop.permute.xlu1 %1735 }
 0x121   : > { %v2095_v53 = vsel %vm2075_vm9, %v2062_v24, %v1736_v23 }
 0x122   : > { %v1734_v55 = vpop.permute.xlu0 %1733 }
 0x123   : > { %v2093_v50 = vsel %vm2075_vm9, %v2060_v3, %v1734_v55 }
 0x124   : > { %v713_v5 = vpop.permute.xlu1 %712 }
 0x125   : > { %v1899_v12 = vsel %vm1877_vm3, %v3596_v7, %v713_v5 }
 0x126   : > { %v1862_v14 = vpop.permute.xlu0 %1861 }
 0x127   : > { %v2126_v27 = vsel %vm2108_vm10, %v2093_v50, %v1862_v14 }
 0x128   : > { %2879 = vmatprep.mubr.msk.bf16.mxu1 %vm2161_vm11, %v2126_v27  ;;  %v715_v59 = vpop.permute.xlu1 %714 }
 0x129   : > { %v1901_v17 = vsel %vm1877_vm3, %v3620_v38, %v715_v59 }
 0x12a   : > { %v1864_v16 = vpop.permute.xlu0 %1863 }
 0x12b   : > { %v2128_v15 = vsel %vm2108_vm10, %v2095_v53, %v1864_v16 }
 0x12c   : > { %2880 = vmatmul.mubr.msk.bf16.vlgmr.msra.gmra.mrb[0].mxu1 %vm2161_vm11, %v2128_v15  ;;  %v844_v29 = vpop.permute.xlu1 %843 }
 0x12d   : > { %v1934_v2 = vsel %vm1910_vm4, %v1901_v17, %v844_v29 }
 0x12e   : > { %v842_v37 = vpop.permute.xlu0 %841 }
 0x12f   : > { %v1932_v52 = vsel %vm1910_vm4, %v1899_v12, %v842_v37 }
 0x130   : > { %v956_v9 = vpop.permute.xlu1 %955 }
 0x131   : > { %v1967_v7 = vsel %vm1943_vm5, %v1934_v2, %v956_v9 }
 0x132   : > { %v954_v51 = vpop.permute.xlu0 %953 }
 0x133   : > { %v1965_v48 = vsel %vm1943_vm5, %v1932_v52, %v954_v51 }
 0x134   : > { %v1228_v35 = vpop.permute.xlu1 %1227 }
 0x135   : > { %v2000_v26 = vsel %vm1976_vm6, %v1967_v7, %v1228_v35 }
 0x136   : > { %v1226_v1 = vpop.permute.xlu0 %1225 }
 0x137   : > { %v1998_v41 = vsel %vm1976_vm6, %v1965_v48, %v1226_v1 }
 0x138   : > { %v1356_v30 = vpop.permute.xlu1 %1355 }
 0x139   : > { %v2033_v45 = vsel %vm2009_vm7, %v2000_v26, %v1356_v30 }
 0x13a   : > { %v1354_v57 = vpop.permute.xlu0 %1353 }
 0x13b   : > { %v2031_v43 = vsel %vm2009_vm7, %v1998_v41, %v1354_v57 }
 0x13c   : > { %v1468_v58 = vpop.permute.xlu1 %1467 }
 0x13d   : > { %v2066_v38 = vsel %vm2042_vm8, %v2033_v45, %v1468_v58 }
 0x13e   : > { %v1466_v22 = vpop.permute.xlu0 %1465 }
 0x13f   : > { %v2064_v21 = vsel %vm2042_vm8, %v2031_v43, %v1466_v22 }
 0x140   : > { %v1740_v0 = vpop.permute.xlu1 %1739 }
 0x141   : > { %v2099_v42 = vsel %vm2075_vm9, %v2066_v38, %v1740_v0 }
 0x142   : > { %v1738_v18 = vpop.permute.xlu0 %1737 }
 0x143   : > { %v2097_v36 = vsel %vm2075_vm9, %v2064_v21, %v1738_v18 }
 0x144   : > { %v717_v40 = vpop.permute.xlu1 %716 }
 0x145   : > { %v1903_v55 = vsel %vm1877_vm3, %v3744_v11, %v717_v40 }
 0x146   : > { %v1866_v28 = vpop.permute.xlu0 %1865 }
 0x147   : > { %v2130_v4 = vsel %vm2108_vm10, %v2097_v36, %v1866_v28 }
 0x148   : > { %2883 = vmatprep.mubr.msk.bf16.mxu1 %vm2161_vm11, %v2130_v4  ;;  %v719_v34 = vpop.permute.xlu1 %718 }
 0x149   : > { %v1905_v5 = vsel %vm1877_vm3, %v3773_v8, %v719_v34 }
 0x14a   : > { %v1868_v33 = vpop.permute.xlu0 %1867 }
 0x14b   : > { %v2132_v49 = vsel %vm2108_vm10, %v2099_v42, %v1868_v33 }
 0x14c   : > { %2884 = vmatmul.mubr.msk.bf16.gmra.mrb[4].mxu1 %vm2161_vm11, %v2132_v49  ;;  %v848_v39 = vpop.permute.xlu1 %847 }
 0x14d   : > { %v1938_v50 = vsel %vm1910_vm4, %v1905_v5, %v848_v39 }
 0x14e   : > { %v846_v19 = vpop.permute.xlu0 %845 }
 0x14f   : > { %v1936_v31 = vsel %vm1910_vm4, %v1903_v55, %v846_v19 }
 0x150   : > { %v960_v61 = vpop.permute.xlu1 %959 }
 0x151   : > { %v1971_v11 = vsel %vm1943_vm5, %v1938_v50, %v960_v61 }
 0x152   : > { %v958_v10 = vpop.permute.xlu0 %957 }
 0x153   : > { %v1969_v13 = vsel %vm1943_vm5, %v1936_v31, %v958_v10 }
 0x154   : > { %v1232_v54 = vpop.permute.xlu1 %1231 }
 0x155   : > { %v2004_v24 = vsel %vm1976_vm6, %v1971_v11, %v1232_v54 }
 0x156   : > { %v1230_v44 = vpop.permute.xlu0 %1229 }
 0x157   : > { %v2002_v3 = vsel %vm1976_vm6, %v1969_v13, %v1230_v44 }
 0x158   : > { %v1360_v46 = vpop.permute.xlu1 %1359 }
 0x159   : > { %v2037_v53 = vsel %vm2009_vm7, %v2004_v24, %v1360_v46 }
 0x15a   : > { %v1358_v56 = vpop.permute.xlu0 %1357 }
 0x15b   : > { %v2035_v6 = vsel %vm2009_vm7, %v2002_v3, %v1358_v56 }
 0x15c   : > { %v1472_v23 = vpop.permute.xlu1 %1471 }
 0x15d   : > { %v2070_v8 = vsel %vm2042_vm8, %v2037_v53, %v1472_v23 }
 0x15e   : > { %v1470_v60 = vpop.permute.xlu0 %1469 }
 0x15f   : > { %v2068_v14 = vsel %vm2042_vm8, %v2035_v6, %v1470_v60 }
 0x160   : > { %v1744_v20 = vpop.permute.xlu1 %1743 }
 0x161   : > { %v2103_v15 = vsel %vm2075_vm9, %v2070_v8, %v1744_v20 }
 0x162   : > { %v1742_v32 = vpop.permute.xlu0 %1741 }
 0x163   : > { %v2101_v27 = vsel %vm2075_vm9, %v2068_v14, %v1742_v32 }
 0x164   : > { %v721_v25 = vpop.permute.xlu1 %720 }
 0x165   : > { %v1907_v48 = vsel %vm1877_vm3, %v3897_v62, %v721_v25 }
 0x166   : > { %v1870_v63 = vpop.permute.xlu0 %1869 }
 0x167   : > { %v2134_v59 = vsel %vm2108_vm10, %v2101_v27, %v1870_v63 }
 0x168   : > { %2887 = vmatprep.mubr.msk.bf16.mxu1 %vm2161_vm11, %v2134_v59  ;;  %v723_v16 = vpop.permute.xlu1 %722 }
 0x169   : > { %v1909_v52 = vsel %vm1877_vm3, %v3926_v47, %v723_v16 }
 0x16a   : > { %v1872_v29 = vpop.permute.xlu0 %1871 }
 0x16b   : > { %v2136_v37 = vsel %vm2108_vm10, %v2103_v15, %v1872_v29 }
 0x16c   : > { %2888 = vmatmul.mubr.msk.bf16.gmra.mrb[8].mxu1 %vm2161_vm11, %v2136_v37  ;;  %v852_v9 = vpop.permute.xlu1 %851 }
 0x16d   : > { %v1942_v18 = vsel %vm1910_vm4, %v1909_v52, %v852_v9 }
 0x16e   : > { %v850_v51 = vpop.permute.xlu0 %849 }
 0x16f   : > { %v1940_v17 = vsel %vm1910_vm4, %v1907_v48, %v850_v51 }
 0x170   : > { %v964_v35 = vpop.permute.xlu1 %963 }
 0x171   : > { %v1975_v43 = vsel %vm1943_vm5, %v1942_v18, %v964_v35 }
 0x172   : > { %v962_v1 = vpop.permute.xlu0 %961 }
 0x173   : > { %v1973_v21 = vsel %vm1943_vm5, %v1940_v17, %v962_v1 }
 0x174   : > { %v1236_v30 = vpop.permute.xlu1 %1235 }
 0x175   : > { %v2008_v40 = vsel %vm1976_vm6, %v1975_v43, %v1236_v30 }
 0x176   : > { %v1234_v57 = vpop.permute.xlu0 %1233 }
 0x177   : > { %v2006_v47 = vsel %vm1976_vm6, %v1973_v21, %v1234_v57 }
 0x178   : > { %v1364_v58 = vpop.permute.xlu1 %1363 }
 0x179   : > { %v2041_v28 = vsel %vm2009_vm7, %v2008_v40, %v1364_v58 }
 0x17a   : > { %v1362_v22 = vpop.permute.xlu0 %1361 }
 0x17b   : > { %v2039_v4 = vsel %vm2009_vm7, %v2006_v47, %v1362_v22 }
 0x17c   : > { %v1476_v12 = vpop.permute.xlu1 %1475 }
 0x17d   : > { %v2074_v42 = vsel %vm2042_vm8, %v2041_v28, %v1476_v12 }
 0x17e   : > { %v1474_v0 = vpop.permute.xlu0 %1473 }
 0x17f   : > { %v2865_v41 = vpop.f32.mrb[0].mxu0  ;;  %v2072_v33 = vsel %vm2042_vm8, %v2039_v4, %v1474_v0 }
 0x180   : > { %v2232_v2 = vpop.f32.mrb[1].mxu0  ;;  %v1748_v36 = vpop.permute.xlu1 %1747  ;;  %v2398_v49 = vmul.f32 %v2865_v41, %v2865_v41 }
 0x181   : > { %v2866_v7 = vpop.f32.mrb[2].mxu0  ;;  %v2396_v45 = vmul.f32 %v2232_v2, %v2232_v2  ;;  %v2107_v39 = vsel %vm2075_vm9, %v2074_v42, %v1748_v36 }
 0x182   : > { %v2235_v26 = vpop.f32.mrb[3].mxu0  ;;  %v1746_v62 = vpop.permute.xlu0 %1745  ;;  %v2399_v56 = vmul.f32 %v2866_v7, %v2866_v7 }
 0x183   : > { %v2359_v38 = vadd.f32 %v2235_v26, %v2232_v2  ;;  %v2397_v34 = vmul.f32 %v2235_v26, %v2235_v26  ;;  %v2105_v54 = vsel %vm2075_vm9, %v2072_v33, %v1746_v62 }
 0x184   : > { %v1876_v10 = vpop.permute.xlu1 %1875 }
 0x185   : > { %v2360_v19 = vadd.f32 %v2865_v41, %v2359_v38  ;;  %v2428_v61 = vadd.f32 %v2397_v34, %v2396_v45  ;;  %v2140_v44 = vsel %vm2108_vm10, %v2107_v39, %v1876_v10 }
 0x186   : > { %v1874_v46 = vpop.permute.xlu0 %1873 }
 0x187   : > { %v2429_v23 = vadd.f32 %v2428_v61, %v2398_v49  ;;  %v2138_v60 = vsel %vm2108_vm10, %v2105_v54, %v1874_v46  ;;  %v2361_v55 = vadd.f32 %v2866_v7, %v2360_v19 }
 0x188   : > { %2891 = vmatprep.mubr.msk.bf16.mxu1 %vm2161_vm11, %v2138_v60 }
 0x189   : > { %2892 = vmatmul.mubr.msk.bf16.gmra.mrb[12].mxu1 %vm2161_vm11, %v2140_v44  ;;  %v2430_v31 = vadd.f32 %v2429_v23, %v2399_v56 }
 0x19f   : > { %v2869_v20 = vpop.f32.mrb[4].mxu0 }
 0x1a0   : > { %v2248_v13 = vpop.f32.mrb[5].mxu0  ;;  %v2402_v11 = vmul.f32 %v2869_v20, %v2869_v20 }
 0x1a1   : > { %v2362_v32 = vadd.f32 %v2361_v55, %v2248_v13  ;;  %v2400_v3 = vmul.f32 %v2248_v13, %v2248_v13  ;;  %v2870_v5 = vpop.f32.mrb[6].mxu0 }
 0x1a2   : > { %v2251_v6 = vpop.f32.mrb[7].mxu0  ;;  %v2403_v24 = vmul.f32 %v2870_v5, %v2870_v5 }
 0x1a3   : > { %v2431_v50 = vadd.f32 %v2430_v31, %v2400_v3  ;;  %v2363_v14 = vadd.f32 %v2362_v32, %v2251_v6  ;;  %v2401_v25 = vmul.f32 %v2251_v6, %v2251_v6 }
 0x1a5   : > { %v2364_v27 = vadd.f32 %v2869_v20, %v2363_v14  ;;  %v2432_v63 = vadd.f32 %v2431_v50, %v2401_v25 }
 0x1a7   : > { %v2433_v59 = vadd.f32 %v2432_v63, %v2402_v11  ;;  %v2365_v53 = vadd.f32 %v2870_v5, %v2364_v27 }
 0x1a9   : > { %v2434_v8 = vadd.f32 %v2433_v59, %v2403_v24 }
 0x1bf   : > { %v2873_v16 = vpop.f32.mrb[8].mxu0 }
 0x1c0   : > { %v2264_v15 = vpop.f32.mrb[9].mxu0  ;;  %v2406_v57 = vmul.f32 %v2873_v16, %v2873_v16 }
 0x1c1   : > { %v2366_v29 = vadd.f32 %v2365_v53, %v2264_v15  ;;  %v2404_v37 = vmul.f32 %v2264_v15, %v2264_v15  ;;  %v2874_v9 = vpop.f32.mrb[10].mxu0 }
 0x1c2   : > { %v2267_v51 = vpop.f32.mrb[11].mxu0  ;;  %v2407_v12 = vmul.f32 %v2874_v9, %v2874_v9 }
 0x1c3   : > { %v2435_v35 = vadd.f32 %v2434_v8, %v2404_v37  ;;  %v2367_v1 = vadd.f32 %v2366_v29, %v2267_v51  ;;  %v2405_v30 = vmul.f32 %v2267_v51, %v2267_v51 }
 0x1c5   : > { %v2368_v58 = vadd.f32 %v2873_v16, %v2367_v1  ;;  %v2436_v22 = vadd.f32 %v2435_v35, %v2405_v30 }
 0x1c7   : > { %v2437_v52 = vadd.f32 %v2436_v22, %v2406_v57  ;;  %v2369_v0 = vadd.f32 %v2874_v9, %v2368_v58 }
 0x1c9   : > { %v2438_v48 = vadd.f32 %v2437_v52, %v2407_v12 }
 0x1df   : > { %v2877_v18 = vpop.f32.mrb[12].mxu0 }
 0x1e0   : > { %v2280_v41 = vpop.f32.mrb[13].mxu0  ;;  %v2410_v47 = vmul.f32 %v2877_v18, %v2877_v18 }
 0x1e1   : > { %v2370_v17 = vadd.f32 %v2369_v0, %v2280_v41  ;;  %v2408_v43 = vmul.f32 %v2280_v41, %v2280_v41  ;;  %v2878_v2 = vpop.f32.mrb[14].mxu0 }
 0x1e2   : > { %v2283_v21 = vpop.f32.mrb[15].mxu0  ;;  %v2411_v62 = vmul.f32 %v2878_v2, %v2878_v2 }
 0x1e3   : > { %v2439_v40 = vadd.f32 %v2438_v48, %v2408_v43  ;;  %v2371_v7 = vadd.f32 %v2370_v17, %v2283_v21  ;;  %v2409_v36 = vmul.f32 %v2283_v21, %v2283_v21 }
 0x1e5   : > { %v2372_v28 = vadd.f32 %v2877_v18, %v2371_v7  ;;  %v2440_v26 = vadd.f32 %v2439_v40, %v2409_v36 }
 0x1e7   : > { %v2441_v4 = vadd.f32 %v2440_v26, %v2410_v47  ;;  %v2373_v45 = vadd.f32 %v2878_v2, %v2372_v28 }
 0x1e9   : > { %v2442_v38 = vadd.f32 %v2441_v4, %v2411_v62 }
 0x1ff   : > { %v2881_v34 = vpop.f32.mrb[0].mxu1 }
 0x200   : > { %v2296_v42 = vpop.f32.mrb[1].mxu1  ;;  %v2414_v44 = vmul.f32 %v2881_v34, %v2881_v34 }
 0x201   : > { %v2374_v33 = vadd.f32 %v2373_v45, %v2296_v42  ;;  %v2412_v49 = vmul.f32 %v2296_v42, %v2296_v42  ;;  %v2882_v39 = vpop.f32.mrb[2].mxu1 }
 0x202   : > { %v2299_v19 = vpop.f32.mrb[3].mxu1  ;;  %v2415_v23 = vmul.f32 %v2882_v39, %v2882_v39 }
 0x203   : > { %v2443_v61 = vadd.f32 %v2442_v38, %v2412_v49  ;;  %v2375_v10 = vadd.f32 %v2374_v33, %v2299_v19  ;;  %v2413_v54 = vmul.f32 %v2299_v19, %v2299_v19 }
 0x205   : > { %v2376_v46 = vadd.f32 %v2881_v34, %v2375_v10  ;;  %v2444_v56 = vadd.f32 %v2443_v61, %v2413_v54 }
 0x207   : > { %v2445_v60 = vadd.f32 %v2444_v56, %v2414_v44  ;;  %v2377_v55 = vadd.f32 %v2882_v39, %v2376_v46 }
 0x209   : > { %v2446_v31 = vadd.f32 %v2445_v60, %v2415_v23 }
 0x21f   : > { %v2885_v20 = vpop.f32.mrb[4].mxu1 }
 0x220   : > { %v2312_v13 = vpop.f32.mrb[5].mxu1  ;;  %v2418_v11 = vmul.f32 %v2885_v20, %v2885_v20 }
 0x221   : > { %v2378_v32 = vadd.f32 %v2377_v55, %v2312_v13  ;;  %v2416_v3 = vmul.f32 %v2312_v13, %v2312_v13  ;;  %v2886_v5 = vpop.f32.mrb[6].mxu1 }
 0x222   : > { %v2315_v6 = vpop.f32.mrb[7].mxu1  ;;  %v2419_v24 = vmul.f32 %v2886_v5, %v2886_v5 }
 0x223   : > { %v2447_v50 = vadd.f32 %v2446_v31, %v2416_v3  ;;  %v2379_v14 = vadd.f32 %v2378_v32, %v2315_v6  ;;  %v2417_v25 = vmul.f32 %v2315_v6, %v2315_v6 }
 0x225   : > { %v2380_v27 = vadd.f32 %v2885_v20, %v2379_v14  ;;  %v2448_v63 = vadd.f32 %v2447_v50, %v2417_v25 }
 0x227   : > { %v2449_v59 = vadd.f32 %v2448_v63, %v2418_v11  ;;  %v2381_v53 = vadd.f32 %v2886_v5, %v2380_v27 }
 0x229   : > { %v2450_v8 = vadd.f32 %v2449_v59, %v2419_v24 }
 0x23f   : > { %v2889_v16 = vpop.f32.mrb[8].mxu1 }
 0x240   : > { %v2328_v15 = vpop.f32.mrb[9].mxu1  ;;  %v2422_v57 = vmul.f32 %v2889_v16, %v2889_v16 }
 0x241   : > { %v2382_v29 = vadd.f32 %v2381_v53, %v2328_v15  ;;  %v2420_v37 = vmul.f32 %v2328_v15, %v2328_v15  ;;  %v2890_v9 = vpop.f32.mrb[10].mxu1 }
 0x242   : > { %v2331_v51 = vpop.f32.mrb[11].mxu1  ;;  %v2423_v12 = vmul.f32 %v2890_v9, %v2890_v9 }
 0x243   : > { %v2451_v35 = vadd.f32 %v2450_v8, %v2420_v37  ;;  %v2383_v1 = vadd.f32 %v2382_v29, %v2331_v51  ;;  %v2421_v30 = vmul.f32 %v2331_v51, %v2331_v51 }
 0x245   : > { %v2384_v58 = vadd.f32 %v2889_v16, %v2383_v1  ;;  %v2452_v22 = vadd.f32 %v2451_v35, %v2421_v30 }
 0x247   : > { %v2453_v52 = vadd.f32 %v2452_v22, %v2422_v57  ;;  %v2385_v0 = vadd.f32 %v2890_v9, %v2384_v58 }
 0x249   : > { %v2454_v48 = vadd.f32 %v2453_v52, %v2423_v12 }
 0x25c   : > { %v2893_v18 = vpop.f32.mrb[12].mxu1 }
 0x25d   : > { %v2344_v41 = vpop.f32.mrb[13].mxu1  ;;  %v2426_v47 = vmul.f32 %v2893_v18, %v2893_v18 }
 0x25e   : > { %v2386_v17 = vadd.f32 %v2385_v0, %v2344_v41  ;;  %v2424_v43 = vmul.f32 %v2344_v41, %v2344_v41  ;;  %v2894_v2 = vpop.f32.mrb[14].mxu1 }
 0x25f   : > { %v2347_v21 = vpop.f32.mrb[15].mxu1  ;;  %v2427_v62 = vmul.f32 %v2894_v2, %v2894_v2 }
 0x260   : > { %v2455_v40 = vadd.f32 %v2454_v48, %v2424_v43  ;;  %v2387_v7 = vadd.f32 %v2386_v17, %v2347_v21  ;;  %v2425_v36 = vmul.f32 %v2347_v21, %v2347_v21 }
 0x262   : > { %v2388_v28 = vadd.f32 %v2893_v18, %v2387_v7  ;;  %v2456_v26 = vadd.f32 %v2455_v40, %v2425_v36 }
 0x264   : > { %v2389_v4 = vadd.f32 %v2894_v2, %v2388_v28  ;;  %v2457_v45 = vadd.f32 %v2456_v26, %v2426_v47 }
 0x266   : > { %v2390_v38 = vrot.slane %v2389_v4, 4  ;;  %v2458_v34 = vadd.f32 %v2457_v45, %v2427_v62 }
 0x268   : > { %v2391_v42 = vadd.f32 %v2390_v38, %v2389_v4  ;;  %v2459_v33 = vrot.slane %v2458_v34, 4 }
 0x26a   : > { %v2392_v49 = vrot.slane %v2391_v42, 2  ;;  %v2460_v39 = vadd.f32 %v2459_v33, %v2458_v34 }
 0x26c   : > { %v2393_v19 = vadd.f32 %v2392_v49, %v2391_v42  ;;  %v2461_v61 = vrot.slane %v2460_v39, 2 }
 0x26e   : > { %v2394_v10 = vrot.slane %v2393_v19, 1  ;;  %v2462_v54 = vadd.f32 %v2461_v61, %v2460_v39 }
 0x270   : > { %v2395_v44 = vadd.f32 %v2394_v10, %v2393_v19  ;;  %v2463_v46 = vrot.slane %v2462_v54, 1 }
 0x272   : > { %v2464_v56 = vadd.f32 %v2463_v46, %v2462_v54  ;;  %2465 = vst [vmem:[%s172_s7] sm:$0x1] %v2395_v44 }
 0x274   : > { %2466 = vst [vmem:[%s175_s10] sm:$0x1] %v2464_v56 }
 0x275 PF: > { %s14_s12 = sadd.s32 1, %s3073_s12  }
 0x276   : > { %p11_p4 = scmp.ge.s32.totalorder %s14_s12, 4  }
 0x278   :  { %13 = sbr.rel (!%p11_p4) target bundleno = 1 (0x1), region = 72 }

</bundles_post_ra>
